<compile_context>
chip_gen: v5e
topology: v5e:2x2
jax: 0.10.0
libtpu: 0.0.40
codegen_flags: <defaults>
</compile_context>

<pallas_src>
import jax
import jax.numpy as jnp
from jax import lax
from jax.experimental import pallas as pl
from jax.experimental.pallas import tpu as pltpu

_BN_EPS = 1e-5


def _round_up(x, m):
    return ((x + m - 1) // m) * m


# ---------------------------------------------------------------------------
# Kernel 1: fused Conv1d(replicate pad) + folded BatchNorm + ReLU stack
# ---------------------------------------------------------------------------
def _make_conv_stack_kernel(n_layers, L, K, pad):
    def kernel(*refs):
        x_ref = refs[0]
        o_ref = refs[1 + 2 * n_layers]
        act = x_ref[0].astype(jnp.float32)                       # (L, C_in)
        for i in range(n_layers):
            w_ref = refs[1 + 2 * i]                              # (K, Cin, Cout)
            b = refs[2 + 2 * i][...].astype(jnp.float32)         # (1, Cout)
            y = None
            for k in range(K):                                   # K taps, unrolled
                s = k - pad
                if s < 0:   # replicate left edge
                    edge = jnp.broadcast_to(act[0:1, :], (-s,) + act.shape[1:])
                    shifted = jnp.concatenate([edge, act[:L + s, :]], axis=0)
                elif s > 0:  # replicate right edge
                    edge = jnp.broadcast_to(act[L - 1:L, :], (s,) + act.shape[1:])
                    shifted = jnp.concatenate([act[s:, :], edge], axis=0)
                else:
                    shifted = act
                part = jnp.dot(shifted, w_ref[k].astype(jnp.float32),
                               preferred_element_type=jnp.float32)
                y = part if y is None else y + part
            act = jnp.maximum(y + b, 0.0)            # folded eval-BN + fused ReLU
        o_ref[0] = act.astype(o_ref.dtype)
    return kernel


def _fold_bn_into_conv(conv, bn, eps=_BN_EPS):
    scale = bn["gamma"] * lax.rsqrt(bn["var"] + eps)
    w = conv["w"] * scale[:, None, None]                         # (Cout, Cin, K)
    b = (conv["b"] - bn["mean"]) * scale + bn["beta"]
    return w, b


def conv_stack_bn_relu(x, convs, bns):
    """x: (B, C_in, L) -> (B, C_last, L); all Conv1d(replicate)+eval-BN+ReLU
    layers run inside one Pallas kernel (activations stay VMEM-resident)."""
    B, c_in, L = x.shape
    K = int(convs[0]["w"].shape[-1])
    assert K % 2 == 1  # TODO(synk): even kernel sizes change the output length
    pad = (K - 1) // 2
    n_layers = len(convs)

    c = [c_in] + [int(conv["w"].shape[0]) for conv in convs]     # real channels
    p = [_round_up(c_in, 8)] + [_round_up(ci, 128) for ci in c[1:]]  # padded

    x_blc = jnp.transpose(x, (0, 2, 1))                          # (B, L, C_in)
    if p[0] != c_in:
        x_blc = jnp.pad(x_blc, ((0, 0), (0, 0), (0, p[0] - c_in)))

    ins = [x_blc]
    in_specs = [pl.BlockSpec((1, L, p[0]), lambda b: (b, 0, 0))]
    for i, (conv, bn) in enumerate(zip(convs, bns)):
        w, bias = _fold_bn_into_conv(conv, bn)
        wk = jnp.transpose(w, (2, 1, 0))                         # (K, Cin, Cout)
        wk = jnp.pad(wk, ((0, 0), (0, p[i] - c[i]), (0, p[i + 1] - c[i + 1])))
        bk = jnp.pad(bias, ((0, p[i + 1] - c[i + 1]),)).reshape(1, p[i + 1])
        ins += [wk, bk]
        in_specs += [pl.BlockSpec(wk.shape, lambda b: (0, 0, 0)),
                     pl.BlockSpec(bk.shape, lambda b: (0, 0))]

    flops = 2 * B * L * K * sum(p[i] * p[i + 1] for i in range(n_layers))
    bytes_in = x_blc.size * 4 + B * sum(a.size for a in ins[1:]) * 4
    bytes_out = B * L * p[-1] * 4

    y = pl.pallas_call(
        _make_conv_stack_kernel(n_layers, L, K, pad),
        out_shape=jax.ShapeDtypeStruct((B, L, p[-1]), x.dtype),
        grid=(B,),
        in_specs=in_specs,
        out_specs=pl.BlockSpec((1, L, p[-1]), lambda b: (b, 0, 0)),
        compiler_params=pltpu.CompilerParams(
            dimension_semantics=("parallel",)),
        cost_estimate=pl.CostEstimate(flops=int(flops), transcendentals=0,
                                      bytes_accessed=int(bytes_in + bytes_out)),
    )(*ins)
    # Slice off padded channels; return the (B, C_last, L) layout that the
    # (identity) TimeDistributed(Flatten) + LSTM expect.
    return jnp.transpose(y[:, :, :c[-1]], (0, 2, 1))


# ---------------------------------------------------------------------------
# Kernel 2: fused LSTM stack + Linear head + log_softmax
# ---------------------------------------------------------------------------
def _make_lstm_head_kernel(n_layers, T, H, O):
    def _sigmoid(z):
        return 1.0 / (1.0 + jnp.exp(-z))

    def kernel(*refs):
        x_ref = refs[0]
        ow_ref = refs[1 + 3 * n_layers]
        ob_ref = refs[2 + 3 * n_layers]
        o_ref = refs[3 + 3 * n_layers]

        inp = x_ref[0].astype(jnp.float32)                       # (T, F)
        h = None
        for l in range(n_layers):
            w_ih = refs[1 + 3 * l][...].astype(jnp.float32)      # (F_l, 4H)
            w_hh = refs[2 + 3 * l][...].astype(jnp.float32)      # (H, 4H)
            bias = refs[3 + 3 * l][...].astype(jnp.float32)      # (1, 4H)
            # every timestep's input projection in one MXU pass
            xp = jnp.dot(inp, w_ih, preferred_element_type=jnp.float32) + bias
            h = jnp.zeros((1, H), jnp.float32)
            c = jnp.zeros((1, H), jnp.float32)
            hs = []
            # TODO(synk): static unroll is right for small T; switch to
            # lax.fori_loop + a VMEM scratch sequence buffer for long T.
            for t in range(T):
                gates = xp[t:t + 1, :] + jnp.dot(
                    h, w_hh, preferred_element_type=jnp.float32)  # (1, 4H)
                i_g = _sigmoid(gates[:, 0 * H:1 * H])            # PyTorch i,f,g,o
                f_g = _sigmoid(gates[:, 1 * H:2 * H])
                g_g = jnp.tanh(gates[:, 2 * H:3 * H])
                o_g = _sigmoid(gates[:, 3 * H:4 * H])
                c = f_g * c + i_g * g_g
                h = o_g * jnp.tanh(c)
                hs.append(h)
            if l + 1 < n_layers:
                inp = jnp.concatenate(hs, axis=0)                # (T, H)

        # fused TimeDistributed(Linear) head + log_softmax on the last state
        logits = jnp.dot(h, ow_ref[...].astype(jnp.float32),
                         preferred_element_type=jnp.float32) \
            + ob_ref[...].astype(jnp.float32)                    # (1, O_pad)
        valid = lax.broadcasted_iota(jnp.int32, logits.shape, 1) < O
        logits = jnp.where(valid, logits, -1e30)
        m = jnp.max(logits, axis=-1, keepdims=True)
        lse = jnp.log(jnp.sum(jnp.exp(logits - m), axis=-1, keepdims=True)) + m
        o_ref[0] = (logits - lse)[:, :O].astype(o_ref.dtype)
    return kernel


def lstm_head_logsoftmax(seq, lstm_layers, hidden, out_w, out_b):
    """seq: (B, T, F) -> (B, O) log-probs.  LSTM stack + head + log_softmax in
    one Pallas kernel (weights and h/c stay VMEM-resident)."""
    B, T, F = seq.shape
    H = int(hidden)
    O = int(out_w.shape[1])
    O_p = _round_up(O, 128)
    n_layers = len(lstm_layers)

    ins = [seq]
    in_specs = [pl.BlockSpec((1, T, F), lambda b: (b, 0, 0))]
    for (w_ih, w_hh, b_ih, b_hh) in lstm_layers:
        w_ih_t = jnp.transpose(w_ih)                             # (F_l, 4H)
        w_hh_t = jnp.transpose(w_hh)                             # (H, 4H)
        bias = (b_ih + b_hh).reshape(1, 4 * H)
        ins += [w_ih_t, w_hh_t, bias]
        in_specs += [pl.BlockSpec(w_ih_t.shape, lambda b: (0, 0)),
                     pl.BlockSpec(w_hh_t.shape, lambda b: (0, 0)),
                     pl.BlockSpec(bias.shape, lambda b: (0, 0))]
    ow = jnp.pad(out_w, ((0, 0), (0, O_p - O)))                  # lane-padded head
    ob = jnp.pad(out_b, ((0, O_p - O),)).reshape(1, O_p)
    ins += [ow, ob]
    in_specs += [pl.BlockSpec(ow.shape, lambda b: (0, 0)),
                 pl.BlockSpec(ob.shape, lambda b: (0, 0))]

    flops = 2 * B * sum(T * int(w_ih.shape[1]) * 4 * H + T * H * 4 * H
                        for (w_ih, _, _, _) in lstm_layers) + 2 * B * H * O_p
    trans = B * n_layers * T * 5 * H
    bytes_in = seq.size * 4 + B * sum(a.size for a in ins[1:]) * 4

    y = pl.pallas_call(
        _make_lstm_head_kernel(n_layers, T, H, O),
        out_shape=jax.ShapeDtypeStruct((B, 1, O), seq.dtype),
        grid=(B,),
        in_specs=in_specs,
        out_specs=pl.BlockSpec((1, 1, O), lambda b: (b, 0, 0)),
        compiler_params=pltpu.CompilerParams(
            dimension_semantics=("parallel",)),
        cost_estimate=pl.CostEstimate(flops=int(flops), transcendentals=int(trans),
                                      bytes_accessed=int(bytes_in + B * O * 4)),
    )(*ins)
    return y[:, 0, :]


# ---------------------------------------------------------------------------
# Full CNN_LSTM forward (inference semantics: Dropout = identity)
# ---------------------------------------------------------------------------
def cnn_lstm_forward(x, params):
    out = conv_stack_bn_relu(x, params["convs"], params["bns"])
    # TimeDistributed(nn.Flatten()) is the identity for a 3-D (B, C, L) tensor.
    return lstm_head_logsoftmax(out, params["lstm"], params["hidden"],
                                params["out_w"], params["out_b"])


# ---------------------------------------------------------------------------
# Pure-JAX reference (no Pallas) for correctness checking
# ---------------------------------------------------------------------------
def batchnorm1d_eval(x, gamma, beta, mean, var, eps=_BN_EPS):
    inv = lax.rsqrt(var + eps)
    return (x - mean[None, :, None]) * (gamma * inv)[None, :, None] \
        + beta[None, :, None]


def _ref_conv1d(x, weight, bias):
    pad = (weight.shape[-1] - 1) // 2
    xp = jnp.pad(x, ((0, 0), (0, 0), (pad, pad)), mode="edge")
    y = lax.conv_general_dilated(xp, weight, window_strides=(1,),
                                 padding="VALID",
                                 dimension_numbers=("NCH", "OIH", "NCH"))
    return y + bias[None, :, None]


def _ref_lstm(x, layers, H):
    out = x
    for (w_ih, w_hh, b_ih, b_hh) in layers:
        B, T, _ = out.shape
        h = jnp.zeros((B, H), jnp.float32)
        c = jnp.zeros((B, H), jnp.float32)
        hs = []
        for t in range(T):
            gates = out[:, t] @ w_ih.T + b_ih + h @ w_hh.T + b_hh
            i, f, g, o = jnp.split(gates, 4, axis=-1)
            i = jax.nn.sigmoid(i)
            f = jax.nn.sigmoid(f)
            g = jnp.tanh(g)
            o = jax.nn.sigmoid(o)
            c = f * c + i * g
            h = o * jnp.tanh(c)
            hs.append(h)
        out = jnp.stack(hs, axis=1)
    return out


def _ref_forward(x, params):
    out = x
    for conv, bn in zip(params["convs"], params["bns"]):
        out = _ref_conv1d(out, conv["w"], conv["b"])
        out = batchnorm1d_eval(out, bn["gamma"], bn["beta"],
                               bn["mean"], bn["var"])
        out = jnp.maximum(out, 0.0)
    out = out.reshape(out.shape[0], out.shape[1], -1)
    out = _ref_lstm(out, params["lstm"], params["hidden"])
    logits = out[:, -1, :] @ params["out_w"] + params["out_b"]
    return jax.nn.log_softmax(logits, axis=1)


# ---------------------------------------------------------------------------
if __name__ == "__main__":
    key = jax.random.PRNGKey(0)

    B = 2
    INPUT_SIZE = 4          # Conv1d input channels
    L = 16                  # sequence length of the conv stack
    FEATURES = L            # LSTM input_size must equal L after Flatten
    OUTPUT_SIZE = 6
    KERNEL_SIZE = 3
    CONV_FILTERS = (32, 16, 8)
    LSTM_LAYERS = 2
    HIDDEN = 32             # bidirectional=False

    def nrm(k, shape, scale=0.1):
        return scale * jax.random.normal(k, shape, dtype=jnp.float32)

    keys = iter(jax.random.split(key, 64))
    x = jax.random.normal(next(keys), (B, INPUT_SIZE, L), dtype=jnp.float32)

    convs, bns = [], []
    in_ch = INPUT_SIZE
    for c_out in CONV_FILTERS:
        convs.append({"w": nrm(next(keys), (c_out, in_ch, KERNEL_SIZE)),
                      "b": nrm(next(keys), (c_out,))})
        bns.append({"gamma": 1.0 + nrm(next(keys), (c_out,)),
                    "beta": nrm(next(keys), (c_out,)),
                    "mean": nrm(next(keys), (c_out,)),
                    "var": 1.0 + 0.1 * jax.random.uniform(next(keys), (c_out,))})
        in_ch = c_out

    lstm_layers = []
    lstm_in = FEATURES
    for _ in range(LSTM_LAYERS):
        lstm_layers.append((nrm(next(keys), (4 * HIDDEN, lstm_in)),   # W_ih
                            nrm(next(keys), (4 * HIDDEN, HIDDEN)),    # W_hh
                            nrm(next(keys), (4 * HIDDEN,)),           # b_ih
                            nrm(next(keys), (4 * HIDDEN,))))          # b_hh
        lstm_in = HIDDEN

    params = {
        "convs": convs,
        "bns": bns,
        "lstm": lstm_layers,
        "hidden": HIDDEN,
        "out_w": nrm(next(keys), (HIDDEN, OUTPUT_SIZE), scale=0.01),
        "out_b": nrm(next(keys), (OUTPUT_SIZE,), scale=0.01),
    }

    fwd = jax.jit(lambda inp: cnn_lstm_forward(inp, params))
    y = jax.block_until_ready(fwd(x))

    y_ref = _ref_forward(x, params)
    assert y.shape == (B, OUTPUT_SIZE), y.shape
    err = float(jnp.max(jnp.abs(y - y_ref)))
    assert jnp.allclose(y, y_ref, atol=1e-4, rtol=1e-4), err

    print("KERNEL_OK")
</pallas_src>

<mosaic_0001>
module attributes {stable_mosaic.version = 11 : i64} {
  func.func @kernel(%arg0: i32, %arg1: memref<1x16x8xf32, #tpu.memory_space<vmem>>, %arg2: memref<3x8x128xf32, #tpu.memory_space<vmem>>, %arg3: memref<1x128xf32, #tpu.memory_space<vmem>>, %arg4: memref<3x128x128xf32, #tpu.memory_space<vmem>>, %arg5: memref<1x128xf32, #tpu.memory_space<vmem>>, %arg6: memref<3x128x128xf32, #tpu.memory_space<vmem>>, %arg7: memref<1x128xf32, #tpu.memory_space<vmem>>, %arg8: memref<1x16x128xf32, #tpu.memory_space<vmem>>) attributes {dimension_semantics = [#tpu.dimension_semantics<parallel>], iteration_bounds = array<i64: 2>, scalar_prefetch = 0 : i64, scratch_operands = 0 : i64, tpu.core_type = #tpu.core_type<tc>, window_params = [{transform_indices = @transform_0, window_bounds = array<i64: 1, 16, 8>}, {pipeline_mode = #tpu.pipeline_mode<synchronous>, transform_indices = @transform_1, window_bounds = array<i64: 3, 8, 128>}, {pipeline_mode = #tpu.pipeline_mode<synchronous>, transform_indices = @transform_2, window_bounds = array<i64: 1, 128>}, {pipeline_mode = #tpu.pipeline_mode<synchronous>, transform_indices = @transform_3, window_bounds = array<i64: 3, 128, 128>}, {pipeline_mode = #tpu.pipeline_mode<synchronous>, transform_indices = @transform_4, window_bounds = array<i64: 1, 128>}, {pipeline_mode = #tpu.pipeline_mode<synchronous>, transform_indices = @transform_5, window_bounds = array<i64: 3, 128, 128>}, {pipeline_mode = #tpu.pipeline_mode<synchronous>, transform_indices = @transform_6, window_bounds = array<i64: 1, 128>}, {transform_indices = @transform_7, window_bounds = array<i64: 1, 16, 128>}]} {
    %c0 = arith.constant 0 : index
    %c0_0 = arith.constant 0 : index
    %c0_1 = arith.constant 0 : index
    %0 = vector.load %arg1[%c0, %c0_0, %c0_1] : memref<1x16x8xf32, #tpu.memory_space<vmem>>, vector<1x16x8xf32>
    %1 = vector.shape_cast %0 : vector<1x16x8xf32> to vector<16x8xf32>
    %c0_2 = arith.constant 0 : index
    %c0_3 = arith.constant 0 : index
    %2 = vector.load %arg3[%c0_2, %c0_3] : memref<1x128xf32, #tpu.memory_space<vmem>>, vector<1x128xf32>
    %3 = vector.extract_strided_slice %1 {offsets = [0, 0], sizes = [1, 8], strides = [1, 1]} : vector<16x8xf32> to vector<1x8xf32>
    %4 = vector.extract_strided_slice %1 {offsets = [0, 0], sizes = [15, 8], strides = [1, 1]} : vector<16x8xf32> to vector<15x8xf32>
    %5 = tpu.concatenate %3, %4 in 0 : vector<1x8xf32>, vector<15x8xf32> -> vector<16x8xf32>
    %c0_4 = arith.constant 0 : index
    %c0_5 = arith.constant 0 : index
    %c0_6 = arith.constant 0 : index
    %6 = vector.load %arg2[%c0_4, %c0_5, %c0_6] : memref<3x8x128xf32, #tpu.memory_space<vmem>>, vector<1x8x128xf32>
    %7 = vector.shape_cast %6 : vector<1x8x128xf32> to vector<8x128xf32>
    %cst = arith.constant dense<0.000000e+00> : vector<16x128xf32>
    %8 = tpu.matmul %5, %7, %cst {dimension_numbers = #tpu.dot_dimension_numbers<[1], [0], [0], [1], [0, 0, 1, 1], [], []>} : vector<16x8xf32>, vector<8x128xf32>, vector<16x128xf32> -> vector<16x128xf32>
    %c1 = arith.constant 1 : index
    %c0_7 = arith.constant 0 : index
    %c0_8 = arith.constant 0 : index
    %9 = vector.load %arg2[%c1, %c0_7, %c0_8] : memref<3x8x128xf32, #tpu.memory_space<vmem>>, vector<1x8x128xf32>
    %10 = vector.shape_cast %9 : vector<1x8x128xf32> to vector<8x128xf32>
    %cst_9 = arith.constant dense<0.000000e+00> : vector<16x128xf32>
    %11 = tpu.matmul %1, %10, %cst_9 {dimension_numbers = #tpu.dot_dimension_numbers<[1], [0], [0], [1], [0, 0, 1, 1], [], []>} : vector<16x8xf32>, vector<8x128xf32>, vector<16x128xf32> -> vector<16x128xf32>
    %12 = arith.addf %8, %11 : vector<16x128xf32>
    %13 = vector.extract_strided_slice %1 {offsets = [15, 0], sizes = [1, 8], strides = [1, 1]} : vector<16x8xf32> to vector<1x8xf32>
    %14 = vector.extract_strided_slice %1 {offsets = [1, 0], sizes = [15, 8], strides = [1, 1]} : vector<16x8xf32> to vector<15x8xf32>
    %15 = tpu.concatenate %14, %13 in 0 : vector<15x8xf32>, vector<1x8xf32> -> vector<16x8xf32>
    %c2 = arith.constant 2 : index
    %c0_10 = arith.constant 0 : index
    %c0_11 = arith.constant 0 : index
    %16 = vector.load %arg2[%c2, %c0_10, %c0_11] : memref<3x8x128xf32, #tpu.memory_space<vmem>>, vector<1x8x128xf32>
    %17 = vector.shape_cast %16 : vector<1x8x128xf32> to vector<8x128xf32>
    %cst_12 = arith.constant dense<0.000000e+00> : vector<16x128xf32>
    %18 = tpu.matmul %15, %17, %cst_12 {dimension_numbers = #tpu.dot_dimension_numbers<[1], [0], [0], [1], [0, 0, 1, 1], [], []>} : vector<16x8xf32>, vector<8x128xf32>, vector<16x128xf32> -> vector<16x128xf32>
    %19 = arith.addf %12, %18 : vector<16x128xf32>
    %20 = vector.broadcast %2 : vector<1x128xf32> to vector<16x128xf32>
    %21 = arith.addf %19, %20 : vector<16x128xf32>
    %cst_13 = arith.constant 0.000000e+00 : f32
    %22 = vector.broadcast %cst_13 : f32 to vector<16x128xf32>
    %23 = arith.maximumf %21, %22 : vector<16x128xf32>
    %c0_14 = arith.constant 0 : index
    %c0_15 = arith.constant 0 : index
    %24 = vector.load %arg5[%c0_14, %c0_15] : memref<1x128xf32, #tpu.memory_space<vmem>>, vector<1x128xf32>
    %25 = vector.extract_strided_slice %23 {offsets = [0, 0], sizes = [1, 128], strides = [1, 1]} : vector<16x128xf32> to vector<1x128xf32>
    %26 = vector.extract_strided_slice %23 {offsets = [0, 0], sizes = [15, 128], strides = [1, 1]} : vector<16x128xf32> to vector<15x128xf32>
    %27 = tpu.concatenate %25, %26 in 0 : vector<1x128xf32>, vector<15x128xf32> -> vector<16x128xf32>
    %c0_16 = arith.constant 0 : index
    %c0_17 = arith.constant 0 : index
    %c0_18 = arith.constant 0 : index
    %28 = vector.load %arg4[%c0_16, %c0_17, %c0_18] : memref<3x128x128xf32, #tpu.memory_space<vmem>>, vector<1x128x128xf32>
    %29 = vector.shape_cast %28 : vector<1x128x128xf32> to vector<128x128xf32>
    %cst_19 = arith.constant dense<0.000000e+00> : vector<16x128xf32>
    %30 = tpu.matmul %27, %29, %cst_19 {dimension_numbers = #tpu.dot_dimension_numbers<[1], [0], [0], [1], [0, 0, 1, 1], [], []>} : vector<16x128xf32>, vector<128x128xf32>, vector<16x128xf32> -> vector<16x128xf32>
    %c1_20 = arith.constant 1 : index
    %c0_21 = arith.constant 0 : index
    %c0_22 = arith.constant 0 : index
    %31 = vector.load %arg4[%c1_20, %c0_21, %c0_22] : memref<3x128x128xf32, #tpu.memory_space<vmem>>, vector<1x128x128xf32>
    %32 = vector.shape_cast %31 : vector<1x128x128xf32> to vector<128x128xf32>
    %cst_23 = arith.constant dense<0.000000e+00> : vector<16x128xf32>
    %33 = tpu.matmul %23, %32, %cst_23 {dimension_numbers = #tpu.dot_dimension_numbers<[1], [0], [0], [1], [0, 0, 1, 1], [], []>} : vector<16x128xf32>, vector<128x128xf32>, vector<16x128xf32> -> vector<16x128xf32>
    %34 = arith.addf %30, %33 : vector<16x128xf32>
    %35 = vector.extract_strided_slice %23 {offsets = [15, 0], sizes = [1, 128], strides = [1, 1]} : vector<16x128xf32> to vector<1x128xf32>
    %36 = vector.extract_strided_slice %23 {offsets = [1, 0], sizes = [15, 128], strides = [1, 1]} : vector<16x128xf32> to vector<15x128xf32>
    %37 = tpu.concatenate %36, %35 in 0 : vector<15x128xf32>, vector<1x128xf32> -> vector<16x128xf32>
    %c2_24 = arith.constant 2 : index
    %c0_25 = arith.constant 0 : index
    %c0_26 = arith.constant 0 : index
    %38 = vector.load %arg4[%c2_24, %c0_25, %c0_26] : memref<3x128x128xf32, #tpu.memory_space<vmem>>, vector<1x128x128xf32>
    %39 = vector.shape_cast %38 : vector<1x128x128xf32> to vector<128x128xf32>
    %cst_27 = arith.constant dense<0.000000e+00> : vector<16x128xf32>
    %40 = tpu.matmul %37, %39, %cst_27 {dimension_numbers = #tpu.dot_dimension_numbers<[1], [0], [0], [1], [0, 0, 1, 1], [], []>} : vector<16x128xf32>, vector<128x128xf32>, vector<16x128xf32> -> vector<16x128xf32>
    %41 = arith.addf %34, %40 : vector<16x128xf32>
    %42 = vector.broadcast %24 : vector<1x128xf32> to vector<16x128xf32>
    %43 = arith.addf %41, %42 : vector<16x128xf32>
    %cst_28 = arith.constant 0.000000e+00 : f32
    %44 = vector.broadcast %cst_28 : f32 to vector<16x128xf32>
    %45 = arith.maximumf %43, %44 : vector<16x128xf32>
    %c0_29 = arith.constant 0 : index
    %c0_30 = arith.constant 0 : index
    %46 = vector.load %arg7[%c0_29, %c0_30] : memref<1x128xf32, #tpu.memory_space<vmem>>, vector<1x128xf32>
    %47 = vector.extract_strided_slice %45 {offsets = [0, 0], sizes = [1, 128], strides = [1, 1]} : vector<16x128xf32> to vector<1x128xf32>
    %48 = vector.extract_strided_slice %45 {offsets = [0, 0], sizes = [15, 128], strides = [1, 1]} : vector<16x128xf32> to vector<15x128xf32>
    %49 = tpu.concatenate %47, %48 in 0 : vector<1x128xf32>, vector<15x128xf32> -> vector<16x128xf32>
    %c0_31 = arith.constant 0 : index
    %c0_32 = arith.constant 0 : index
    %c0_33 = arith.constant 0 : index
    %50 = vector.load %arg6[%c0_31, %c0_32, %c0_33] : memref<3x128x128xf32, #tpu.memory_space<vmem>>, vector<1x128x128xf32>
    %51 = vector.shape_cast %50 : vector<1x128x128xf32> to vector<128x128xf32>
    %cst_34 = arith.constant dense<0.000000e+00> : vector<16x128xf32>
    %52 = tpu.matmul %49, %51, %cst_34 {dimension_numbers = #tpu.dot_dimension_numbers<[1], [0], [0], [1], [0, 0, 1, 1], [], []>} : vector<16x128xf32>, vector<128x128xf32>, vector<16x128xf32> -> vector<16x128xf32>
    %c1_35 = arith.constant 1 : index
    %c0_36 = arith.constant 0 : index
    %c0_37 = arith.constant 0 : index
    %53 = vector.load %arg6[%c1_35, %c0_36, %c0_37] : memref<3x128x128xf32, #tpu.memory_space<vmem>>, vector<1x128x128xf32>
    %54 = vector.shape_cast %53 : vector<1x128x128xf32> to vector<128x128xf32>
    %cst_38 = arith.constant dense<0.000000e+00> : vector<16x128xf32>
    %55 = tpu.matmul %45, %54, %cst_38 {dimension_numbers = #tpu.dot_dimension_numbers<[1], [0], [0], [1], [0, 0, 1, 1], [], []>} : vector<16x128xf32>, vector<128x128xf32>, vector<16x128xf32> -> vector<16x128xf32>
    %56 = arith.addf %52, %55 : vector<16x128xf32>
    %57 = vector.extract_strided_slice %45 {offsets = [15, 0], sizes = [1, 128], strides = [1, 1]} : vector<16x128xf32> to vector<1x128xf32>
    %58 = vector.extract_strided_slice %45 {offsets = [1, 0], sizes = [15, 128], strides = [1, 1]} : vector<16x128xf32> to vector<15x128xf32>
    %59 = tpu.concatenate %58, %57 in 0 : vector<15x128xf32>, vector<1x128xf32> -> vector<16x128xf32>
    %c2_39 = arith.constant 2 : index
    %c0_40 = arith.constant 0 : index
    %c0_41 = arith.constant 0 : index
    %60 = vector.load %arg6[%c2_39, %c0_40, %c0_41] : memref<3x128x128xf32, #tpu.memory_space<vmem>>, vector<1x128x128xf32>
    %61 = vector.shape_cast %60 : vector<1x128x128xf32> to vector<128x128xf32>
    %cst_42 = arith.constant dense<0.000000e+00> : vector<16x128xf32>
    %62 = tpu.matmul %59, %61, %cst_42 {dimension_numbers = #tpu.dot_dimension_numbers<[1], [0], [0], [1], [0, 0, 1, 1], [], []>} : vector<16x128xf32>, vector<128x128xf32>, vector<16x128xf32> -> vector<16x128xf32>
    %63 = arith.addf %56, %62 : vector<16x128xf32>
    %64 = vector.broadcast %46 : vector<1x128xf32> to vector<16x128xf32>
    %65 = arith.addf %63, %64 : vector<16x128xf32>
    %cst_43 = arith.constant 0.000000e+00 : f32
    %66 = vector.broadcast %cst_43 : f32 to vector<16x128xf32>
    %67 = arith.maximumf %65, %66 : vector<16x128xf32>
    %c0_44 = arith.constant 0 : index
    %c0_45 = arith.constant 0 : index
    %c0_46 = arith.constant 0 : index
    %68 = vector.load %arg8[%c0_44, %c0_45, %c0_46] : memref<1x16x128xf32, #tpu.memory_space<vmem>>, vector<1x16x128xf32>
    %69 = vector.shape_cast %68 : vector<1x16x128xf32> to vector<16x128xf32>
    %70 = vector.shape_cast %67 : vector<16x128xf32> to vector<1x16x128xf32>
    tpu.vector_store %arg8[%c0_44, %c0_45, %c0_46], %70 {strides = array<i32>} : memref<1x16x128xf32, #tpu.memory_space<vmem>>, vector<1x16x128xf32>,
    return
  }
  func.func @transform_0(%arg0: i32) -> (i32, i32, i32) {
    %c0_i32 = arith.constant 0 : i32
    %c0_i32_0 = arith.constant 0 : i32
    %c0_i32_1 = arith.constant 0 : i32
    return %arg0, %c0_i32, %c0_i32_0 : i32, i32, i32
  }
  func.func @transform_1(%arg0: i32) -> (i32, i32, i32) {
    %c0_i32 = arith.constant 0 : i32
    %c0_i32_0 = arith.constant 0 : i32
    %c0_i32_1 = arith.constant 0 : i32
    %c0_i32_2 = arith.constant 0 : i32
    return %c0_i32, %c0_i32_0, %c0_i32_1 : i32, i32, i32
  }
  func.func @transform_2(%arg0: i32) -> (i32, i32) {
    %c0_i32 = arith.constant 0 : i32
    %c0_i32_0 = arith.constant 0 : i32
    %c0_i32_1 = arith.constant 0 : i32
    return %c0_i32, %c0_i32_0 : i32, i32
  }
  func.func @transform_3(%arg0: i32) -> (i32, i32, i32) {
    %c0_i32 = arith.constant 0 : i32
    %c0_i32_0 = arith.constant 0 : i32
    %c0_i32_1 = arith.constant 0 : i32
    %c0_i32_2 = arith.constant 0 : i32
    return %c0_i32, %c0_i32_0, %c0_i32_1 : i32, i32, i32
  }
  func.func @transform_4(%arg0: i32) -> (i32, i32) {
    %c0_i32 = arith.constant 0 : i32
    %c0_i32_0 = arith.constant 0 : i32
    %c0_i32_1 = arith.constant 0 : i32
    return %c0_i32, %c0_i32_0 : i32, i32
  }
  func.func @transform_5(%arg0: i32) -> (i32, i32, i32) {
    %c0_i32 = arith.constant 0 : i32
    %c0_i32_0 = arith.constant 0 : i32
    %c0_i32_1 = arith.constant 0 : i32
    %c0_i32_2 = arith.constant 0 : i32
    return %c0_i32, %c0_i32_0, %c0_i32_1 : i32, i32, i32
  }
  func.func @transform_6(%arg0: i32) -> (i32, i32) {
    %c0_i32 = arith.constant 0 : i32
    %c0_i32_0 = arith.constant 0 : i32
    %c0_i32_1 = arith.constant 0 : i32
    return %c0_i32, %c0_i32_0 : i32, i32
  }
  func.func @transform_7(%arg0: i32) -> (i32, i32, i32) {
    %c0_i32 = arith.constant 0 : i32
    %c0_i32_0 = arith.constant 0 : i32
    %c0_i32_1 = arith.constant 0 : i32
    return %arg0, %c0_i32, %c0_i32_0 : i32, i32, i32
  }
}

module attributes {stable_mosaic.version = 11 : i64} {
  func.func @kernel(%arg0: i32, %arg1: memref<1x8x16xf32, #tpu.memory_space<vmem>>, %arg2: memref<16x128xf32, #tpu.memory_space<vmem>>, %arg3: memref<32x128xf32, #tpu.memory_space<vmem>>, %arg4: memref<1x128xf32, #tpu.memory_space<vmem>>, %arg5: memref<32x128xf32, #tpu.memory_space<vmem>>, %arg6: memref<32x128xf32, #tpu.memory_space<vmem>>, %arg7: memref<1x128xf32, #tpu.memory_space<vmem>>, %arg8: memref<32x128xf32, #tpu.memory_space<vmem>>, %arg9: memref<1x128xf32, #tpu.memory_space<vmem>>, %arg10: memref<1x1x6xf32, #tpu.memory_space<vmem>>) attributes {dimension_semantics = [#tpu.dimension_semantics<parallel>], iteration_bounds = array<i64: 2>, scalar_prefetch = 0 : i64, scratch_operands = 0 : i64, tpu.core_type = #tpu.core_type<tc>, window_params = [{transform_indices = @transform_0, window_bounds = array<i64: 1, 8, 16>}, {pipeline_mode = #tpu.pipeline_mode<synchronous>, transform_indices = @transform_1, window_bounds = array<i64: 16, 128>}, {pipeline_mode = #tpu.pipeline_mode<synchronous>, transform_indices = @transform_2, window_bounds = array<i64: 32, 128>}, {pipeline_mode = #tpu.pipeline_mode<synchronous>, transform_indices = @transform_3, window_bounds = array<i64: 1, 128>}, {pipeline_mode = #tpu.pipeline_mode<synchronous>, transform_indices = @transform_4, window_bounds = array<i64: 32, 128>}, {pipeline_mode = #tpu.pipeline_mode<synchronous>, transform_indices = @transform_5, window_bounds = array<i64: 32, 128>}, {pipeline_mode = #tpu.pipeline_mode<synchronous>, transform_indices = @transform_6, window_bounds = array<i64: 1, 128>}, {pipeline_mode = #tpu.pipeline_mode<synchronous>, transform_indices = @transform_7, window_bounds = array<i64: 32, 128>}, {pipeline_mode = #tpu.pipeline_mode<synchronous>, transform_indices = @transform_8, window_bounds = array<i64: 1, 128>}, {transform_indices = @transform_9, window_bounds = array<i64: 1, 1, 6>}]} {
    %c0 = arith.constant 0 : index
    %c0_0 = arith.constant 0 : index
    %c0_1 = arith.constant 0 : index
    %0 = vector.load %arg1[%c0, %c0_0, %c0_1] : memref<1x8x16xf32, #tpu.memory_space<vmem>>, vector<1x8x16xf32>
    %1 = vector.shape_cast %0 : vector<1x8x16xf32> to vector<8x16xf32>
    %c0_2 = arith.constant 0 : index
    %c0_3 = arith.constant 0 : index
    %2 = vector.load %arg2[%c0_2, %c0_3] : memref<16x128xf32, #tpu.memory_space<vmem>>, vector<16x128xf32>
    %c0_4 = arith.constant 0 : index
    %c0_5 = arith.constant 0 : index
    %3 = vector.load %arg3[%c0_4, %c0_5] : memref<32x128xf32, #tpu.memory_space<vmem>>, vector<32x128xf32>
    %c0_6 = arith.constant 0 : index
    %c0_7 = arith.constant 0 : index
    %4 = vector.load %arg4[%c0_6, %c0_7] : memref<1x128xf32, #tpu.memory_space<vmem>>, vector<1x128xf32>
    %cst = arith.constant dense<0.000000e+00> : vector<8x128xf32>
    %5 = tpu.matmul %1, %2, %cst {dimension_numbers = #tpu.dot_dimension_numbers<[1], [0], [0], [1], [0, 0, 1, 1], [], []>} : vector<8x16xf32>, vector<16x128xf32>, vector<8x128xf32> -> vector<8x128xf32>
    %6 = vector.broadcast %4 : vector<1x128xf32> to vector<8x128xf32>
    %7 = arith.addf %5, %6 : vector<8x128xf32>
    %cst_8 = arith.constant 0.000000e+00 : f32
    %8 = vector.broadcast %cst_8 : f32 to vector<1x32xf32>
    %cst_9 = arith.constant 0.000000e+00 : f32
    %9 = vector.broadcast %cst_9 : f32 to vector<1x32xf32>
    %10 = vector.extract_strided_slice %7 {offsets = [0, 0], sizes = [1, 128], strides = [1, 1]} : vector<8x128xf32> to vector<1x128xf32>
    %cst_10 = arith.constant dense<0.000000e+00> : vector<1x128xf32>
    %11 = tpu.matmul %8, %3, %cst_10 {dimension_numbers = #tpu.dot_dimension_numbers<[1], [0], [0], [1], [0, 0, 1, 1], [], []>} : vector<1x32xf32>, vector<32x128xf32>, vector<1x128xf32> -> vector<1x128xf32>
    %12 = arith.addf %10, %11 : vector<1x128xf32>
    %13 = vector.extract_strided_slice %12 {offsets = [0, 0], sizes = [1, 32], strides = [1, 1]} : vector<1x128xf32> to vector<1x32xf32>
    %cst_11 = arith.constant 0.000000e+00 : f32
    %14 = vector.broadcast %cst_11 : f32 to vector<1x32xf32>
    %15 = arith.subf %14, %13 : vector<1x32xf32>
    %16 = math.exp %15 : vector<1x32xf32>
    %cst_12 = arith.constant 1.000000e+00 : f32
    %17 = vector.broadcast %cst_12 : f32 to vector<1x32xf32>
    %18 = arith.addf %17, %16 : vector<1x32xf32>
    %cst_13 = arith.constant 1.000000e+00 : f32
    %19 = vector.broadcast %cst_13 : f32 to vector<1x32xf32>
    %20 = arith.divf %19, %18 : vector<1x32xf32>
    %21 = vector.extract_strided_slice %12 {offsets = [0, 32], sizes = [1, 32], strides = [1, 1]} : vector<1x128xf32> to vector<1x32xf32>
    %cst_14 = arith.constant 0.000000e+00 : f32
    %22 = vector.broadcast %cst_14 : f32 to vector<1x32xf32>
    %23 = arith.subf %22, %21 : vector<1x32xf32>
    %24 = math.exp %23 : vector<1x32xf32>
    %cst_15 = arith.constant 1.000000e+00 : f32
    %25 = vector.broadcast %cst_15 : f32 to vector<1x32xf32>
    %26 = arith.addf %25, %24 : vector<1x32xf32>
    %cst_16 = arith.constant 1.000000e+00 : f32
    %27 = vector.broadcast %cst_16 : f32 to vector<1x32xf32>
    %28 = arith.divf %27, %26 : vector<1x32xf32>
    %29 = vector.extract_strided_slice %12 {offsets = [0, 64], sizes = [1, 32], strides = [1, 1]} : vector<1x128xf32> to vector<1x32xf32>
    %30 = math.tanh %29 : vector<1x32xf32>
    %31 = vector.extract_strided_slice %12 {offsets = [0, 96], sizes = [1, 32], strides = [1, 1]} : vector<1x128xf32> to vector<1x32xf32>
    %cst_17 = arith.constant 0.000000e+00 : f32
    %32 = vector.broadcast %cst_17 : f32 to vector<1x32xf32>
    %33 = arith.subf %32, %31 : vector<1x32xf32>
    %34 = math.exp %33 : vector<1x32xf32>
    %cst_18 = arith.constant 1.000000e+00 : f32
    %35 = vector.broadcast %cst_18 : f32 to vector<1x32xf32>
    %36 = arith.addf %35, %34 : vector<1x32xf32>
    %cst_19 = arith.constant 1.000000e+00 : f32
    %37 = vector.broadcast %cst_19 : f32 to vector<1x32xf32>
    %38 = arith.divf %37, %36 : vector<1x32xf32>
    %39 = arith.mulf %28, %9 : vector<1x32xf32>
    %40 = arith.mulf %20, %30 : vector<1x32xf32>
    %41 = arith.addf %39, %40 : vector<1x32xf32>
    %42 = math.tanh %41 : vector<1x32xf32>
    %43 = arith.mulf %38, %42 : vector<1x32xf32>
    %44 = vector.extract_strided_slice %7 {offsets = [1, 0], sizes = [1, 128], strides = [1, 1]} : vector<8x128xf32> to vector<1x128xf32>
    %cst_20 = arith.constant dense<0.000000e+00> : vector<1x128xf32>
    %45 = tpu.matmul %43, %3, %cst_20 {dimension_numbers = #tpu.dot_dimension_numbers<[1], [0], [0], [1], [0, 0, 1, 1], [], []>} : vector<1x32xf32>, vector<32x128xf32>, vector<1x128xf32> -> vector<1x128xf32>
    %46 = arith.addf %44, %45 : vector<1x128xf32>
    %47 = vector.extract_strided_slice %46 {offsets = [0, 0], sizes = [1, 32], strides = [1, 1]} : vector<1x128xf32> to vector<1x32xf32>
    %cst_21 = arith.constant 0.000000e+00 : f32
    %48 = vector.broadcast %cst_21 : f32 to vector<1x32xf32>
    %49 = arith.subf %48, %47 : vector<1x32xf32>
    %50 = math.exp %49 : vector<1x32xf32>
    %cst_22 = arith.constant 1.000000e+00 : f32
    %51 = vector.broadcast %cst_22 : f32 to vector<1x32xf32>
    %52 = arith.addf %51, %50 : vector<1x32xf32>
    %cst_23 = arith.constant 1.000000e+00 : f32
    %53 = vector.broadcast %cst_23 : f32 to vector<1x32xf32>
    %54 = arith.divf %53, %52 : vector<1x32xf32>
    %55 = vector.extract_strided_slice %46 {offsets = [0, 32], sizes = [1, 32], strides = [1, 1]} : vector<1x128xf32> to vector<1x32xf32>
    %cst_24 = arith.constant 0.000000e+00 : f32
    %56 = vector.broadcast %cst_24 : f32 to vector<1x32xf32>
    %57 = arith.subf %56, %55 : vector<1x32xf32>
    %58 = math.exp %57 : vector<1x32xf32>
    %cst_25 = arith.constant 1.000000e+00 : f32
    %59 = vector.broadcast %cst_25 : f32 to vector<1x32xf32>
    %60 = arith.addf %59, %58 : vector<1x32xf32>
    %cst_26 = arith.constant 1.000000e+00 : f32
    %61 = vector.broadcast %cst_26 : f32 to vector<1x32xf32>
    %62 = arith.divf %61, %60 : vector<1x32xf32>
    %63 = vector.extract_strided_slice %46 {offsets = [0, 64], sizes = [1, 32], strides = [1, 1]} : vector<1x128xf32> to vector<1x32xf32>
    %64 = math.tanh %63 : vector<1x32xf32>
    %65 = vector.extract_strided_slice %46 {offsets = [0, 96], sizes = [1, 32], strides = [1, 1]} : vector<1x128xf32> to vector<1x32xf32>
    %cst_27 = arith.constant 0.000000e+00 : f32
    %66 = vector.broadcast %cst_27 : f32 to vector<1x32xf32>
    %67 = arith.subf %66, %65 : vector<1x32xf32>
    %68 = math.exp %67 : vector<1x32xf32>
    %cst_28 = arith.constant 1.000000e+00 : f32
    %69 = vector.broadcast %cst_28 : f32 to vector<1x32xf32>
    %70 = arith.addf %69, %68 : vector<1x32xf32>
    %cst_29 = arith.constant 1.000000e+00 : f32
    %71 = vector.broadcast %cst_29 : f32 to vector<1x32xf32>
    %72 = arith.divf %71, %70 : vector<1x32xf32>
    %73 = arith.mulf %62, %41 : vector<1x32xf32>
    %74 = arith.mulf %54, %64 : vector<1x32xf32>
    %75 = arith.addf %73, %74 : vector<1x32xf32>
    %76 = math.tanh %75 : vector<1x32xf32>
    %77 = arith.mulf %72, %76 : vector<1x32xf32>
    %78 = vector.extract_strided_slice %7 {offsets = [2, 0], sizes = [1, 128], strides = [1, 1]} : vector<8x128xf32> to vector<1x128xf32>
    %cst_30 = arith.constant dense<0.000000e+00> : vector<1x128xf32>
    %79 = tpu.matmul %77, %3, %cst_30 {dimension_numbers = #tpu.dot_dimension_numbers<[1], [0], [0], [1], [0, 0, 1, 1], [], []>} : vector<1x32xf32>, vector<32x128xf32>, vector<1x128xf32> -> vector<1x128xf32>
    %80 = arith.addf %78, %79 : vector<1x128xf32>
    %81 = vector.extract_strided_slice %80 {offsets = [0, 0], sizes = [1, 32], strides = [1, 1]} : vector<1x128xf32> to vector<1x32xf32>
    %cst_31 = arith.constant 0.000000e+00 : f32
    %82 = vector.broadcast %cst_31 : f32 to vector<1x32xf32>
    %83 = arith.subf %82, %81 : vector<1x32xf32>
    %84 = math.exp %83 : vector<1x32xf32>
    %cst_32 = arith.constant 1.000000e+00 : f32
    %85 = vector.broadcast %cst_32 : f32 to vector<1x32xf32>
    %86 = arith.addf %85, %84 : vector<1x32xf32>
    %cst_33 = arith.constant 1.000000e+00 : f32
    %87 = vector.broadcast %cst_33 : f32 to vector<1x32xf32>
    %88 = arith.divf %87, %86 : vector<1x32xf32>
    %89 = vector.extract_strided_slice %80 {offsets = [0, 32], sizes = [1, 32], strides = [1, 1]} : vector<1x128xf32> to vector<1x32xf32>
    %cst_34 = arith.constant 0.000000e+00 : f32
    %90 = vector.broadcast %cst_34 : f32 to vector<1x32xf32>
    %91 = arith.subf %90, %89 : vector<1x32xf32>
    %92 = math.exp %91 : vector<1x32xf32>
    %cst_35 = arith.constant 1.000000e+00 : f32
    %93 = vector.broadcast %cst_35 : f32 to vector<1x32xf32>
    %94 = arith.addf %93, %92 : vector<1x32xf32>
    %cst_36 = arith.constant 1.000000e+00 : f32
    %95 = vector.broadcast %cst_36 : f32 to vector<1x32xf32>
    %96 = arith.divf %95, %94 : vector<1x32xf32>
    %97 = vector.extract_strided_slice %80 {offsets = [0, 64], sizes = [1, 32], strides = [1, 1]} : vector<1x128xf32> to vector<1x32xf32>
    %98 = math.tanh %97 : vector<1x32xf32>
    %99 = vector.extract_strided_slice %80 {offsets = [0, 96], sizes = [1, 32], strides = [1, 1]} : vector<1x128xf32> to vector<1x32xf32>
    %cst_37 = arith.constant 0.000000e+00 : f32
    %100 = vector.broadcast %cst_37 : f32 to vector<1x32xf32>
    %101 = arith.subf %100, %99 : vector<1x32xf32>
    %102 = math.exp %101 : vector<1x32xf32>
    %cst_38 = arith.constant 1.000000e+00 : f32
    %103 = vector.broadcast %cst_38 : f32 to vector<1x32xf32>
    %104 = arith.addf %103, %102 : vector<1x32xf32>
    %cst_39 = arith.constant 1.000000e+00 : f32
    %105 = vector.broadcast %cst_39 : f32 to vector<1x32xf32>
    %106 = arith.divf %105, %104 : vector<1x32xf32>
    %107 = arith.mulf %96, %75 : vector<1x32xf32>
    %108 = arith.mulf %88, %98 : vector<1x32xf32>
    %109 = arith.addf %107, %108 : vector<1x32xf32>
    %110 = math.tanh %109 : vector<1x32xf32>
    %111 = arith.mulf %106, %110 : vector<1x32xf32>
    %112 = vector.extract_strided_slice %7 {offsets = [3, 0], sizes = [1, 128], strides = [1, 1]} : vector<8x128xf32> to vector<1x128xf32>
    %cst_40 = arith.constant dense<0.000000e+00> : vector<1x128xf32>
    %113 = tpu.matmul %111, %3, %cst_40 {dimension_numbers = #tpu.dot_dimension_numbers<[1], [0], [0], [1], [0, 0, 1, 1], [], []>} : vector<1x32xf32>, vector<32x128xf32>, vector<1x128xf32> -> vector<1x128xf32>
    %114 = arith.addf %112, %113 : vector<1x128xf32>
    %115 = vector.extract_strided_slice %114 {offsets = [0, 0], sizes = [1, 32], strides = [1, 1]} : vector<1x128xf32> to vector<1x32xf32>
    %cst_41 = arith.constant 0.000000e+00 : f32
    %116 = vector.broadcast %cst_41 : f32 to vector<1x32xf32>
    %117 = arith.subf %116, %115 : vector<1x32xf32>
    %118 = math.exp %117 : vector<1x32xf32>
    %cst_42 = arith.constant 1.000000e+00 : f32
    %119 = vector.broadcast %cst_42 : f32 to vector<1x32xf32>
    %120 = arith.addf %119, %118 : vector<1x32xf32>
    %cst_43 = arith.constant 1.000000e+00 : f32
    %121 = vector.broadcast %cst_43 : f32 to vector<1x32xf32>
    %122 = arith.divf %121, %120 : vector<1x32xf32>
    %123 = vector.extract_strided_slice %114 {offsets = [0, 32], sizes = [1, 32], strides = [1, 1]} : vector<1x128xf32> to vector<1x32xf32>
    %cst_44 = arith.constant 0.000000e+00 : f32
    %124 = vector.broadcast %cst_44 : f32 to vector<1x32xf32>
    %125 = arith.subf %124, %123 : vector<1x32xf32>
    %126 = math.exp %125 : vector<1x32xf32>
    %cst_45 = arith.constant 1.000000e+00 : f32
    %127 = vector.broadcast %cst_45 : f32 to vector<1x32xf32>
    %128 = arith.addf %127, %126 : vector<1x32xf32>
    %cst_46 = arith.constant 1.000000e+00 : f32
    %129 = vector.broadcast %cst_46 : f32 to vector<1x32xf32>
    %130 = arith.divf %129, %128 : vector<1x32xf32>
    %131 = vector.extract_strided_slice %114 {offsets = [0, 64], sizes = [1, 32], strides = [1, 1]} : vector<1x128xf32> to vector<1x32xf32>
    %132 = math.tanh %131 : vector<1x32xf32>
    %133 = vector.extract_strided_slice %114 {offsets = [0, 96], sizes = [1, 32], strides = [1, 1]} : vector<1x128xf32> to vector<1x32xf32>
    %cst_47 = arith.constant 0.000000e+00 : f32
    %134 = vector.broadcast %cst_47 : f32 to vector<1x32xf32>
    %135 = arith.subf %134, %133 : vector<1x32xf32>
    %136 = math.exp %135 : vector<1x32xf32>
    %cst_48 = arith.constant 1.000000e+00 : f32
    %137 = vector.broadcast %cst_48 : f32 to vector<1x32xf32>
    %138 = arith.addf %137, %136 : vector<1x32xf32>
    %cst_49 = arith.constant 1.000000e+00 : f32
    %139 = vector.broadcast %cst_49 : f32 to vector<1x32xf32>
    %140 = arith.divf %139, %138 : vector<1x32xf32>
    %141 = arith.mulf %130, %109 : vector<1x32xf32>
    %142 = arith.mulf %122, %132 : vector<1x32xf32>
    %143 = arith.addf %141, %142 : vector<1x32xf32>
    %144 = math.tanh %143 : vector<1x32xf32>
    %145 = arith.mulf %140, %144 : vector<1x32xf32>
    %146 = vector.extract_strided_slice %7 {offsets = [4, 0], sizes = [1, 128], strides = [1, 1]} : vector<8x128xf32> to vector<1x128xf32>
    %cst_50 = arith.constant dense<0.000000e+00> : vector<1x128xf32>
    %147 = tpu.matmul %145, %3, %cst_50 {dimension_numbers = #tpu.dot_dimension_numbers<[1], [0], [0], [1], [0, 0, 1, 1], [], []>} : vector<1x32xf32>, vector<32x128xf32>, vector<1x128xf32> -> vector<1x128xf32>
    %148 = arith.addf %146, %147 : vector<1x128xf32>
    %149 = vector.extract_strided_slice %148 {offsets = [0, 0], sizes = [1, 32], strides = [1, 1]} : vector<1x128xf32> to vector<1x32xf32>
    %cst_51 = arith.constant 0.000000e+00 : f32
    %150 = vector.broadcast %cst_51 : f32 to vector<1x32xf32>
    %151 = arith.subf %150, %149 : vector<1x32xf32>
    %152 = math.exp %151 : vector<1x32xf32>
    %cst_52 = arith.constant 1.000000e+00 : f32
    %153 = vector.broadcast %cst_52 : f32 to vector<1x32xf32>
    %154 = arith.addf %153, %152 : vector<1x32xf32>
    %cst_53 = arith.constant 1.000000e+00 : f32
    %155 = vector.broadcast %cst_53 : f32 to vector<1x32xf32>
    %156 = arith.divf %155, %154 : vector<1x32xf32>
    %157 = vector.extract_strided_slice %148 {offsets = [0, 32], sizes = [1, 32], strides = [1, 1]} : vector<1x128xf32> to vector<1x32xf32>
    %cst_54 = arith.constant 0.000000e+00 : f32
    %158 = vector.broadcast %cst_54 : f32 to vector<1x32xf32>
    %159 = arith.subf %158, %157 : vector<1x32xf32>
    %160 = math.exp %159 : vector<1x32xf32>
    %cst_55 = arith.constant 1.000000e+00 : f32
    %161 = vector.broadcast %cst_55 : f32 to vector<1x32xf32>
    %162 = arith.addf %161, %160 : vector<1x32xf32>
    %cst_56 = arith.constant 1.000000e+00 : f32
    %163 = vector.broadcast %cst_56 : f32 to vector<1x32xf32>
    %164 = arith.divf %163, %162 : vector<1x32xf32>
    %165 = vector.extract_strided_slice %148 {offsets = [0, 64], sizes = [1, 32], strides = [1, 1]} : vector<1x128xf32> to vector<1x32xf32>
    %166 = math.tanh %165 : vector<1x32xf32>
    %167 = vector.extract_strided_slice %148 {offsets = [0, 96], sizes = [1, 32], strides = [1, 1]} : vector<1x128xf32> to vector<1x32xf32>
    %cst_57 = arith.constant 0.000000e+00 : f32
    %168 = vector.broadcast %cst_57 : f32 to vector<1x32xf32>
    %169 = arith.subf %168, %167 : vector<1x32xf32>
    %170 = math.exp %169 : vector<1x32xf32>
    %cst_58 = arith.constant 1.000000e+00 : f32
    %171 = vector.broadcast %cst_58 : f32 to vector<1x32xf32>
    %172 = arith.addf %171, %170 : vector<1x32xf32>
    %cst_59 = arith.constant 1.000000e+00 : f32
    %173 = vector.broadcast %cst_59 : f32 to vector<1x32xf32>
    %174 = arith.divf %173, %172 : vector<1x32xf32>
    %175 = arith.mulf %164, %143 : vector<1x32xf32>
    %176 = arith.mulf %156, %166 : vector<1x32xf32>
    %177 = arith.addf %175, %176 : vector<1x32xf32>
    %178 = math.tanh %177 : vector<1x32xf32>
    %179 = arith.mulf %174, %178 : vector<1x32xf32>
    %180 = vector.extract_strided_slice %7 {offsets = [5, 0], sizes = [1, 128], strides = [1, 1]} : vector<8x128xf32> to vector<1x128xf32>
    %cst_60 = arith.constant dense<0.000000e+00> : vector<1x128xf32>
    %181 = tpu.matmul %179, %3, %cst_60 {dimension_numbers = #tpu.dot_dimension_numbers<[1], [0], [0], [1], [0, 0, 1, 1], [], []>} : vector<1x32xf32>, vector<32x128xf32>, vector<1x128xf32> -> vector<1x128xf32>
    %182 = arith.addf %180, %181 : vector<1x128xf32>
    %183 = vector.extract_strided_slice %182 {offsets = [0, 0], sizes = [1, 32], strides = [1, 1]} : vector<1x128xf32> to vector<1x32xf32>
    %cst_61 = arith.constant 0.000000e+00 : f32
    %184 = vector.broadcast %cst_61 : f32 to vector<1x32xf32>
    %185 = arith.subf %184, %183 : vector<1x32xf32>
    %186 = math.exp %185 : vector<1x32xf32>
    %cst_62 = arith.constant 1.000000e+00 : f32
    %187 = vector.broadcast %cst_62 : f32 to vector<1x32xf32>
    %188 = arith.addf %187, %186 : vector<1x32xf32>
    %cst_63 = arith.constant 1.000000e+00 : f32
    %189 = vector.broadcast %cst_63 : f32 to vector<1x32xf32>
    %190 = arith.divf %189, %188 : vector<1x32xf32>
    %191 = vector.extract_strided_slice %182 {offsets = [0, 32], sizes = [1, 32], strides = [1, 1]} : vector<1x128xf32> to vector<1x32xf32>
    %cst_64 = arith.constant 0.000000e+00 : f32
    %192 = vector.broadcast %cst_64 : f32 to vector<1x32xf32>
    %193 = arith.subf %192, %191 : vector<1x32xf32>
    %194 = math.exp %193 : vector<1x32xf32>
    %cst_65 = arith.constant 1.000000e+00 : f32
    %195 = vector.broadcast %cst_65 : f32 to vector<1x32xf32>
    %196 = arith.addf %195, %194 : vector<1x32xf32>
    %cst_66 = arith.constant 1.000000e+00 : f32
    %197 = vector.broadcast %cst_66 : f32 to vector<1x32xf32>
    %198 = arith.divf %197, %196 : vector<1x32xf32>
    %199 = vector.extract_strided_slice %182 {offsets = [0, 64], sizes = [1, 32], strides = [1, 1]} : vector<1x128xf32> to vector<1x32xf32>
    %200 = math.tanh %199 : vector<1x32xf32>
    %201 = vector.extract_strided_slice %182 {offsets = [0, 96], sizes = [1, 32], strides = [1, 1]} : vector<1x128xf32> to vector<1x32xf32>
    %cst_67 = arith.constant 0.000000e+00 : f32
    %202 = vector.broadcast %cst_67 : f32 to vector<1x32xf32>
    %203 = arith.subf %202, %201 : vector<1x32xf32>
    %204 = math.exp %203 : vector<1x32xf32>
    %cst_68 = arith.constant 1.000000e+00 : f32
    %205 = vector.broadcast %cst_68 : f32 to vector<1x32xf32>
    %206 = arith.addf %205, %204 : vector<1x32xf32>
    %cst_69 = arith.constant 1.000000e+00 : f32
    %207 = vector.broadcast %cst_69 : f32 to vector<1x32xf32>
    %208 = arith.divf %207, %206 : vector<1x32xf32>
    %209 = arith.mulf %198, %177 : vector<1x32xf32>
    %210 = arith.mulf %190, %200 : vector<1x32xf32>
    %211 = arith.addf %209, %210 : vector<1x32xf32>
    %212 = math.tanh %211 : vector<1x32xf32>
    %213 = arith.mulf %208, %212 : vector<1x32xf32>
    %214 = vector.extract_strided_slice %7 {offsets = [6, 0], sizes = [1, 128], strides = [1, 1]} : vector<8x128xf32> to vector<1x128xf32>
    %cst_70 = arith.constant dense<0.000000e+00> : vector<1x128xf32>
    %215 = tpu.matmul %213, %3, %cst_70 {dimension_numbers = #tpu.dot_dimension_numbers<[1], [0], [0], [1], [0, 0, 1, 1], [], []>} : vector<1x32xf32>, vector<32x128xf32>, vector<1x128xf32> -> vector<1x128xf32>
    %216 = arith.addf %214, %215 : vector<1x128xf32>
    %217 = vector.extract_strided_slice %216 {offsets = [0, 0], sizes = [1, 32], strides = [1, 1]} : vector<1x128xf32> to vector<1x32xf32>
    %cst_71 = arith.constant 0.000000e+00 : f32
    %218 = vector.broadcast %cst_71 : f32 to vector<1x32xf32>
    %219 = arith.subf %218, %217 : vector<1x32xf32>
    %220 = math.exp %219 : vector<1x32xf32>
    %cst_72 = arith.constant 1.000000e+00 : f32
    %221 = vector.broadcast %cst_72 : f32 to vector<1x32xf32>
    %222 = arith.addf %221, %220 : vector<1x32xf32>
    %cst_73 = arith.constant 1.000000e+00 : f32
    %223 = vector.broadcast %cst_73 : f32 to vector<1x32xf32>
    %224 = arith.divf %223, %222 : vector<1x32xf32>
    %225 = vector.extract_strided_slice %216 {offsets = [0, 32], sizes = [1, 32], strides = [1, 1]} : vector<1x128xf32> to vector<1x32xf32>
    %cst_74 = arith.constant 0.000000e+00 : f32
    %226 = vector.broadcast %cst_74 : f32 to vector<1x32xf32>
    %227 = arith.subf %226, %225 : vector<1x32xf32>
    %228 = math.exp %227 : vector<1x32xf32>
    %cst_75 = arith.constant 1.000000e+00 : f32
    %229 = vector.broadcast %cst_75 : f32 to vector<1x32xf32>
    %230 = arith.addf %229, %228 : vector<1x32xf32>
    %cst_76 = arith.constant 1.000000e+00 : f32
    %231 = vector.broadcast %cst_76 : f32 to vector<1x32xf32>
    %232 = arith.divf %231, %230 : vector<1x32xf32>
    %233 = vector.extract_strided_slice %216 {offsets = [0, 64], sizes = [1, 32], strides = [1, 1]} : vector<1x128xf32> to vector<1x32xf32>
    %234 = math.tanh %233 : vector<1x32xf32>
    %235 = vector.extract_strided_slice %216 {offsets = [0, 96], sizes = [1, 32], strides = [1, 1]} : vector<1x128xf32> to vector<1x32xf32>
    %cst_77 = arith.constant 0.000000e+00 : f32
    %236 = vector.broadcast %cst_77 : f32 to vector<1x32xf32>
    %237 = arith.subf %236, %235 : vector<1x32xf32>
    %238 = math.exp %237 : vector<1x32xf32>
    %cst_78 = arith.constant 1.000000e+00 : f32
    %239 = vector.broadcast %cst_78 : f32 to vector<1x32xf32>
    %240 = arith.addf %239, %238 : vector<1x32xf32>
    %cst_79 = arith.constant 1.000000e+00 : f32
    %241 = vector.broadcast %cst_79 : f32 to vector<1x32xf32>
    %242 = arith.divf %241, %240 : vector<1x32xf32>
    %243 = arith.mulf %232, %211 : vector<1x32xf32>
    %244 = arith.mulf %224, %234 : vector<1x32xf32>
    %245 = arith.addf %243, %244 : vector<1x32xf32>
    %246 = math.tanh %245 : vector<1x32xf32>
    %247 = arith.mulf %242, %246 : vector<1x32xf32>
    %248 = vector.extract_strided_slice %7 {offsets = [7, 0], sizes = [1, 128], strides = [1, 1]} : vector<8x128xf32> to vector<1x128xf32>
    %cst_80 = arith.constant dense<0.000000e+00> : vector<1x128xf32>
    %249 = tpu.matmul %247, %3, %cst_80 {dimension_numbers = #tpu.dot_dimension_numbers<[1], [0], [0], [1], [0, 0, 1, 1], [], []>} : vector<1x32xf32>, vector<32x128xf32>, vector<1x128xf32> -> vector<1x128xf32>
    %250 = arith.addf %248, %249 : vector<1x128xf32>
    %251 = vector.extract_strided_slice %250 {offsets = [0, 0], sizes = [1, 32], strides = [1, 1]} : vector<1x128xf32> to vector<1x32xf32>
    %cst_81 = arith.constant 0.000000e+00 : f32
    %252 = vector.broadcast %cst_81 : f32 to vector<1x32xf32>
    %253 = arith.subf %252, %251 : vector<1x32xf32>
    %254 = math.exp %253 : vector<1x32xf32>
    %cst_82 = arith.constant 1.000000e+00 : f32
    %255 = vector.broadcast %cst_82 : f32 to vector<1x32xf32>
    %256 = arith.addf %255, %254 : vector<1x32xf32>
    %cst_83 = arith.constant 1.000000e+00 : f32
    %257 = vector.broadcast %cst_83 : f32 to vector<1x32xf32>
    %258 = arith.divf %257, %256 : vector<1x32xf32>
    %259 = vector.extract_strided_slice %250 {offsets = [0, 32], sizes = [1, 32], strides = [1, 1]} : vector<1x128xf32> to vector<1x32xf32>
    %cst_84 = arith.constant 0.000000e+00 : f32
    %260 = vector.broadcast %cst_84 : f32 to vector<1x32xf32>
    %261 = arith.subf %260, %259 : vector<1x32xf32>
    %262 = math.exp %261 : vector<1x32xf32>
    %cst_85 = arith.constant 1.000000e+00 : f32
    %263 = vector.broadcast %cst_85 : f32 to vector<1x32xf32>
    %264 = arith.addf %263, %262 : vector<1x32xf32>
    %cst_86 = arith.constant 1.000000e+00 : f32
    %265 = vector.broadcast %cst_86 : f32 to vector<1x32xf32>
    %266 = arith.divf %265, %264 : vector<1x32xf32>
    %267 = vector.extract_strided_slice %250 {offsets = [0, 64], sizes = [1, 32], strides = [1, 1]} : vector<1x128xf32> to vector<1x32xf32>
    %268 = math.tanh %267 : vector<1x32xf32>
    %269 = vector.extract_strided_slice %250 {offsets = [0, 96], sizes = [1, 32], strides = [1, 1]} : vector<1x128xf32> to vector<1x32xf32>
    %cst_87 = arith.constant 0.000000e+00 : f32
    %270 = vector.broadcast %cst_87 : f32 to vector<1x32xf32>
    %271 = arith.subf %270, %269 : vector<1x32xf32>
    %272 = math.exp %271 : vector<1x32xf32>
    %cst_88 = arith.constant 1.000000e+00 : f32
    %273 = vector.broadcast %cst_88 : f32 to vector<1x32xf32>
    %274 = arith.addf %273, %272 : vector<1x32xf32>
    %cst_89 = arith.constant 1.000000e+00 : f32
    %275 = vector.broadcast %cst_89 : f32 to vector<1x32xf32>
    %276 = arith.divf %275, %274 : vector<1x32xf32>
    %277 = arith.mulf %266, %245 : vector<1x32xf32>
    %278 = arith.mulf %258, %268 : vector<1x32xf32>
    %279 = arith.addf %277, %278 : vector<1x32xf32>
    %280 = math.tanh %279 : vector<1x32xf32>
    %281 = arith.mulf %276, %280 : vector<1x32xf32>
    %282 = tpu.concatenate %43, %77, %111, %145, %179, %213, %247, %281 in 0 : vector<1x32xf32>, vector<1x32xf32>, vector<1x32xf32>, vector<1x32xf32>, vector<1x32xf32>, vector<1x32xf32>, vector<1x32xf32>, vector<1x32xf32> -> vector<8x32xf32>
    %c0_90 = arith.constant 0 : index
    %c0_91 = arith.constant 0 : index
    %283 = vector.load %arg5[%c0_90, %c0_91] : memref<32x128xf32, #tpu.memory_space<vmem>>, vector<32x128xf32>
    %c0_92 = arith.constant 0 : index
    %c0_93 = arith.constant 0 : index
    %284 = vector.load %arg6[%c0_92, %c0_93] : memref<32x128xf32, #tpu.memory_space<vmem>>, vector<32x128xf32>
    %c0_94 = arith.constant 0 : index
    %c0_95 = arith.constant 0 : index
    %285 = vector.load %arg7[%c0_94, %c0_95] : memref<1x128xf32, #tpu.memory_space<vmem>>, vector<1x128xf32>
    %cst_96 = arith.constant dense<0.000000e+00> : vector<8x128xf32>
    %286 = tpu.matmul %282, %283, %cst_96 {dimension_numbers = #tpu.dot_dimension_numbers<[1], [0], [0], [1], [0, 0, 1, 1], [], []>} : vector<8x32xf32>, vector<32x128xf32>, vector<8x128xf32> -> vector<8x128xf32>
    %287 = vector.broadcast %285 : vector<1x128xf32> to vector<8x128xf32>
    %288 = arith.addf %286, %287 : vector<8x128xf32>
    %cst_97 = arith.constant 0.000000e+00 : f32
    %289 = vector.broadcast %cst_97 : f32 to vector<1x32xf32>
    %cst_98 = arith.constant 0.000000e+00 : f32
    %290 = vector.broadcast %cst_98 : f32 to vector<1x32xf32>
    %291 = vector.extract_strided_slice %288 {offsets = [0, 0], sizes = [1, 128], strides = [1, 1]} : vector<8x128xf32> to vector<1x128xf32>
    %cst_99 = arith.constant dense<0.000000e+00> : vector<1x128xf32>
    %292 = tpu.matmul %289, %284, %cst_99 {dimension_numbers = #tpu.dot_dimension_numbers<[1], [0], [0], [1], [0, 0, 1, 1], [], []>} : vector<1x32xf32>, vector<32x128xf32>, vector<1x128xf32> -> vector<1x128xf32>
    %293 = arith.addf %291, %292 : vector<1x128xf32>
    %294 = vector.extract_strided_slice %293 {offsets = [0, 0], sizes = [1, 32], strides = [1, 1]} : vector<1x128xf32> to vector<1x32xf32>
    %cst_100 = arith.constant 0.000000e+00 : f32
    %295 = vector.broadcast %cst_100 : f32 to vector<1x32xf32>
    %296 = arith.subf %295, %294 : vector<1x32xf32>
    %297 = math.exp %296 : vector<1x32xf32>
    %cst_101 = arith.constant 1.000000e+00 : f32
    %298 = vector.broadcast %cst_101 : f32 to vector<1x32xf32>
    %299 = arith.addf %298, %297 : vector<1x32xf32>
    %cst_102 = arith.constant 1.000000e+00 : f32
    %300 = vector.broadcast %cst_102 : f32 to vector<1x32xf32>
    %301 = arith.divf %300, %299 : vector<1x32xf32>
    %302 = vector.extract_strided_slice %293 {offsets = [0, 32], sizes = [1, 32], strides = [1, 1]} : vector<1x128xf32> to vector<1x32xf32>
    %cst_103 = arith.constant 0.000000e+00 : f32
    %303 = vector.broadcast %cst_103 : f32 to vector<1x32xf32>
    %304 = arith.subf %303, %302 : vector<1x32xf32>
    %305 = math.exp %304 : vector<1x32xf32>
    %cst_104 = arith.constant 1.000000e+00 : f32
    %306 = vector.broadcast %cst_104 : f32 to vector<1x32xf32>
    %307 = arith.addf %306, %305 : vector<1x32xf32>
    %cst_105 = arith.constant 1.000000e+00 : f32
    %308 = vector.broadcast %cst_105 : f32 to vector<1x32xf32>
    %309 = arith.divf %308, %307 : vector<1x32xf32>
    %310 = vector.extract_strided_slice %293 {offsets = [0, 64], sizes = [1, 32], strides = [1, 1]} : vector<1x128xf32> to vector<1x32xf32>
    %311 = math.tanh %310 : vector<1x32xf32>
    %312 = vector.extract_strided_slice %293 {offsets = [0, 96], sizes = [1, 32], strides = [1, 1]} : vector<1x128xf32> to vector<1x32xf32>
    %cst_106 = arith.constant 0.000000e+00 : f32
    %313 = vector.broadcast %cst_106 : f32 to vector<1x32xf32>
    %314 = arith.subf %313, %312 : vector<1x32xf32>
    %315 = math.exp %314 : vector<1x32xf32>
    %cst_107 = arith.constant 1.000000e+00 : f32
    %316 = vector.broadcast %cst_107 : f32 to vector<1x32xf32>
    %317 = arith.addf %316, %315 : vector<1x32xf32>
    %cst_108 = arith.constant 1.000000e+00 : f32
    %318 = vector.broadcast %cst_108 : f32 to vector<1x32xf32>
    %319 = arith.divf %318, %317 : vector<1x32xf32>
    %320 = arith.mulf %309, %290 : vector<1x32xf32>
    %321 = arith.mulf %301, %311 : vector<1x32xf32>
    %322 = arith.addf %320, %321 : vector<1x32xf32>
    %323 = math.tanh %322 : vector<1x32xf32>
    %324 = arith.mulf %319, %323 : vector<1x32xf32>
    %325 = vector.extract_strided_slice %288 {offsets = [1, 0], sizes = [1, 128], strides = [1, 1]} : vector<8x128xf32> to vector<1x128xf32>
    %cst_109 = arith.constant dense<0.000000e+00> : vector<1x128xf32>
    %326 = tpu.matmul %324, %284, %cst_109 {dimension_numbers = #tpu.dot_dimension_numbers<[1], [0], [0], [1], [0, 0, 1, 1], [], []>} : vector<1x32xf32>, vector<32x128xf32>, vector<1x128xf32> -> vector<1x128xf32>
    %327 = arith.addf %325, %326 : vector<1x128xf32>
    %328 = vector.extract_strided_slice %327 {offsets = [0, 0], sizes = [1, 32], strides = [1, 1]} : vector<1x128xf32> to vector<1x32xf32>
    %cst_110 = arith.constant 0.000000e+00 : f32
    %329 = vector.broadcast %cst_110 : f32 to vector<1x32xf32>
    %330 = arith.subf %329, %328 : vector<1x32xf32>
    %331 = math.exp %330 : vector<1x32xf32>
    %cst_111 = arith.constant 1.000000e+00 : f32
    %332 = vector.broadcast %cst_111 : f32 to vector<1x32xf32>
    %333 = arith.addf %332, %331 : vector<1x32xf32>
    %cst_112 = arith.constant 1.000000e+00 : f32
    %334 = vector.broadcast %cst_112 : f32 to vector<1x32xf32>
    %335 = arith.divf %334, %333 : vector<1x32xf32>
    %336 = vector.extract_strided_slice %327 {offsets = [0, 32], sizes = [1, 32], strides = [1, 1]} : vector<1x128xf32> to vector<1x32xf32>
    %cst_113 = arith.constant 0.000000e+00 : f32
    %337 = vector.broadcast %cst_113 : f32 to vector<1x32xf32>
    %338 = arith.subf %337, %336 : vector<1x32xf32>
    %339 = math.exp %338 : vector<1x32xf32>
    %cst_114 = arith.constant 1.000000e+00 : f32
    %340 = vector.broadcast %cst_114 : f32 to vector<1x32xf32>
    %341 = arith.addf %340, %339 : vector<1x32xf32>
    %cst_115 = arith.constant 1.000000e+00 : f32
    %342 = vector.broadcast %cst_115 : f32 to vector<1x32xf32>
    %343 = arith.divf %342, %341 : vector<1x32xf32>
    %344 = vector.extract_strided_slice %327 {offsets = [0, 64], sizes = [1, 32], strides = [1, 1]} : vector<1x128xf32> to vector<1x32xf32>
    %345 = math.tanh %344 : vector<1x32xf32>
    %346 = vector.extract_strided_slice %327 {offsets = [0, 96], sizes = [1, 32], strides = [1, 1]} : vector<1x128xf32> to vector<1x32xf32>
    %cst_116 = arith.constant 0.000000e+00 : f32
    %347 = vector.broadcast %cst_116 : f32 to vector<1x32xf32>
    %348 = arith.subf %347, %346 : vector<1x32xf32>
    %349 = math.exp %348 : vector<1x32xf32>
    %cst_117 = arith.constant 1.000000e+00 : f32
    %350 = vector.broadcast %cst_117 : f32 to vector<1x32xf32>
    %351 = arith.addf %350, %349 : vector<1x32xf32>
    %cst_118 = arith.constant 1.000000e+00 : f32
    %352 = vector.broadcast %cst_118 : f32 to vector<1x32xf32>
    %353 = arith.divf %352, %351 : vector<1x32xf32>
    %354 = arith.mulf %343, %322 : vector<1x32xf32>
    %355 = arith.mulf %335, %345 : vector<1x32xf32>
    %356 = arith.addf %354, %355 : vector<1x32xf32>
    %357 = math.tanh %356 : vector<1x32xf32>
    %358 = arith.mulf %353, %357 : vector<1x32xf32>
    %359 = vector.extract_strided_slice %288 {offsets = [2, 0], sizes = [1, 128], strides = [1, 1]} : vector<8x128xf32> to vector<1x128xf32>
    %cst_119 = arith.constant dense<0.000000e+00> : vector<1x128xf32>
    %360 = tpu.matmul %358, %284, %cst_119 {dimension_numbers = #tpu.dot_dimension_numbers<[1], [0], [0], [1], [0, 0, 1, 1], [], []>} : vector<1x32xf32>, vector<32x128xf32>, vector<1x128xf32> -> vector<1x128xf32>
    %361 = arith.addf %359, %360 : vector<1x128xf32>
    %362 = vector.extract_strided_slice %361 {offsets = [0, 0], sizes = [1, 32], strides = [1, 1]} : vector<1x128xf32> to vector<1x32xf32>
    %cst_120 = arith.constant 0.000000e+00 : f32
    %363 = vector.broadcast %cst_120 : f32 to vector<1x32xf32>
    %364 = arith.subf %363, %362 : vector<1x32xf32>
    %365 = math.exp %364 : vector<1x32xf32>
    %cst_121 = arith.constant 1.000000e+00 : f32
    %366 = vector.broadcast %cst_121 : f32 to vector<1x32xf32>
    %367 = arith.addf %366, %365 : vector<1x32xf32>
    %cst_122 = arith.constant 1.000000e+00 : f32
    %368 = vector.broadcast %cst_122 : f32 to vector<1x32xf32>
    %369 = arith.divf %368, %367 : vector<1x32xf32>
    %370 = vector.extract_strided_slice %361 {offsets = [0, 32], sizes = [1, 32], strides = [1, 1]} : vector<1x128xf32> to vector<1x32xf32>
    %cst_123 = arith.constant 0.000000e+00 : f32
    %371 = vector.broadcast %cst_123 : f32 to vector<1x32xf32>
    %372 = arith.subf %371, %370 : vector<1x32xf32>
    %373 = math.exp %372 : vector<1x32xf32>
    %cst_124 = arith.constant 1.000000e+00 : f32
    %374 = vector.broadcast %cst_124 : f32 to vector<1x32xf32>
    %375 = arith.addf %374, %373 : vector<1x32xf32>
    %cst_125 = arith.constant 1.000000e+00 : f32
    %376 = vector.broadcast %cst_125 : f32 to vector<1x32xf32>
    %377 = arith.divf %376, %375 : vector<1x32xf32>
    %378 = vector.extract_strided_slice %361 {offsets = [0, 64], sizes = [1, 32], strides = [1, 1]} : vector<1x128xf32> to vector<1x32xf32>
    %379 = math.tanh %378 : vector<1x32xf32>
    %380 = vector.extract_strided_slice %361 {offsets = [0, 96], sizes = [1, 32], strides = [1, 1]} : vector<1x128xf32> to vector<1x32xf32>
    %cst_126 = arith.constant 0.000000e+00 : f32
    %381 = vector.broadcast %cst_126 : f32 to vector<1x32xf32>
    %382 = arith.subf %381, %380 : vector<1x32xf32>
    %383 = math.exp %382 : vector<1x32xf32>
    %cst_127 = arith.constant 1.000000e+00 : f32
    %384 = vector.broadcast %cst_127 : f32 to vector<1x32xf32>
    %385 = arith.addf %384, %383 : vector<1x32xf32>
    %cst_128 = arith.constant 1.000000e+00 : f32
    %386 = vector.broadcast %cst_128 : f32 to vector<1x32xf32>
    %387 = arith.divf %386, %385 : vector<1x32xf32>
    %388 = arith.mulf %377, %356 : vector<1x32xf32>
    %389 = arith.mulf %369, %379 : vector<1x32xf32>
    %390 = arith.addf %388, %389 : vector<1x32xf32>
    %391 = math.tanh %390 : vector<1x32xf32>
    %392 = arith.mulf %387, %391 : vector<1x32xf32>
    %393 = vector.extract_strided_slice %288 {offsets = [3, 0], sizes = [1, 128], strides = [1, 1]} : vector<8x128xf32> to vector<1x128xf32>
    %cst_129 = arith.constant dense<0.000000e+00> : vector<1x128xf32>
    %394 = tpu.matmul %392, %284, %cst_129 {dimension_numbers = #tpu.dot_dimension_numbers<[1], [0], [0], [1], [0, 0, 1, 1], [], []>} : vector<1x32xf32>, vector<32x128xf32>, vector<1x128xf32> -> vector<1x128xf32>
    %395 = arith.addf %393, %394 : vector<1x128xf32>
    %396 = vector.extract_strided_slice %395 {offsets = [0, 0], sizes = [1, 32], strides = [1, 1]} : vector<1x128xf32> to vector<1x32xf32>
    %cst_130 = arith.constant 0.000000e+00 : f32
    %397 = vector.broadcast %cst_130 : f32 to vector<1x32xf32>
    %398 = arith.subf %397, %396 : vector<1x32xf32>
    %399 = math.exp %398 : vector<1x32xf32>
    %cst_131 = arith.constant 1.000000e+00 : f32
    %400 = vector.broadcast %cst_131 : f32 to vector<1x32xf32>
    %401 = arith.addf %400, %399 : vector<1x32xf32>
    %cst_132 = arith.constant 1.000000e+00 : f32
    %402 = vector.broadcast %cst_132 : f32 to vector<1x32xf32>
    %403 = arith.divf %402, %401 : vector<1x32xf32>
    %404 = vector.extract_strided_slice %395 {offsets = [0, 32], sizes = [1, 32], strides = [1, 1]} : vector<1x128xf32> to vector<1x32xf32>
    %cst_133 = arith.constant 0.000000e+00 : f32
    %405 = vector.broadcast %cst_133 : f32 to vector<1x32xf32>
    %406 = arith.subf %405, %404 : vector<1x32xf32>
    %407 = math.exp %406 : vector<1x32xf32>
    %cst_134 = arith.constant 1.000000e+00 : f32
    %408 = vector.broadcast %cst_134 : f32 to vector<1x32xf32>
    %409 = arith.addf %408, %407 : vector<1x32xf32>
    %cst_135 = arith.constant 1.000000e+00 : f32
    %410 = vector.broadcast %cst_135 : f32 to vector<1x32xf32>
    %411 = arith.divf %410, %409 : vector<1x32xf32>
    %412 = vector.extract_strided_slice %395 {offsets = [0, 64], sizes = [1, 32], strides = [1, 1]} : vector<1x128xf32> to vector<1x32xf32>
    %413 = math.tanh %412 : vector<1x32xf32>
    %414 = vector.extract_strided_slice %395 {offsets = [0, 96], sizes = [1, 32], strides = [1, 1]} : vector<1x128xf32> to vector<1x32xf32>
    %cst_136 = arith.constant 0.000000e+00 : f32
    %415 = vector.broadcast %cst_136 : f32 to vector<1x32xf32>
    %416 = arith.subf %415, %414 : vector<1x32xf32>
    %417 = math.exp %416 : vector<1x32xf32>
    %cst_137 = arith.constant 1.000000e+00 : f32
    %418 = vector.broadcast %cst_137 : f32 to vector<1x32xf32>
    %419 = arith.addf %418, %417 : vector<1x32xf32>
    %cst_138 = arith.constant 1.000000e+00 : f32
    %420 = vector.broadcast %cst_138 : f32 to vector<1x32xf32>
    %421 = arith.divf %420, %419 : vector<1x32xf32>
    %422 = arith.mulf %411, %390 : vector<1x32xf32>
    %423 = arith.mulf %403, %413 : vector<1x32xf32>
    %424 = arith.addf %422, %423 : vector<1x32xf32>
    %425 = math.tanh %424 : vector<1x32xf32>
    %426 = arith.mulf %421, %425 : vector<1x32xf32>
    %427 = vector.extract_strided_slice %288 {offsets = [4, 0], sizes = [1, 128], strides = [1, 1]} : vector<8x128xf32> to vector<1x128xf32>
    %cst_139 = arith.constant dense<0.000000e+00> : vector<1x128xf32>
    %428 = tpu.matmul %426, %284, %cst_139 {dimension_numbers = #tpu.dot_dimension_numbers<[1], [0], [0], [1], [0, 0, 1, 1], [], []>} : vector<1x32xf32>, vector<32x128xf32>, vector<1x128xf32> -> vector<1x128xf32>
    %429 = arith.addf %427, %428 : vector<1x128xf32>
    %430 = vector.extract_strided_slice %429 {offsets = [0, 0], sizes = [1, 32], strides = [1, 1]} : vector<1x128xf32> to vector<1x32xf32>
    %cst_140 = arith.constant 0.000000e+00 : f32
    %431 = vector.broadcast %cst_140 : f32 to vector<1x32xf32>
    %432 = arith.subf %431, %430 : vector<1x32xf32>
    %433 = math.exp %432 : vector<1x32xf32>
    %cst_141 = arith.constant 1.000000e+00 : f32
    %434 = vector.broadcast %cst_141 : f32 to vector<1x32xf32>
    %435 = arith.addf %434, %433 : vector<1x32xf32>
    %cst_142 = arith.constant 1.000000e+00 : f32
    %436 = vector.broadcast %cst_142 : f32 to vector<1x32xf32>
    %437 = arith.divf %436, %435 : vector<1x32xf32>
    %438 = vector.extract_strided_slice %429 {offsets = [0, 32], sizes = [1, 32], strides = [1, 1]} : vector<1x128xf32> to vector<1x32xf32>
    %cst_143 = arith.constant 0.000000e+00 : f32
    %439 = vector.broadcast %cst_143 : f32 to vector<1x32xf32>
    %440 = arith.subf %439, %438 : vector<1x32xf32>
    %441 = math.exp %440 : vector<1x32xf32>
    %cst_144 = arith.constant 1.000000e+00 : f32
    %442 = vector.broadcast %cst_144 : f32 to vector<1x32xf32>
    %443 = arith.addf %442, %441 : vector<1x32xf32>
    %cst_145 = arith.constant 1.000000e+00 : f32
    %444 = vector.broadcast %cst_145 : f32 to vector<1x32xf32>
    %445 = arith.divf %444, %443 : vector<1x32xf32>
    %446 = vector.extract_strided_slice %429 {offsets = [0, 64], sizes = [1, 32], strides = [1, 1]} : vector<1x128xf32> to vector<1x32xf32>
    %447 = math.tanh %446 : vector<1x32xf32>
    %448 = vector.extract_strided_slice %429 {offsets = [0, 96], sizes = [1, 32], strides = [1, 1]} : vector<1x128xf32> to vector<1x32xf32>
    %cst_146 = arith.constant 0.000000e+00 : f32
    %449 = vector.broadcast %cst_146 : f32 to vector<1x32xf32>
    %450 = arith.subf %449, %448 : vector<1x32xf32>
    %451 = math.exp %450 : vector<1x32xf32>
    %cst_147 = arith.constant 1.000000e+00 : f32
    %452 = vector.broadcast %cst_147 : f32 to vector<1x32xf32>
    %453 = arith.addf %452, %451 : vector<1x32xf32>
    %cst_148 = arith.constant 1.000000e+00 : f32
    %454 = vector.broadcast %cst_148 : f32 to vector<1x32xf32>
    %455 = arith.divf %454, %453 : vector<1x32xf32>
    %456 = arith.mulf %445, %424 : vector<1x32xf32>
    %457 = arith.mulf %437, %447 : vector<1x32xf32>
    %458 = arith.addf %456, %457 : vector<1x32xf32>
    %459 = math.tanh %458 : vector<1x32xf32>
    %460 = arith.mulf %455, %459 : vector<1x32xf32>
    %461 = vector.extract_strided_slice %288 {offsets = [5, 0], sizes = [1, 128], strides = [1, 1]} : vector<8x128xf32> to vector<1x128xf32>
    %cst_149 = arith.constant dense<0.000000e+00> : vector<1x128xf32>
    %462 = tpu.matmul %460, %284, %cst_149 {dimension_numbers = #tpu.dot_dimension_numbers<[1], [0], [0], [1], [0, 0, 1, 1], [], []>} : vector<1x32xf32>, vector<32x128xf32>, vector<1x128xf32> -> vector<1x128xf32>
    %463 = arith.addf %461, %462 : vector<1x128xf32>
    %464 = vector.extract_strided_slice %463 {offsets = [0, 0], sizes = [1, 32], strides = [1, 1]} : vector<1x128xf32> to vector<1x32xf32>
    %cst_150 = arith.constant 0.000000e+00 : f32
    %465 = vector.broadcast %cst_150 : f32 to vector<1x32xf32>
    %466 = arith.subf %465, %464 : vector<1x32xf32>
    %467 = math.exp %466 : vector<1x32xf32>
    %cst_151 = arith.constant 1.000000e+00 : f32
    %468 = vector.broadcast %cst_151 : f32 to vector<1x32xf32>
    %469 = arith.addf %468, %467 : vector<1x32xf32>
    %cst_152 = arith.constant 1.000000e+00 : f32
    %470 = vector.broadcast %cst_152 : f32 to vector<1x32xf32>
    %471 = arith.divf %470, %469 : vector<1x32xf32>
    %472 = vector.extract_strided_slice %463 {offsets = [0, 32], sizes = [1, 32], strides = [1, 1]} : vector<1x128xf32> to vector<1x32xf32>
    %cst_153 = arith.constant 0.000000e+00 : f32
    %473 = vector.broadcast %cst_153 : f32 to vector<1x32xf32>
    %474 = arith.subf %473, %472 : vector<1x32xf32>
    %475 = math.exp %474 : vector<1x32xf32>
    %cst_154 = arith.constant 1.000000e+00 : f32
    %476 = vector.broadcast %cst_154 : f32 to vector<1x32xf32>
    %477 = arith.addf %476, %475 : vector<1x32xf32>
    %cst_155 = arith.constant 1.000000e+00 : f32
    %478 = vector.broadcast %cst_155 : f32 to vector<1x32xf32>
    %479 = arith.divf %478, %477 : vector<1x32xf32>
    %480 = vector.extract_strided_slice %463 {offsets = [0, 64], sizes = [1, 32], strides = [1, 1]} : vector<1x128xf32> to vector<1x32xf32>
    %481 = math.tanh %480 : vector<1x32xf32>
    %482 = vector.extract_strided_slice %463 {offsets = [0, 96], sizes = [1, 32], strides = [1, 1]} : vector<1x128xf32> to vector<1x32xf32>
    %cst_156 = arith.constant 0.000000e+00 : f32
    %483 = vector.broadcast %cst_156 : f32 to vector<1x32xf32>
    %484 = arith.subf %483, %482 : vector<1x32xf32>
    %485 = math.exp %484 : vector<1x32xf32>
    %cst_157 = arith.constant 1.000000e+00 : f32
    %486 = vector.broadcast %cst_157 : f32 to vector<1x32xf32>
    %487 = arith.addf %486, %485 : vector<1x32xf32>
    %cst_158 = arith.constant 1.000000e+00 : f32
    %488 = vector.broadcast %cst_158 : f32 to vector<1x32xf32>
    %489 = arith.divf %488, %487 : vector<1x32xf32>
    %490 = arith.mulf %479, %458 : vector<1x32xf32>
    %491 = arith.mulf %471, %481 : vector<1x32xf32>
    %492 = arith.addf %490, %491 : vector<1x32xf32>
    %493 = math.tanh %492 : vector<1x32xf32>
    %494 = arith.mulf %489, %493 : vector<1x32xf32>
    %495 = vector.extract_strided_slice %288 {offsets = [6, 0], sizes = [1, 128], strides = [1, 1]} : vector<8x128xf32> to vector<1x128xf32>
    %cst_159 = arith.constant dense<0.000000e+00> : vector<1x128xf32>
    %496 = tpu.matmul %494, %284, %cst_159 {dimension_numbers = #tpu.dot_dimension_numbers<[1], [0], [0], [1], [0, 0, 1, 1], [], []>} : vector<1x32xf32>, vector<32x128xf32>, vector<1x128xf32> -> vector<1x128xf32>
    %497 = arith.addf %495, %496 : vector<1x128xf32>
    %498 = vector.extract_strided_slice %497 {offsets = [0, 0], sizes = [1, 32], strides = [1, 1]} : vector<1x128xf32> to vector<1x32xf32>
    %cst_160 = arith.constant 0.000000e+00 : f32
    %499 = vector.broadcast %cst_160 : f32 to vector<1x32xf32>
    %500 = arith.subf %499, %498 : vector<1x32xf32>
    %501 = math.exp %500 : vector<1x32xf32>
    %cst_161 = arith.constant 1.000000e+00 : f32
    %502 = vector.broadcast %cst_161 : f32 to vector<1x32xf32>
    %503 = arith.addf %502, %501 : vector<1x32xf32>
    %cst_162 = arith.constant 1.000000e+00 : f32
    %504 = vector.broadcast %cst_162 : f32 to vector<1x32xf32>
    %505 = arith.divf %504, %503 : vector<1x32xf32>
    %506 = vector.extract_strided_slice %497 {offsets = [0, 32], sizes = [1, 32], strides = [1, 1]} : vector<1x128xf32> to vector<1x32xf32>
    %cst_163 = arith.constant 0.000000e+00 : f32
    %507 = vector.broadcast %cst_163 : f32 to vector<1x32xf32>
    %508 = arith.subf %507, %506 : vector<1x32xf32>
    %509 = math.exp %508 : vector<1x32xf32>
    %cst_164 = arith.constant 1.000000e+00 : f32
    %510 = vector.broadcast %cst_164 : f32 to vector<1x32xf32>
    %511 = arith.addf %510, %509 : vector<1x32xf32>
    %cst_165 = arith.constant 1.000000e+00 : f32
    %512 = vector.broadcast %cst_165 : f32 to vector<1x32xf32>
    %513 = arith.divf %512, %511 : vector<1x32xf32>
    %514 = vector.extract_strided_slice %497 {offsets = [0, 64], sizes = [1, 32], strides = [1, 1]} : vector<1x128xf32> to vector<1x32xf32>
    %515 = math.tanh %514 : vector<1x32xf32>
    %516 = vector.extract_strided_slice %497 {offsets = [0, 96], sizes = [1, 32], strides = [1, 1]} : vector<1x128xf32> to vector<1x32xf32>
    %cst_166 = arith.constant 0.000000e+00 : f32
    %517 = vector.broadcast %cst_166 : f32 to vector<1x32xf32>
    %518 = arith.subf %517, %516 : vector<1x32xf32>
    %519 = math.exp %518 : vector<1x32xf32>
    %cst_167 = arith.constant 1.000000e+00 : f32
    %520 = vector.broadcast %cst_167 : f32 to vector<1x32xf32>
    %521 = arith.addf %520, %519 : vector<1x32xf32>
    %cst_168 = arith.constant 1.000000e+00 : f32
    %522 = vector.broadcast %cst_168 : f32 to vector<1x32xf32>
    %523 = arith.divf %522, %521 : vector<1x32xf32>
    %524 = arith.mulf %513, %492 : vector<1x32xf32>
    %525 = arith.mulf %505, %515 : vector<1x32xf32>
    %526 = arith.addf %524, %525 : vector<1x32xf32>
    %527 = math.tanh %526 : vector<1x32xf32>
    %528 = arith.mulf %523, %527 : vector<1x32xf32>
    %529 = vector.extract_strided_slice %288 {offsets = [7, 0], sizes = [1, 128], strides = [1, 1]} : vector<8x128xf32> to vector<1x128xf32>
    %cst_169 = arith.constant dense<0.000000e+00> : vector<1x128xf32>
    %530 = tpu.matmul %528, %284, %cst_169 {dimension_numbers = #tpu.dot_dimension_numbers<[1], [0], [0], [1], [0, 0, 1, 1], [], []>} : vector<1x32xf32>, vector<32x128xf32>, vector<1x128xf32> -> vector<1x128xf32>
    %531 = arith.addf %529, %530 : vector<1x128xf32>
    %532 = vector.extract_strided_slice %531 {offsets = [0, 0], sizes = [1, 32], strides = [1, 1]} : vector<1x128xf32> to vector<1x32xf32>
    %cst_170 = arith.constant 0.000000e+00 : f32
    %533 = vector.broadcast %cst_170 : f32 to vector<1x32xf32>
    %534 = arith.subf %533, %532 : vector<1x32xf32>
    %535 = math.exp %534 : vector<1x32xf32>
    %cst_171 = arith.constant 1.000000e+00 : f32
    %536 = vector.broadcast %cst_171 : f32 to vector<1x32xf32>
    %537 = arith.addf %536, %535 : vector<1x32xf32>
    %cst_172 = arith.constant 1.000000e+00 : f32
    %538 = vector.broadcast %cst_172 : f32 to vector<1x32xf32>
    %539 = arith.divf %538, %537 : vector<1x32xf32>
    %540 = vector.extract_strided_slice %531 {offsets = [0, 32], sizes = [1, 32], strides = [1, 1]} : vector<1x128xf32> to vector<1x32xf32>
    %cst_173 = arith.constant 0.000000e+00 : f32
    %541 = vector.broadcast %cst_173 : f32 to vector<1x32xf32>
    %542 = arith.subf %541, %540 : vector<1x32xf32>
    %543 = math.exp %542 : vector<1x32xf32>
    %cst_174 = arith.constant 1.000000e+00 : f32
    %544 = vector.broadcast %cst_174 : f32 to vector<1x32xf32>
    %545 = arith.addf %544, %543 : vector<1x32xf32>
    %cst_175 = arith.constant 1.000000e+00 : f32
    %546 = vector.broadcast %cst_175 : f32 to vector<1x32xf32>
    %547 = arith.divf %546, %545 : vector<1x32xf32>
    %548 = vector.extract_strided_slice %531 {offsets = [0, 64], sizes = [1, 32], strides = [1, 1]} : vector<1x128xf32> to vector<1x32xf32>
    %549 = math.tanh %548 : vector<1x32xf32>
    %550 = vector.extract_strided_slice %531 {offsets = [0, 96], sizes = [1, 32], strides = [1, 1]} : vector<1x128xf32> to vector<1x32xf32>
    %cst_176 = arith.constant 0.000000e+00 : f32
    %551 = vector.broadcast %cst_176 : f32 to vector<1x32xf32>
    %552 = arith.subf %551, %550 : vector<1x32xf32>
    %553 = math.exp %552 : vector<1x32xf32>
    %cst_177 = arith.constant 1.000000e+00 : f32
    %554 = vector.broadcast %cst_177 : f32 to vector<1x32xf32>
    %555 = arith.addf %554, %553 : vector<1x32xf32>
    %cst_178 = arith.constant 1.000000e+00 : f32
    %556 = vector.broadcast %cst_178 : f32 to vector<1x32xf32>
    %557 = arith.divf %556, %555 : vector<1x32xf32>
    %558 = arith.mulf %547, %526 : vector<1x32xf32>
    %559 = arith.mulf %539, %549 : vector<1x32xf32>
    %560 = arith.addf %558, %559 : vector<1x32xf32>
    %561 = math.tanh %560 : vector<1x32xf32>
    %562 = arith.mulf %557, %561 : vector<1x32xf32>
    %c0_179 = arith.constant 0 : index
    %c0_180 = arith.constant 0 : index
    %563 = vector.load %arg8[%c0_179, %c0_180] : memref<32x128xf32, #tpu.memory_space<vmem>>, vector<32x128xf32>
    %cst_181 = arith.constant dense<0.000000e+00> : vector<1x128xf32>
    %564 = tpu.matmul %562, %563, %cst_181 {dimension_numbers = #tpu.dot_dimension_numbers<[1], [0], [0], [1], [0, 0, 1, 1], [], []>} : vector<1x32xf32>, vector<32x128xf32>, vector<1x128xf32> -> vector<1x128xf32>
    %c0_182 = arith.constant 0 : index
    %c0_183 = arith.constant 0 : index
    %565 = vector.load %arg9[%c0_182, %c0_183] : memref<1x128xf32, #tpu.memory_space<vmem>>, vector<1x128xf32>
    %566 = arith.addf %564, %565 : vector<1x128xf32>
    %567 = tpu.iota {dimensions = array<i32: 1>} : vector<1x128xi32>
    %c6_i32 = arith.constant 6 : i32
    %568 = vector.broadcast %c6_i32 : i32 to vector<1x128xi32>
    %569 = arith.cmpi slt, %567, %568 : vector<1x128xi32>
    %cst_184 = arith.constant -1.000000e+30 : f32
    %570 = vector.broadcast %cst_184 : f32 to vector<1x128xf32>
    %571 = arith.select %569, %566, %570 : vector<1x128xi1>, vector<1x128xf32>
    %cst_185 = arith.constant dense<0xFF800000> : vector<1xf32>
    %572 = vector.multi_reduction <maximumf>, %571, %cst_185 [1] : vector<1x128xf32> to vector<1xf32>
    %573 = vector.shape_cast %572 : vector<1xf32> to vector<1x1xf32>
    %574 = vector.broadcast %573 : vector<1x1xf32> to vector<1x128xf32>
    %575 = arith.subf %571, %574 : vector<1x128xf32>
    %576 = math.exp %575 : vector<1x128xf32>
    %cst_186 = arith.constant dense<0.000000e+00> : vector<1xf32>
    %577 = vector.multi_reduction <add>, %576, %cst_186 [1] : vector<1x128xf32> to vector<1xf32>
    %578 = vector.shape_cast %577 : vector<1xf32> to vector<1x1xf32>
    %579 = math.log %578 : vector<1x1xf32>
    %580 = arith.addf %579, %573 : vector<1x1xf32>
    %581 = vector.broadcast %580 : vector<1x1xf32> to vector<1x128xf32>
    %582 = arith.subf %571, %581 : vector<1x128xf32>
    %583 = vector.extract_strided_slice %582 {offsets = [0, 0], sizes = [1, 6], strides = [1, 1]} : vector<1x128xf32> to vector<1x6xf32>
    %c0_187 = arith.constant 0 : index
    %c0_188 = arith.constant 0 : index
    %c0_189 = arith.constant 0 : index
    %584 = vector.load %arg10[%c0_187, %c0_188, %c0_189] : memref<1x1x6xf32, #tpu.memory_space<vmem>>, vector<1x1x6xf32>
    %585 = vector.shape_cast %584 : vector<1x1x6xf32> to vector<1x6xf32>
    %586 = vector.shape_cast %583 : vector<1x6xf32> to vector<1x1x6xf32>
    tpu.vector_store %arg10[%c0_187, %c0_188, %c0_189], %586 {strides = array<i32>} : memref<1x1x6xf32, #tpu.memory_space<vmem>>, vector<1x1x6xf32>,
    return
  }
  func.func @transform_0(%arg0: i32) -> (i32, i32, i32) {
    %c0_i32 = arith.constant 0 : i32
    %c0_i32_0 = arith.constant 0 : i32
    %c0_i32_1 = arith.constant 0 : i32
    return %arg0, %c0_i32, %c0_i32_0 : i32, i32, i32
  }
  func.func @transform_1(%arg0: i32) -> (i32, i32) {
    %c0_i32 = arith.constant 0 : i32
    %c0_i32_0 = arith.constant 0 : i32
    %c0_i32_1 = arith.constant 0 : i32
    return %c0_i32, %c0_i32_0 : i32, i32
  }
  func.func @transform_2(%arg0: i32) -> (i32, i32) {
    %c0_i32 = arith.constant 0 : i32
    %c0_i32_0 = arith.constant 0 : i32
    %c0_i32_1 = arith.constant 0 : i32
    return %c0_i32, %c0_i32_0 : i32, i32
  }
  func.func @transform_3(%arg0: i32) -> (i32, i32) {
    %c0_i32 = arith.constant 0 : i32
    %c0_i32_0 = arith.constant 0 : i32
    %c0_i32_1 = arith.constant 0 : i32
    return %c0_i32, %c0_i32_0 : i32, i32
  }
  func.func @transform_4(%arg0: i32) -> (i32, i32) {
    %c0_i32 = arith.constant 0 : i32
    %c0_i32_0 = arith.constant 0 : i32
    %c0_i32_1 = arith.constant 0 : i32
    return %c0_i32, %c0_i32_0 : i32, i32
  }
  func.func @transform_5(%arg0: i32) -> (i32, i32) {
    %c0_i32 = arith.constant 0 : i32
    %c0_i32_0 = arith.constant 0 : i32
    %c0_i32_1 = arith.constant 0 : i32
    return %c0_i32, %c0_i32_0 : i32, i32
  }
  func.func @transform_6(%arg0: i32) -> (i32, i32) {
    %c0_i32 = arith.constant 0 : i32
    %c0_i32_0 = arith.constant 0 : i32
    %c0_i32_1 = arith.constant 0 : i32
    return %c0_i32, %c0_i32_0 : i32, i32
  }
  func.func @transform_7(%arg0: i32) -> (i32, i32) {
    %c0_i32 = arith.constant 0 : i32
    %c0_i32_0 = arith.constant 0 : i32
    %c0_i32_1 = arith.constant 0 : i32
    return %c0_i32, %c0_i32_0 : i32, i32
  }
  func.func @transform_8(%arg0: i32) -> (i32, i32) {
    %c0_i32 = arith.constant 0 : i32
    %c0_i32_0 = arith.constant 0 : i32
    %c0_i32_1 = arith.constant 0 : i32
    return %c0_i32, %c0_i32_0 : i32, i32
  }
  func.func @transform_9(%arg0: i32) -> (i32, i32, i32) {
    %c0_i32 = arith.constant 0 : i32
    %c0_i32_0 = arith.constant 0 : i32
    %c0_i32_1 = arith.constant 0 : i32
    return %arg0, %c0_i32, %c0_i32_0 : i32, i32, i32
  }
}

</mosaic_0001>

<bundles_post_ra>
// kernel: _lambda_.2
= control target key start
LH: loop header
LB: loop body
LE: loop exit
PB: predicated region body
PF: predicated region fallthrough
CT: control target
= control target key end

     0   :  { %12 = vsyncpa [#allocation3], 0  ;;  %s1087_s0 = inlined_call_operand.vmem [shape: f32[2,16,8], index: 0, kind: input, shape index: {}]   ;;  %s1088_s1 = inlined_call_operand.vmem [shape: f32[3,8,128], index: 1, kind: input, shape index: {}]   ;;  %s1089_s2 = inlined_call_operand.vmem [shape: f32[1,128], index: 2, kind: input, shape index: {}]   ;;  %s1090_s3 = inlined_call_operand.hbm [shape: f32[3,128,128], index: 3, kind: input, shape index: {}]   ;;  %s1091_s4 = inlined_call_operand.vmem [shape: f32[1,128], index: 4, kind: input, shape index: {}]   ;;  %s1092_s5 = inlined_call_operand.hbm [shape: f32[3,128,128], index: 5, kind: input, shape index: {}]   ;;  %s1093_s6 = inlined_call_operand.vmem [shape: f32[1,128], index: 6, kind: input, shape index: {}]   ;;  %s1094_s7 = inlined_call_operand.vmem [shape: f32[2,16,128], index: 7, kind: output, shape index: {}]  }
   0x1   :  { %13 = vsyncpa [#allocation5], 0  ;;  %s1004_s24 = smov 0  }
   0x2 LB: > { %s219_s27 = sshll.u32 %s1090_s3, 4  ;;  %s793_s28 = sadd.s32 4294967295, %s958_s24   ;;  %s958_s24 = sphi %s1004_s24, %s19_s24   ;;  %s220_s27 = int_to_ptr.hbm [resolvable:$true] %s219_s27 }
   0x3   : > { %p795_p0 = scmp.ge.s32.totalorder %s958_s24, 1  ;;  %p202_p1 = scmp.lt.s32.totalorder %s958_s24, 3 }
   0x4   : > { %p865_p2 = scmp.eq.s32.totalorder %s793_s28, 0  ;;  %s960_s30 = smov [#allocation2]  }
   0x5   : > { %p1015_p3 = pnand %p795_p0, %p202_p1  ;;  %s221_s8 = sshll.u32 %s960_s30, 4  ;;  %s222_s8 = int_to_ptr.vmem [resolvable:$true] %s221_s8 }
   0x6   : > { %s236_s11 = sshll.u32 %s1092_s5, 4  ;;  %s961_s12 = smov [#allocation4]   ;;  %s237_s11 = int_to_ptr.hbm [resolvable:$true] %s236_s11 }
   0x7   : > { %p858_p4 = pneg %p1015_p3  ;;  %s238_s13 = sshll.u32 %s961_s12, 4  ;;  %s239_s13 = int_to_ptr.vmem [resolvable:$true] %s238_s13 }
   0x8   : > { %s962_s14 = smov 128   ;;  %s963_s15 = smov 8  }
   0x9   : > { %p859_p5 = pnand %p865_p2, %p858_p4  ;;  %265 = sbr.rel (%p1015_p3) target bundleno = 464 (0x1d0), region = 48 }
   0xb   : > { %861 = dma.hbm_to_vmem [thread:$0]  (!%p859_p5), %s220_s27, 6144, %s222_s8, [#allocation3], %s962_s14, %s962_s14, %s963_s15  }
   0xc   : > { %864 = dma.hbm_to_vmem [thread:$0]  (!%p859_p5), %s237_s11, 6144, %s239_s13, [#allocation5], %s962_s14, %s962_s14, %s963_s15  }
   0xe   : > { %949 = dma.done.wait (%p865_p2), [#allocation3], 6144  }
   0xf   : > { %951 = vsyncadd (%p865_p2), [#allocation3], 4294961152 }
  0x10   : > { %953 = dma.done.wait (%p865_p2), [#allocation5], 6144  }
  0x11   : > { %955 = vsyncadd (%p865_p2), [#allocation5], 4294961152  ;;  %p303_p6 = scmp.lt.s32.totalorder %s793_s28, 1  ;;  %v811_v0 = vld [vmem:[%s1088_s1 + $0x10] sm:$0xff]  ;;  %vm383_vm0 = vcmask 1046528   ;;  %vm318_vm1 = vcmask 1040384  }
  0x12   : > { %411 = vmatpush.msra.mxu2 %v811_v0  ;;  %vm327_vm2 = vcmask 64512   ;;  %v806_v5 = vld [vmem:[%s1088_s1 + $0x8] sm:$0xff]  ;;  %v324_v6 = vld [vmem:[%s1088_s1] sm:$0xff]  ;;  %v469_v8 = vld [vmem:[#allocation2 + $0xf8] sm:$0xff] }
  0x13   : > { %s1097_s28 = smov (!%p303_p6, %s793_s28), 1  ;;  %347 = vmatpush.msra.mxu0 %v806_v5  ;;  %375 = vmatpush.msra.mxu1 %v324_v6  ;;  %v452_v9 = vld [vmem:[#allocation2 + $0x78] sm:$0xff]  ;;  %v468_v12 = vld [vmem:[#allocation2 + $0xf0] sm:$0xff]  ;;  %v467_v16 = vld [vmem:[#allocation2 + $0xe8] sm:$0xff] }
  0x14   : > { %s816_s16 = sshll.u32 %s1097_s28, 4  ;;  %v451_v13 = vld [vmem:[#allocation2 + $0x70] sm:$0xff]  ;;  %470 = vmatpush.msra.mxu3 %v469_v8  ;;  %v538_v15 = vld [vmem:[#allocation2 + $0x178] sm:$0xff]  ;;  %v450_v17 = vld [vmem:[#allocation2 + $0x68] sm:$0xff] }
  0x15   : > { %s307_s19 = scalar_lea.vmem %s1087_s0, %s816_s16  ;;  %493 = vmatpush.msrb.mxu0 %v452_v9  ;;  %539 = vmatpush.msrb.mxu1 %v538_v15  ;;  %v537_v18 = vld [vmem:[#allocation2 + $0x170] sm:$0xff]  ;;  %v536_v19 = vld [vmem:[#allocation2 + $0x168] sm:$0xff]  ;;  %v466_v20 = vld [vmem:[#allocation2 + $0xe0] sm:$0xff]  ;;  %s312_s13 = scalar_lea.vmem %s1094_s7, %s816_s16 }
  0x16   : > { %v313_v1 = vld [vmem:[%s307_s19] sm:$0xff]  ;;  %v314_v2 = vld [vmem:[%s307_s19 + $0x8] sm:$0xff]  ;;  %471 = vmatpush.msra.mxu3 %v468_v12  ;;  %v465_v23 = vld [vmem:[#allocation2 + $0xd8] sm:$0xff] }
  0x17   : > { %v384_v3 = vrot.slane %v313_v1, 1  ;;  %v385_v4 = vrot.slane %v314_v2, 1  ;;  %v319_v7 = vrot.slane %v313_v1, 7  ;;  %807 = vmatmul.msk.f32.vlgmr.msra.gmra.mxu0 %vm327_vm2, %v313_v1  ;;  %v320_v14 = vrot.slane %v314_v2, 7  ;;  %540 = vmatpush.msrb.mxu1 %v537_v18  ;;  %v449_v24 = vld [vmem:[#allocation2 + $0x60] sm:$0xff]  ;;  %v464_v26 = vld [vmem:[#allocation2 + $0xd0] sm:$0xff] }
  0x18   : > { %494 = vmatpush.msrb.mxu0 %v451_v13  ;;  %472 = vmatpush.msra.mxu3 %v467_v16  ;;  %v535_v25 = vld [vmem:[#allocation2 + $0x160] sm:$0xff]  ;;  %v448_v27 = vld [vmem:[#allocation2 + $0x58] sm:$0xff]  ;;  %v463_v29 = vld [vmem:[#allocation2 + $0xc8] sm:$0xff] }
  0x19   : > { %v386_v10 = vsel %vm383_vm0, %v384_v3, %v385_v4  ;;  %v323_v11 = vsel %vm318_vm1, %v313_v1, %v319_v7  ;;  %v388_v21 = vsel %vm383_vm0, %v385_v4, %v314_v2  ;;  %v321_v22 = vsel %vm318_vm1, %v319_v7, %v320_v14  ;;  %541 = vmatpush.msrb.mxu1 %v536_v19  ;;  %v534_v28 = vld [vmem:[#allocation2 + $0x158] sm:$0xff]  ;;  %v447_v30 = vld [vmem:[#allocation2 + $0x50] sm:$0xff]  ;;  %v462_v32 = vld [vmem:[#allocation2 + $0xc0] sm:$0xff] }
  0x1a   : > { %812 = vmatmul.msk.f32.vlgmr.msra.gmra.mxu2 %vm327_vm2, %v386_v10  ;;  %809 = vmatmul.msk.f32.vlgmr.msra.gmra.mxu1 %vm327_vm2, %v323_v11  ;;  %v533_v31 = vld [vmem:[#allocation2 + $0x150] sm:$0xff]  ;;  %v446_v33 = vld [vmem:[#allocation2 + $0x48] sm:$0xff]  ;;  %v461_v34 = vld [vmem:[#allocation2 + $0xb8] sm:$0xff] }
  0x1b   : > { %495 = vmatpush.msrb.mxu0 %v450_v17  ;;  %473 = vmatpush.msra.mxu3 %v466_v20  ;;  %v445_v35 = vld [vmem:[#allocation2 + $0x40] sm:$0xff]  ;;  %v460_v36 = vld [vmem:[#allocation2 + $0xb0] sm:$0xff]  ;;  %v444_v37 = vld [vmem:[#allocation2 + $0x38] sm:$0xff] }
  0x1c   : > { %542 = vmatpush.msrb.mxu1 %v535_v25  ;;  %v459_v38 = vld [vmem:[#allocation2 + $0xa8] sm:$0xff]  ;;  %v443_v39 = vld [vmem:[#allocation2 + $0x30] sm:$0xff]  ;;  %v458_v40 = vld [vmem:[#allocation2 + $0xa0] sm:$0xff] }
  0x1d   : > { %474 = vmatpush.msra.mxu3 %v465_v23  ;;  %496 = vmatpush.msrb.mxu0 %v449_v24  ;;  %v442_v41 = vld [vmem:[#allocation2 + $0x28] sm:$0xff]  ;;  %v457_v43 = vld [vmem:[#allocation2 + $0x98] sm:$0xff]  ;;  %v441_v44 = vld [vmem:[#allocation2 + $0x20] sm:$0xff] }
  0x1e   : > { %543 = vmatpush.msrb.mxu1 %v534_v28  ;;  %v532_v42 = vld [vmem:[#allocation2 + $0x148] sm:$0xff]  ;;  %v531_v45 = vld [vmem:[#allocation2 + $0x140] sm:$0xff]  ;;  %v456_v46 = vld [vmem:[#allocation2 + $0x90] sm:$0xff] }
  0x1f   : > { %808 = vmatmul.msk.f32.gmra.mxu0 %vm327_vm2, %v314_v2  ;;  %475 = vmatpush.msra.mxu3 %v464_v26  ;;  %v440_v47 = vld [vmem:[#allocation2 + $0x18] sm:$0xff]  ;;  %v455_v49 = vld [vmem:[#allocation2 + $0x88] sm:$0xff]  ;;  %v439_v50 = vld [vmem:[#allocation2 + $0x10] sm:$0xff] }
  0x20   : > { %497 = vmatpush.msrb.mxu0 %v448_v27  ;;  %544 = vmatpush.msrb.mxu1 %v533_v31  ;;  %v530_v48 = vld [vmem:[#allocation2 + $0x138] sm:$0xff]  ;;  %v529_v51 = vld [vmem:[#allocation2 + $0x130] sm:$0xff]  ;;  %v454_v52 = vld [vmem:[#allocation2 + $0x80] sm:$0xff] }
  0x21   : > { %476 = vmatpush.msra.mxu3 %v463_v29  ;;  %v438_v53 = vld [vmem:[#allocation2 + $0x8] sm:$0xff]  ;;  %v437_v55 = vld [vmem:[#allocation2] sm:$0xff]  ;;  %v526_v57 = vld [vmem:[#allocation2 + $0x118] sm:$0xff] }
  0x22   : > { %813 = vmatmul.msk.f32.gmra.mxu2 %vm327_vm2, %v388_v21  ;;  %810 = vmatmul.msk.f32.gmra.mxu1 %vm327_vm2, %v321_v22  ;;  %v528_v54 = vld [vmem:[#allocation2 + $0x128] sm:$0xff]  ;;  %v527_v56 = vld [vmem:[#allocation2 + $0x120] sm:$0xff]  ;;  %v525_v58 = vld [vmem:[#allocation2 + $0x110] sm:$0xff] }
  0x23   : > { %498 = vmatpush.msrb.mxu0 %v447_v30  ;;  %477 = vmatpush.msra.mxu3 %v462_v32  ;;  %v524_v59 = vld [vmem:[#allocation2 + $0x108] sm:$0xff]  ;;  %v523_v60 = vld [vmem:[#allocation2 + $0x100] sm:$0xff]  ;;  %v612_v63 = vld [vmem:[#allocation4 + $0xf8] sm:$0xff] }
  0x24   : > { %545 = vmatpush.msrb.mxu1 %v532_v42  ;;  %v611_v0 = vld [vmem:[#allocation4 + $0xf0] sm:$0xff]  ;;  %613 = vmatpush.msrb.mxu2 %v612_v63  ;;  %v610_v1 = vld [vmem:[#allocation4 + $0xe8] sm:$0xff]  ;;  %v609_v3 = vld [vmem:[#allocation4 + $0xe0] sm:$0xff] }
  0x25   : > { %499 = vmatpush.msrb.mxu0 %v446_v33  ;;  %478 = vmatpush.msra.mxu3 %v461_v34  ;;  %v1058_v4 = vld [vmem:[#allocation4 + $0x78] sm:$0xff]  ;;  %v881_v5 = vld [vmem:[%s1089_s2] ss:$0 sm:$0xff]  ;;  %v594_v7 = vld [vmem:[#allocation4 + $0x70] sm:$0xff] }
  0x26   : > { %546 = vmatpush.msrb.mxu1 %v531_v45  ;;  %614 = vmatpush.msrb.mxu2 %v611_v0  ;;  %v681_v6 = vld [vmem:[#allocation4 + $0x178] sm:$0xff]  ;;  %v680_v10 = vld [vmem:[#allocation4 + $0x170] sm:$0xff]  ;;  %v593_v11 = vld [vmem:[#allocation4 + $0x68] sm:$0xff] }
  0x27   : > { %500 = vmatpush.msrb.mxu0 %v445_v35  ;;  %479 = vmatpush.msra.mxu3 %v460_v36  ;;  %v608_v9 = vld [vmem:[#allocation4 + $0xd8] sm:$0xff]  ;;  %v679_v13 = vld [vmem:[#allocation4 + $0x168] sm:$0xff]  ;;  %v607_v16 = vld [vmem:[#allocation4 + $0xd0] sm:$0xff] }
  0x28   : > { %547 = vmatpush.msrb.mxu1 %v530_v48  ;;  %615 = vmatpush.msrb.mxu2 %v610_v1  ;;  %v606_v18 = vld [vmem:[#allocation4 + $0xc8] sm:$0xff]  ;;  %v605_v21 = vld [vmem:[#allocation4 + $0xc0] sm:$0xff]  ;;  %v604_v24 = vld [vmem:[#allocation4 + $0xb8] sm:$0xff] }
  0x29   : > { %501 = vmatpush.msrb.mxu0 %v444_v37  ;;  %480 = vmatpush.msra.mxu3 %v459_v38  ;;  %v603_v27 = vld [vmem:[#allocation4 + $0xb0] sm:$0xff]  ;;  %v602_v29 = vld [vmem:[#allocation4 + $0xa8] sm:$0xff]  ;;  %v601_v31 = vld [vmem:[#allocation4 + $0xa0] sm:$0xff] }
  0x2a   : > { %548 = vmatpush.msrb.mxu1 %v529_v51  ;;  %616 = vmatpush.msrb.mxu2 %v609_v3  ;;  %v600_v35 = vld [vmem:[#allocation4 + $0x98] sm:$0xff]  ;;  %v599_v38 = vld [vmem:[#allocation4 + $0x90] sm:$0xff]  ;;  %v592_v42 = vld [vmem:[#allocation4 + $0x60] sm:$0xff] }
  0x2b   : > { %502 = vmatpush.msrb.mxu0 %v443_v39  ;;  %481 = vmatpush.msra.mxu3 %v458_v40  ;;  %v598_v39 = vld [vmem:[#allocation4 + $0x88] sm:$0xff]  ;;  %v597_v40 = vld [vmem:[#allocation4 + $0x80] sm:$0xff]  ;;  %v677_v45 = vld [vmem:[#allocation4 + $0x158] sm:$0xff] }
  0x2c   : > { %549 = vmatpush.msrb.mxu1 %v528_v54  ;;  %617 = vmatpush.msrb.mxu2 %v608_v9  ;;  %v589_v48 = vld [vmem:[#allocation4 + $0x48] sm:$0xff]  ;;  %v674_v51 = vld [vmem:[#allocation4 + $0x140] sm:$0xff]  ;;  %v586_v54 = vld [vmem:[#allocation4 + $0x30] sm:$0xff] }
  0x2d   : > { %503 = vmatpush.msrb.mxu0 %v442_v41  ;;  %482 = vmatpush.msra.mxu3 %v457_v43  ;;  %v678_v43 = vld [vmem:[#allocation4 + $0x160] sm:$0xff]  ;;  %v668_v63 = vld [vmem:[#allocation4 + $0x110] sm:$0xff]  ;;  %v581_v0 = vld [vmem:[#allocation4 + $0x8] sm:$0xff] }
  0x2e   : > { %550 = vmatpush.msrb.mxu1 %v527_v56  ;;  %618 = vmatpush.msrb.mxu2 %v607_v16  ;;  %v585_v56 = vld [vmem:[#allocation4 + $0x28] sm:$0xff]  ;;  %v666_v3 = vld [vmem:[#allocation4 + $0x100] sm:$0xff] }
  0x2f   : > { %504 = vmatpush.msrb.mxu0 %v441_v44  ;;  %483 = vmatpush.msra.mxu3 %v456_v46  ;;  %v591_v44 = vld [vmem:[#allocation4 + $0x58] sm:$0xff]  ;;  %v590_v46 = vld [vmem:[#allocation4 + $0x50] sm:$0xff]  ;;  %v667_v1 = vld [vmem:[#allocation4 + $0x108] sm:$0xff] }
  0x30   : > { %551 = vmatpush.msrb.mxu1 %v526_v57  ;;  %619 = vmatpush.msrb.mxu2 %v606_v18  ;;  %v671_v57 = vld [vmem:[#allocation4 + $0x128] sm:$0xff] }
  0x31   : > { %505 = vmatpush.msrb.mxu0 %v440_v47  ;;  %484 = vmatpush.msra.mxu3 %v455_v49  ;;  %v676_v47 = vld [vmem:[#allocation4 + $0x150] sm:$0xff]  ;;  %v675_v49 = vld [vmem:[#allocation4 + $0x148] sm:$0xff] }
  0x32   : > { %552 = vmatpush.msrb.mxu1 %v525_v58  ;;  %620 = vmatpush.msrb.mxu2 %v605_v21  ;;  %v584_v58 = vld [vmem:[#allocation4 + $0x20] sm:$0xff] }
  0x33   : > { %506 = vmatpush.msrb.mxu0 %v439_v50  ;;  %485 = vmatpush.msra.mxu3 %v454_v52  ;;  %v588_v50 = vld [vmem:[#allocation4 + $0x40] sm:$0xff]  ;;  %v587_v52 = vld [vmem:[#allocation4 + $0x38] sm:$0xff] }
  0x34   : > { %553 = vmatpush.msrb.mxu1 %v524_v59  ;;  %621 = vmatpush.msrb.mxu2 %v604_v24  ;;  %v670_v59 = vld [vmem:[#allocation4 + $0x120] sm:$0xff] }
  0x35   : > { %507 = vmatpush.msrb.mxu0 %v438_v53  ;;  %818 = vmatpush.msrb.mxu3 %v1058_v4  ;;  %v673_v53 = vld [vmem:[#allocation4 + $0x138] sm:$0xff] }
  0x36   : > { %554 = vmatpush.msrb.mxu1 %v523_v60  ;;  %622 = vmatpush.msrb.mxu2 %v603_v27  ;;  %v583_v60 = vld [vmem:[#allocation4 + $0x18] sm:$0xff] }
  0x37   : > { %508 = vmatpush.msrb.mxu0 %v437_v55  ;;  %819 = vmatpush.msrb.mxu3 %v594_v7  ;;  %v672_v55 = vld [vmem:[#allocation4 + $0x130] sm:$0xff] }
  0x38   : > { %834 = vmatpush.msra.mxu1 %v681_v6  ;;  %623 = vmatpush.msrb.mxu2 %v602_v29 }
  0x39   : > { %682 = vmatpush.msra.mxu0 %v681_v6  ;;  %820 = vmatpush.msrb.mxu3 %v593_v11 }
  0x3a   : > { %835 = vmatpush.msra.mxu1 %v680_v10  ;;  %624 = vmatpush.msrb.mxu2 %v601_v31  ;;  %v883_v31 = vld [vmem:[%s1093_s6] ss:$0 sm:$0xff] }
  0x3b   : > { %683 = vmatpush.msra.mxu0 %v680_v10  ;;  %821 = vmatpush.msrb.mxu3 %v592_v42 }
  0x3c   : > { %836 = vmatpush.msra.mxu1 %v679_v13  ;;  %625 = vmatpush.msrb.mxu2 %v600_v35 }
  0x3d   : > { %684 = vmatpush.msra.mxu0 %v679_v13  ;;  %822 = vmatpush.msrb.mxu3 %v591_v44 }
  0x3e   : > { %626 = vmatpush.msrb.mxu2 %v599_v38  ;;  %837 = vmatpush.msra.mxu1 %v678_v43 }
  0x3f   : > { %685 = vmatpush.msra.mxu0 %v678_v43  ;;  %823 = vmatpush.msrb.mxu3 %v590_v46 }
  0x40   : > { %627 = vmatpush.msrb.mxu2 %v598_v39  ;;  %838 = vmatpush.msra.mxu1 %v677_v45 }
  0x41   : > { %686 = vmatpush.msra.mxu0 %v677_v45  ;;  %824 = vmatpush.msrb.mxu3 %v589_v48 }
  0x42   : > { %628 = vmatpush.msrb.mxu2 %v597_v40  ;;  %839 = vmatpush.msra.mxu1 %v676_v47 }
  0x43   : > { %687 = vmatpush.msra.mxu0 %v676_v47  ;;  %825 = vmatpush.msrb.mxu3 %v588_v50 }
  0x44   : > { %636 = vmatpush.msra.mxu2 %v1058_v4  ;;  %840 = vmatpush.msra.mxu1 %v675_v49 }
  0x45   : > { %688 = vmatpush.msra.mxu0 %v675_v49  ;;  %826 = vmatpush.msrb.mxu3 %v587_v52 }
  0x46   : > { %637 = vmatpush.msra.mxu2 %v594_v7  ;;  %841 = vmatpush.msra.mxu1 %v674_v51  ;;  %v882_v7 = vld [vmem:[%s1091_s4] ss:$0 sm:$0xff] }
  0x47   : > { %689 = vmatpush.msra.mxu0 %v674_v51  ;;  %827 = vmatpush.msrb.mxu3 %v586_v54 }
  0x48   : > { %638 = vmatpush.msra.mxu2 %v593_v11  ;;  %842 = vmatpush.msra.mxu1 %v673_v53 }
  0x49   : > { %690 = vmatpush.msra.mxu0 %v673_v53  ;;  %828 = vmatpush.msrb.mxu3 %v585_v56 }
  0x4a   : > { %639 = vmatpush.msra.mxu2 %v592_v42  ;;  %843 = vmatpush.msra.mxu1 %v672_v55 }
  0x4b   : > { %691 = vmatpush.msra.mxu0 %v672_v55  ;;  %829 = vmatpush.msrb.mxu3 %v584_v58 }
  0x4c   : > { %640 = vmatpush.msra.mxu2 %v591_v44  ;;  %844 = vmatpush.msra.mxu1 %v671_v57 }
  0x4d   : > { %692 = vmatpush.msra.mxu0 %v671_v57  ;;  %830 = vmatpush.msrb.mxu3 %v583_v60 }
  0x4e   : > { %641 = vmatpush.msra.mxu2 %v590_v46  ;;  %845 = vmatpush.msra.mxu1 %v670_v59 }
  0x4f   : > { %693 = vmatpush.msra.mxu0 %v670_v59 }
  0x50   : > { %642 = vmatpush.msra.mxu2 %v589_v48 }
  0x52   : > { %643 = vmatpush.msra.mxu2 %v588_v50 }
  0x54   : > { %644 = vmatpush.msra.mxu2 %v587_v52 }
  0x56   : > { %645 = vmatpush.msra.mxu2 %v586_v54 }
  0x58   : > { %646 = vmatpush.msra.mxu2 %v585_v56 }
  0x5a   : > { %647 = vmatpush.msra.mxu2 %v584_v58 }
  0x5c   : > { %648 = vmatpush.msra.mxu2 %v583_v60 }
  0x94   : > { %v349_v61 = vpop.f32.mrf.mxu0 }
  0x97   : > { %v377_v62 = vpop.f32.mrf.mxu1 }
  0x98   : > { %v378_v2 = vadd.f32 %v377_v62, %v349_v61  ;;  %v669_v61 = vld [vmem:[#allocation4 + $0x118] sm:$0xff]  ;;  %v582_v62 = vld [vmem:[#allocation4 + $0x10] sm:$0xff] }
  0x99   : > { %694 = vmatpush.msra.mxu0 %v669_v61  ;;  %846 = vmatpush.msra.mxu1 %v669_v61 }
  0x9a   : > { %831 = vmatpush.msrb.mxu3 %v582_v62  ;;  %649 = vmatpush.msra.mxu2 %v582_v62 }
  0x9b   : > { %695 = vmatpush.msra.mxu0 %v668_v63  ;;  %847 = vmatpush.msra.mxu1 %v668_v63 }
  0x9c   : > { %v352_v14 = vpop.f32.mrf.mxu0  ;;  %832 = vmatpush.msrb.mxu3 %v581_v0  ;;  %650 = vmatpush.msra.mxu2 %v581_v0 }
  0x9d   : > { %v413_v8 = vpop.f32.mrf.mxu2  ;;  %696 = vmatpush.msra.mxu0 %v667_v1  ;;  %848 = vmatpush.msra.mxu1 %v667_v1 }
  0x9e   : > { %v419_v12 = vadd.f32 %v413_v8, %v378_v2  ;;  %v580_v2 = vld [vmem:[#allocation4] sm:$0xff] }
  0x9f   : > { %v380_v15 = vpop.f32.mrf.mxu1  ;;  %833 = vmatpush.msrb.mxu3 %v580_v2  ;;  %697 = vmatpush.msra.mxu0 %v666_v3 }
  0xa0   : > { %v424_v17 = vadd.f32 %v881_v5, %v419_v12  ;;  %v381_v20 = vadd.f32 %v380_v15, %v352_v14  ;;  %849 = vmatpush.msra.mxu1 %v666_v3  ;;  %651 = vmatpush.msra.mxu2 %v580_v2 }
  0xa2   : > { %v426_v19 = vmax.f32 %v424_v17, 0.0 }
  0xa4   : > { %486 = vmatmul.f32.vlgmr.msra.gmra.mxu3 %v426_v19  ;;  %v431_v22 = vrot.slane %v426_v19, 7  ;;  %v516_v33 = vrot.slane %v426_v19, 1 }
  0xa5   : > { %v416_v23 = vpop.f32.mrf.mxu2 }
  0xa6   : > { %v420_v25 = vadd.f32 %v416_v23, %v381_v20  ;;  %v436_v26 = vsel %vm318_vm1, %v426_v19, %v431_v22 }
  0xa7   : > { %509 = vmatmul.f32.vlgmr.msrb.gmra.mxu0 %v436_v26 }
  0xa8   : > { %v425_v28 = vadd.f32 %v881_v5, %v420_v25 }
  0xaa   : > { %v427_v30 = vmax.f32 %v425_v28, 0.0 }
  0xac   : > { %489 = vmatmul.f32.gmra.mxu3 %v427_v30  ;;  %v432_v32 = vrot.slane %v427_v30, 7  ;;  %v517_v34 = vrot.slane %v427_v30, 1 }
  0xae   : > { %v433_v36 = vsel %vm318_vm1, %v431_v22, %v432_v32  ;;  %v518_v37 = vsel %vm383_vm0, %v516_v33, %v517_v34  ;;  %v521_v41 = vsel %vm383_vm0, %v517_v34, %v427_v30 }
  0xaf   : > { %512 = vmatmul.f32.gmra.mxu0 %v433_v36  ;;  %555 = vmatmul.f32.vlgmr.msrb.gmra.mxu1 %v518_v37 }
  0xb7   : > { %558 = vmatmul.f32.gmra.mxu1 %v521_v41 }
 0x124   : > { %v510_v5 = vpop.f32.mrf.mxu0 }
 0x127   : > { %v487_v4 = vpop.f32.mrf.mxu3 }
 0x128   : > { %v511_v6 = vadd.f32 %v510_v5, %v487_v4 }
 0x12c   : > { %v556_v8 = vpop.f32.mrf.mxu1  ;;  %v513_v13 = vpop.f32.mrf.mxu0 }
 0x12d   : > { %v562_v9 = vadd.f32 %v556_v8, %v511_v6 }
 0x12f   : > { %v567_v10 = vadd.f32 %v882_v7, %v562_v9  ;;  %v490_v11 = vpop.f32.mrf.mxu3 }
 0x130   : > { %v514_v14 = vadd.f32 %v513_v13, %v490_v11 }
 0x131   : > { %v569_v12 = vmax.f32 %v567_v10, 0.0 }
 0x133   : > { %629 = vmatmul.f32.vlgmr.msrb.gmra.mxu2 %v569_v12  ;;  %v574_v19 = vrot.slane %v569_v12, 7  ;;  %v659_v21 = vrot.slane %v569_v12, 1 }
 0x134   : > { %v559_v15 = vpop.f32.mrf.mxu1 }
 0x135   : > { %v563_v16 = vadd.f32 %v559_v15, %v514_v14  ;;  %v579_v26 = vsel %vm318_vm1, %v569_v12, %v574_v19 }
 0x137   : > { %v568_v17 = vadd.f32 %v882_v7, %v563_v16 }
 0x139   : > { %v570_v18 = vmax.f32 %v568_v17, 0.0 }
 0x13b   : > { %632 = vmatmul.f32.gmra.mxu2 %v570_v18  ;;  %v575_v20 = vrot.slane %v570_v18, 7  ;;  %v660_v22 = vrot.slane %v570_v18, 1 }
 0x13d   : > { %v576_v23 = vsel %vm318_vm1, %v574_v19, %v575_v20  ;;  %v661_v24 = vsel %vm383_vm0, %v659_v21, %v660_v22  ;;  %v664_v25 = vsel %vm383_vm0, %v660_v22, %v570_v18 }
 0x13e   : > { %655 = vmatmul.f32.vlgmr.msrb.gmra.mxu3 %v576_v23  ;;  %698 = vmatmul.f32.vlgmr.msra.gmra.mxu0 %v661_v24 }
 0x13f   : > { %701 = vmatmul.f32.vlgmr.msra.gmra.mxu1 %v664_v25 }
 0x143   : > { %652 = vmatmul.f32.vlgmr.msra.gmra.mxu2 %v579_v26 }
 0x1b6   : > { %v630_v27 = vpop.f32.mrf.mxu2 }
 0x1bb   : > { %v699_v37 = vpop.f32.mrf.mxu0 }
 0x1bc   : > { %v702_v32 = vpop.f32.mrf.mxu1 }
 0x1be   : > { %v633_v28 = vpop.f32.mrf.mxu2 }
 0x1c1   : > { %v656_v29 = vpop.f32.mrf.mxu3 }
 0x1c2   : > { %v657_v30 = vadd.f32 %v656_v29, %v633_v28 }
 0x1c4   : > { %v706_v33 = vadd.f32 %v702_v32, %v657_v30 }
 0x1c6   : > { %v711_v34 = vadd.f32 %v883_v31, %v706_v33  ;;  %v653_v35 = vpop.f32.mrf.mxu2 }
 0x1c7   : > { %v654_v36 = vadd.f32 %v653_v35, %v630_v27 }
 0x1c8   : > { %v713_v38 = vmax.f32 %v711_v34, 0.0 }
 0x1c9   : > { %v705_v39 = vadd.f32 %v699_v37, %v654_v36 }
 0x1ca   : > { %715 = vst [vmem:[%s312_s13 + $0x8] sm:$0xff] %v713_v38 }
 0x1cb   : > { %v710_v40 = vadd.f32 %v883_v31, %v705_v39 }
 0x1cd   : > { %v712_v41 = vmax.f32 %v710_v40, 0.0 }
 0x1cf   : > { %714 = vst [vmem:[%s312_s13] sm:$0xff] %v712_v41 }
 0x1d0 PF: > { %s19_s24 = sadd.s32 1, %s958_s24  }
 0x1d1   : > { %p16_p7 = scmp.ge.s32.totalorder %s19_s24, 4  }
 0x1d3   :  { %18 = sbr.rel (!%p16_p7) target bundleno = 2 (0x2), region = 93 }
 0x1d8   :  { %737 = vsyncpa [#allocation3], 1 }
 0x1d9   :  { %739 = vsyncpa [#allocation3 + $0x1], 1 }
 0x1da   :  { %740 = vsyncpa [#allocation5], 1 }

// kernel: _lambda_.3
= control target key start
LH: loop header
LB: loop body
LE: loop exit
PB: predicated region body
PF: predicated region fallthrough
CT: control target
= control target key end

     0   :  { %14 = vsyncpa [#allocation3], 0  ;;  %s2206_s0 = inlined_call_operand.vmem [shape: f32[2,8,16], index: 0, kind: input, shape index: {}]   ;;  %s2207_s1 = inlined_call_operand.vmem [shape: f32[16,128], index: 1, kind: input, shape index: {}]   ;;  %s2208_s2 = inlined_call_operand.vmem [shape: f32[32,128], index: 2, kind: input, shape index: {}]   ;;  %s2209_s3 = inlined_call_operand.vmem [shape: f32[1,128], index: 3, kind: input, shape index: {}]   ;;  %s2210_s4 = inlined_call_operand.vmem [shape: f32[32,128], index: 4, kind: input, shape index: {}]   ;;  %s2211_s5 = inlined_call_operand.vmem [shape: f32[32,128], index: 5, kind: input, shape index: {}]   ;;  %s2212_s6 = inlined_call_operand.vmem [shape: f32[1,128], index: 6, kind: input, shape index: {}]   ;;  %s2213_s7 = inlined_call_operand.vmem [shape: f32[32,128], index: 7, kind: input, shape index: {}]   ;;  %s2214_s8 = inlined_call_operand.vmem [shape: f32[1,128], index: 8, kind: input, shape index: {}]   ;;  %s2215_s9 = inlined_call_operand.hbm [shape: f32[2,1,6], index: 9, kind: output, shape index: {}]  }
   0x1   :  { %16 = vsyncpa [#allocation3 + $0x1], 0  ;;  %s1946_s30 = smov 0   ;;  %s1948_s10 = smov 0  }
   0x2   :  { %s1950_s11 = smov 0   ;;  %s1952_s12 = smov 0  }
   0x3 LB: > { %s1967_s13 = sadd.s32 4294967295, %s1891_s12   ;;  %s1629_s14 = sadd.s32 4294967294, %s1891_s12   ;;  %s1891_s12 = sphi %s1952_s12, %s2221_s12   ;;  %s1887_s11 = sphi %s1950_s11, %s2220_s11   ;;  %s1883_s10 = sphi %s1948_s10, %s2219_s10   ;;  %s1879_s30 = sphi %s1946_s30, %s2218_s30  }
   0x4   : > { %s1971_s15 = sadd.s32 1, %s1891_s12   ;;  %s223_s16 = sadd.s32 1, %s1887_s11 }
   0x5   : > { %s220_s17 = ssub.s32 %s1891_s12, %s1971_s15  ;;  %p233_p0 = scmp.ne.s32.totalorder %s1887_s11, %s1883_s10 }
   0x6   : > { %p221_p1 = scmp.eq.s32.totalorder %s220_s17, 0  ;;  %p234_p2 = scmp.eq.s32.totalorder %s1967_s13, 1 }
   0x7   : > { %p239_p3 = scmp.ne.s32.totalorder %s1883_s10, %s1879_s30  ;;  %p240_p4 = scmp.eq.s32.totalorder %s1629_s14, 1 }
   0x8   : > { %s1982_s18 = scalar_select %p221_p1, %s1887_s11, %s223_s16  }
   0x9   : > { %p1984_p5 = por %p234_p2, %p233_p0  ;;  %p1988_p6 = por %p240_p4, %p239_p3 }
   0xa   : > { %p1632_p7 = scmp.ge.s32.totalorder %s1891_s12, 1  ;;  %p289_p8 = scmp.lt.s32.totalorder %s1891_s12, 3 }
   0xc   : > { %p290_p9 = pnand %p1632_p7, %p289_p8 }
   0xd   : > { %p323_p10 = scmp.lt.s32.totalorder (!%p290_p9), %s1967_s13, 1  ;;  %s1894_s28 = smov (!%p290_p9), 64  }
   0xe   : > { %293 = sbr.rel (%p290_p9) target bundleno = 9747 (0x2613), region = 56  ;;  %s1895_s29 = smov (!%p290_p9), 32  }
   0xf   : > { %s1570_s27 = scalar_lea.hbm (!%p290_p9), %s2215_s9, %s1967_s13  ;;  %s1849_s24 = scalar_lea.hbm (!%p290_p9), %s2215_s9, 2 }
  0x13   : > { %v333_v0 = vld [vmem:[%s2208_s2 + $0x18] sm:$0xff]  ;;  %v329_v1 = vld [vmem:[%s2207_s1 + $0x8] sm:$0xff]  ;;  %v332_v2 = vld [vmem:[%s2208_s2 + $0x10] sm:$0xff]  ;;  %s324_s16 = scalar_select %p323_p10, %s1967_s13, 1  ;;  %vm338_vm0 = vcmask 130048   ;;  %v1893_v7 = vmov 0.0  }
  0x14   : > { %378 = vmatpush.msra.mxu1 %v333_v0  ;;  %356 = vmatpush.msra.mxu0 %v329_v1  ;;  %v328_v3 = vld [vmem:[%s2207_s1] sm:$0xff]  ;;  %v331_v4 = vld [vmem:[%s2208_s2 + $0x8] sm:$0xff]  ;;  %vm362_vm5 = vcmask 261120   ;;  %vm913_vm14 = vcmask 1040384   ;;  %vm915_vm15 = vcmask 1041408  }
  0x15   : > { %441 = vmatpush.msra.mxu2 %v333_v0  ;;  %511 = vmatpush.msra.mxu3 %v333_v0  ;;  %s1633_s17 = sshll.u32 %s324_s16, 3  ;;  %v330_v5 = vld [vmem:[%s2208_s2] sm:$0xff] }
  0x16   : > { %379 = vmatpush.msra.mxu1 %v332_v2  ;;  %357 = vmatpush.msra.mxu0 %v328_v3  ;;  %s326_s25 = scalar_lea.vmem %s2206_s0, %s1633_s17  ;;  %v1695_v8 = vld [vmem:[%s2209_s3] ss:$0 sm:$0xff]  ;;  %s1574_s17 = sshll.u32 %s1570_s27, 4  ;;  %s1575_s17 = int_to_ptr.hbm [resolvable:$true] %s1574_s17 }
  0x17   : > { %442 = vmatpush.msra.mxu2 %v332_v2  ;;  %512 = vmatpush.msra.mxu3 %v332_v2  ;;  %v327_v6 = vld [vmem:[%s326_s25] sm:$0xff]  ;;  %s1843_s22 = sshra.s32 %s1575_s17, 4  ;;  %s1844_s22 = int_to_ptr.hbm [resolvable:$true] %s1843_s22 }
  0x18   : > { %380 = vmatpush.msra.mxu1 %v331_v4  ;;  %581 = vmatpush.msrb.mxu0 %v333_v0  ;;  %s1845_s23 = scalar_lea.hbm %s1844_s22, 1  ;;  %p1850_p0 = scmp.lt.s32.totalorder %s1844_s22, %s2215_s9 }
  0x19   : > { %443 = vmatpush.msra.mxu2 %v331_v4  ;;  %513 = vmatpush.msra.mxu3 %v331_v4  ;;  %p1846_p11 = scmp.ne.s32.totalorder %s1844_s22, %s1845_s23  ;;  %p1851_p1 = scmp.lt.s32.totalorder %s1849_s24, %s1845_s23 }
  0x1a   : > { %1634 = vmatmul.msk.f32.vlgmr.msra.gmra.mxu0 %vm338_vm0, %v327_v6  ;;  %381 = vmatpush.msra.mxu1 %v330_v5 }
  0x1b   : > { %382 = vmatmul.f32.vlgmr.msra.gmra.mxu1 %v1893_v7  ;;  %444 = vmatpush.msra.mxu2 %v330_v5  ;;  %p1847_p12 = pnand %p1846_p11, %p1984_p5  ;;  %p1852_p2 = por %p1851_p1, %p1850_p0 }
  0x1c   : > { %514 = vmatpush.msra.mxu3 %v330_v5  ;;  %582 = vmatpush.msrb.mxu0 %v332_v2 }
  0x1d   : > { %651 = vmatpush.msrb.mxu1 %v333_v0  ;;  %721 = vmatpush.msrb.mxu2 %v333_v0  ;;  %p1848_p13 = pneg %p1847_p12 }
  0x1e   : > { %583 = vmatpush.msrb.mxu0 %v331_v4  ;;  %791 = vmatpush.msrb.mxu3 %v333_v0 }
  0x1f   : > { %652 = vmatpush.msrb.mxu1 %v332_v2  ;;  %722 = vmatpush.msrb.mxu2 %v332_v2  ;;  %p1853_p3 = pnand %p1852_p2, %p1848_p13 }
  0x20   : > { %584 = vmatpush.msrb.mxu0 %v330_v5  ;;  %792 = vmatpush.msrb.mxu3 %v332_v2 }
  0x21   : > { %653 = vmatpush.msrb.mxu1 %v331_v4  ;;  %723 = vmatpush.msrb.mxu2 %v331_v4 }
  0x22   : > { %793 = vmatpush.msrb.mxu3 %v331_v4  ;;  %861 = vmatpush.msra.mxu0 %v333_v0 }
  0x23   : > { %654 = vmatpush.msrb.mxu1 %v330_v5  ;;  %724 = vmatpush.msrb.mxu2 %v330_v5 }
  0x24   : > { %794 = vmatpush.msrb.mxu3 %v330_v5  ;;  %862 = vmatpush.msra.mxu0 %v332_v2 }
  0x26   : > { %863 = vmatpush.msra.mxu0 %v331_v4 }
  0x28   : > { %864 = vmatpush.msra.mxu0 %v330_v5 }
  0x97   : > { %v359_v9 = vpop.f32.mrf.mxu0 }
  0x98   : > { %v2021_v10 = vadd.f32 %v1695_v8, %v359_v9  ;;  %v383_v11 = vpop.f32.mrf.mxu1 }
  0x9a   : > { %v386_v12 = vadd.f32 %v383_v11, %v2021_v10 }
  0x9c   : > { %1697 = vtanh.f32 %v386_v12  ;;  %v387_v14 = vsub.f32 0.0, %v386_v12 }
  0x9e   : > { %v388_v15 = vmul.f32 1.442695, %v387_v14 }
  0xa0   : > { %1699 = vpow2.f32 %v388_v15 }
  0xa2   : > { %v1698_v13 = vpop.eup %1697 }
  0xa3   : > { %409 = vrot.lane.b32.xlu0 %v1698_v13, %s1894_s28 }
  0xa6   : > { %v1700_v16 = vpop.eup %1699 }
  0xa7   : > { %v390_v17 = vadd.f32 1.0, %v1700_v16 }
  0xa9   : > { %1701 = vrcp.f32 %v390_v17  ;;  %v402_v23 = vand.u32 2147483648, %v390_v17  ;;  %vm396_vm2 = vweird.f32 %v390_v17  ;;  %v400_v24 = vand.u32 2147483647, %v390_v17 }
  0xab   : > { %v403_v26 = vor.u32 1.1754944e-38, %v402_v23  ;;  %vm401_vm4 = vcmp.eq.f32.partialorder %v400_v24, 8.507059e+37 }
  0xaf   : > { %v1702_v18 = vpop.eup %1701 }
  0xb0   : > { %v392_v19 = vmul.f32 %v1702_v18, %v390_v17  ;;  %vm397_vm1 = vweird.f32 %v1702_v18 }
  0xb1   : > { %vm398_vm3 = vmor %vm396_vm2, %vm397_vm1 }
  0xb2   : > { %v393_v20 = vsub.f32 1.0, %v392_v19 }
  0xb4   : > { %v394_v21 = vmul.f32 %v1702_v18, %v393_v20 }
  0xb6   : > { %v395_v22 = vadd.f32 %v1702_v18, %v394_v21 }
  0xb8   : > { %v399_v25 = vsel %vm398_vm3, %v1702_v18, %v395_v22 }
  0xb9   : > { %v404_v28 = vsel %vm401_vm4, %v403_v26, %v399_v25  ;;  %vm917_vm4 = vcmask 1042432  }
  0xba   : > { %v407_v30 = vmul.f32 0.0, %v404_v28 }
 0x115   : > { %v410_v27 = vpop.permute.xlu0 %409 }
 0x116   : > { %v412_v29 = vmul.f32 %v410_v27, %v404_v28 }
 0x118   : > { %414 = vrot.lane.b32.xlu0 %v412_v29, %s1895_s29 }
 0x18a   : > { %v415_v31 = vpop.permute.xlu0 %414 }
 0x18b   : > { %v417_v32 = vadd.f32 %v415_v31, %v407_v30 }
 0x18d   : > { %1703 = vtanh.f32 %v417_v32  ;;  %v474_v57 = vrot.slane %v417_v32, 7 }
 0x193   : > { %v1704_v33 = vpop.eup %1703 }
 0x194   : > { %420 = vrot.lane.b32.xlu1 %v1704_v33, %s1894_s28 }
 0x206   : > { %v421_v34 = vpop.permute.xlu1 %420 }
 0x207   : > { %v2027_v35 = vmul.f32 %v421_v34, %v404_v28 }
 0x209   : > { %425 = vrot.lane.b32.xlu1 %v2027_v35, %s1895_s29 }
 0x27b   : > { %v426_v36 = vpop.permute.xlu1 %425 }
 0x27c   : > { %1635 = vmatmul.msk.f32.vlgmr.msra.gmra.mxu2 %vm362_vm5, %v426_v36 }
 0x2ff   : > { %v446_v37 = vpop.f32.mrf.mxu2 }
 0x300   : > { %v450_v38 = vrot.slane %v446_v37, 7 }
 0x302   : > { %v452_v39 = vadd.f32 %v450_v38, %v2021_v10 }
 0x304   : > { %1705 = vtanh.f32 %v452_v39  ;;  %v453_v41 = vsub.f32 0.0, %v452_v39 }
 0x306   : > { %v454_v42 = vmul.f32 1.442695, %v453_v41 }
 0x308   : > { %1707 = vpow2.f32 %v454_v42 }
 0x30a   : > { %v1706_v40 = vpop.eup %1705 }
 0x30b   : > { %478 = vrot.lane.b32.xlu2 %v1706_v40, %s1894_s28 }
 0x30e   : > { %v1708_v43 = vpop.eup %1707 }
 0x30f   : > { %v456_v44 = vadd.f32 1.0, %v1708_v43 }
 0x311   : > { %1709 = vrcp.f32 %v456_v44  ;;  %v468_v50 = vand.u32 2147483648, %v456_v44  ;;  %vm462_vm7 = vweird.f32 %v456_v44  ;;  %v466_v51 = vand.u32 2147483647, %v456_v44 }
 0x313   : > { %v469_v53 = vor.u32 1.1754944e-38, %v468_v50  ;;  %vm467_vm9 = vcmp.eq.f32.partialorder %v466_v51, 8.507059e+37 }
 0x317   : > { %v1710_v45 = vpop.eup %1709 }
 0x318   : > { %v458_v46 = vmul.f32 %v1710_v45, %v456_v44  ;;  %vm463_vm6 = vweird.f32 %v1710_v45 }
 0x319   : > { %vm464_vm8 = vmor %vm462_vm7, %vm463_vm6 }
 0x31a   : > { %v459_v47 = vsub.f32 1.0, %v458_v46 }
 0x31c   : > { %v460_v48 = vmul.f32 %v1710_v45, %v459_v47 }
 0x31e   : > { %v461_v49 = vadd.f32 %v1710_v45, %v460_v48 }
 0x320   : > { %v465_v52 = vsel %vm464_vm8, %v1710_v45, %v461_v49 }
 0x321   : > { %v470_v55 = vsel %vm467_vm9, %v469_v53, %v465_v52 }
 0x322   : > { %v476_v58 = vmul.f32 %v474_v57, %v470_v55 }
 0x365   : > { %v479_v54 = vpop.permute.xlu2 %478 }
 0x366   : > { %v481_v56 = vmul.f32 %v479_v54, %v470_v55 }
 0x368   : > { %483 = vrot.lane.b32.xlu2 %v481_v56, %s1895_s29 }
 0x3c2   : > { %v484_v59 = vpop.permute.xlu2 %483 }
 0x3c3   : > { %v486_v60 = vadd.f32 %v484_v59, %v476_v58 }
 0x3c5   : > { %1711 = vtanh.f32 %v486_v60  ;;  %v544_v24 = vrot.slane %v486_v60, 7 }
 0x3cb   : > { %v1712_v61 = vpop.eup %1711 }
 0x3cc   : > { %489 = vrot.lane.b32.xlu0 %v1712_v61, %s1894_s28 }
 0x43e   : > { %v490_v62 = vpop.permute.xlu0 %489 }
 0x43f   : > { %v492_v63 = vmul.f32 %v490_v62, %v470_v55 }
 0x441   : > { %v494_v0 = vrot.slane %v492_v63, 1  ;;  %v914_v31 = vsel %vm913_vm14, %v2027_v35, %v492_v63 }
 0x443   : > { %495 = vrot.lane.b32.xlu1 %v494_v0, %s1895_s29 }
 0x4b5   : > { %v496_v1 = vpop.permute.xlu1 %495 }
 0x4b6   : > { %1636 = vmatmul.msk.f32.vlgmr.msra.gmra.mxu3 %vm362_vm5, %v496_v1 }
 0x539   : > { %v516_v2 = vpop.f32.mrf.mxu3 }
 0x53a   : > { %v520_v3 = vrot.slane %v516_v2, 6 }
 0x53c   : > { %v522_v4 = vadd.f32 %v520_v3, %v2021_v10 }
 0x53e   : > { %1713 = vtanh.f32 %v522_v4  ;;  %v523_v6 = vsub.f32 0.0, %v522_v4 }
 0x540   : > { %v524_v8 = vmul.f32 1.442695, %v523_v6 }
 0x542   : > { %1715 = vpow2.f32 %v524_v8 }
 0x544   : > { %v1714_v5 = vpop.eup %1713 }
 0x545   : > { %548 = vrot.lane.b32.xlu2 %v1714_v5, %s1894_s28 }
 0x548   : > { %v1716_v9 = vpop.eup %1715 }
 0x549   : > { %v526_v11 = vadd.f32 1.0, %v1716_v9 }
 0x54b   : > { %1717 = vrcp.f32 %v526_v11  ;;  %v538_v17 = vand.u32 2147483648, %v526_v11  ;;  %vm532_vm11 = vweird.f32 %v526_v11  ;;  %v536_v18 = vand.u32 2147483647, %v526_v11 }
 0x54d   : > { %v539_v20 = vor.u32 1.1754944e-38, %v538_v17  ;;  %vm537_vm13 = vcmp.eq.f32.partialorder %v536_v18, 8.507059e+37 }
 0x551   : > { %v1718_v12 = vpop.eup %1717 }
 0x552   : > { %v528_v13 = vmul.f32 %v1718_v12, %v526_v11  ;;  %vm533_vm10 = vweird.f32 %v1718_v12 }
 0x553   : > { %vm534_vm12 = vmor %vm532_vm11, %vm533_vm10  ;;  %vm919_vm10 = vcmask 1043456  }
 0x554   : > { %v529_v14 = vsub.f32 1.0, %v528_v13 }
 0x556   : > { %v530_v15 = vmul.f32 %v1718_v12, %v529_v14 }
 0x558   : > { %v531_v16 = vadd.f32 %v1718_v12, %v530_v15 }
 0x55a   : > { %v535_v19 = vsel %vm534_vm12, %v1718_v12, %v531_v16 }
 0x55b   : > { %v540_v22 = vsel %vm537_vm13, %v539_v20, %v535_v19 }
 0x55c   : > { %v546_v25 = vmul.f32 %v544_v24, %v540_v22 }
 0x59f   : > { %v549_v21 = vpop.permute.xlu2 %548 }
 0x5a0   : > { %v551_v23 = vmul.f32 %v549_v21, %v540_v22 }
 0x5a2   : > { %553 = vrot.lane.b32.xlu0 %v551_v23, %s1895_s29 }
 0x614   : > { %v554_v26 = vpop.permute.xlu0 %553 }
 0x615   : > { %v556_v27 = vadd.f32 %v554_v26, %v546_v25 }
 0x617   : > { %1719 = vtanh.f32 %v556_v27  ;;  %v614_v55 = vrot.slane %v556_v27, 7 }
 0x61d   : > { %v1720_v28 = vpop.eup %1719 }
 0x61e   : > { %559 = vrot.lane.b32.xlu1 %v1720_v28, %s1894_s28 }
 0x690   : > { %v560_v29 = vpop.permute.xlu1 %559 }
 0x691   : > { %v562_v30 = vmul.f32 %v560_v29, %v540_v22 }
 0x693   : > { %v564_v32 = vrot.slane %v562_v30, 2  ;;  %v916_v33 = vsel %vm915_vm15, %v914_v31, %v562_v30 }
 0x695   : > { %565 = vrot.lane.b32.xlu2 %v564_v32, %s1895_s29 }
 0x6ef   : > { %v566_v34 = vpop.permute.xlu2 %565 }
 0x6f0   : > { %1637 = vmatmul.msk.f32.vlgmr.msrb.gmra.mxu0 %vm362_vm5, %v566_v34 }
 0x76d   : > { %v586_v36 = vpop.f32.mrf.mxu0 }
 0x76e   : > { %v590_v37 = vrot.slane %v586_v36, 5 }
 0x770   : > { %v592_v38 = vadd.f32 %v590_v37, %v2021_v10 }
 0x772   : > { %1721 = vtanh.f32 %v592_v38  ;;  %v593_v40 = vsub.f32 0.0, %v592_v38 }
 0x774   : > { %v594_v41 = vmul.f32 1.442695, %v593_v40 }
 0x776   : > { %1723 = vpow2.f32 %v594_v41 }
 0x778   : > { %v1722_v39 = vpop.eup %1721 }
 0x779   : > { %618 = vrot.lane.b32.xlu0 %v1722_v39, %s1894_s28 }
 0x77c   : > { %v1724_v42 = vpop.eup %1723 }
 0x77d   : > { %v596_v35 = vadd.f32 1.0, %v1724_v42 }
 0x77f   : > { %1725 = vrcp.f32 %v596_v35  ;;  %v608_v48 = vand.u32 2147483648, %v596_v35  ;;  %vm602_vm1 = vweird.f32 %v596_v35  ;;  %v606_v49 = vand.u32 2147483647, %v596_v35 }
 0x781   : > { %v609_v51 = vor.u32 1.1754944e-38, %v608_v48  ;;  %vm607_vm3 = vcmp.eq.f32.partialorder %v606_v49, 8.507059e+37 }
 0x785   : > { %v1726_v43 = vpop.eup %1725 }
 0x786   : > { %v598_v44 = vmul.f32 %v1726_v43, %v596_v35  ;;  %vm603_vm0 = vweird.f32 %v1726_v43 }
 0x787   : > { %vm604_vm2 = vmor %vm602_vm1, %vm603_vm0  ;;  %vm921_vm0 = vcmask 1044480  }
 0x788   : > { %v599_v45 = vsub.f32 1.0, %v598_v44 }
 0x78a   : > { %v600_v46 = vmul.f32 %v1726_v43, %v599_v45 }
 0x78c   : > { %v601_v47 = vadd.f32 %v1726_v43, %v600_v46 }
 0x78e   : > { %v605_v50 = vsel %vm604_vm2, %v1726_v43, %v601_v47 }
 0x78f   : > { %v610_v53 = vsel %vm607_vm3, %v609_v51, %v605_v50 }
 0x790   : > { %v616_v56 = vmul.f32 %v614_v55, %v610_v53 }
 0x7eb   : > { %v619_v52 = vpop.permute.xlu0 %618 }
 0x7ec   : > { %v621_v54 = vmul.f32 %v619_v52, %v610_v53 }
 0x7ee   : > { %623 = vrot.lane.b32.xlu1 %v621_v54, %s1895_s29 }
 0x860   : > { %v624_v57 = vpop.permute.xlu1 %623 }
 0x861   : > { %v626_v58 = vadd.f32 %v624_v57, %v616_v56 }
 0x863   : > { %1727 = vtanh.f32 %v626_v58  ;;  %v684_v23 = vrot.slane %v626_v58, 7 }
 0x869   : > { %v1728_v59 = vpop.eup %1727 }
 0x86a   : > { %629 = vrot.lane.b32.xlu2 %v1728_v59, %s1894_s28 }
 0x8c4   : > { %v630_v60 = vpop.permute.xlu2 %629 }
 0x8c5   : > { %v632_v61 = vmul.f32 %v630_v60, %v610_v53 }
 0x8c7   : > { %v634_v62 = vrot.slane %v632_v61, 3  ;;  %v918_v63 = vsel %vm917_vm4, %v916_v33, %v632_v61 }
 0x8c9   : > { %635 = vrot.lane.b32.xlu0 %v634_v62, %s1895_s29 }
 0x93b   : > { %v636_v0 = vpop.permute.xlu0 %635 }
 0x93c   : > { %1638 = vmatmul.msk.f32.vlgmr.msrb.gmra.mxu1 %vm362_vm5, %v636_v0 }
 0x9b9   : > { %v656_v1 = vpop.f32.mrf.mxu1 }
 0x9ba   : > { %v660_v2 = vrot.slane %v656_v1, 4 }
 0x9bc   : > { %v662_v3 = vadd.f32 %v660_v2, %v2021_v10 }
 0x9be   : > { %1729 = vtanh.f32 %v662_v3  ;;  %v663_v5 = vsub.f32 0.0, %v662_v3 }
 0x9c0   : > { %v664_v6 = vmul.f32 1.442695, %v663_v5 }
 0x9c2   : > { %1731 = vpow2.f32 %v664_v6 }
 0x9c4   : > { %v1730_v4 = vpop.eup %1729 }
 0x9c5   : > { %688 = vrot.lane.b32.xlu1 %v1730_v4, %s1894_s28 }
 0x9c8   : > { %v1732_v8 = vpop.eup %1731 }
 0x9c9   : > { %v666_v9 = vadd.f32 1.0, %v1732_v8 }
 0x9cb   : > { %1733 = vrcp.f32 %v666_v9  ;;  %v678_v16 = vand.u32 2147483648, %v666_v9  ;;  %vm672_vm7 = vweird.f32 %v666_v9  ;;  %v676_v17 = vand.u32 2147483647, %v666_v9 }
 0x9cd   : > { %v679_v19 = vor.u32 1.1754944e-38, %v678_v16  ;;  %vm677_vm9 = vcmp.eq.f32.partialorder %v676_v17, 8.507059e+37 }
 0x9d1   : > { %v1734_v11 = vpop.eup %1733 }
 0x9d2   : > { %v668_v12 = vmul.f32 %v1734_v11, %v666_v9  ;;  %vm673_vm6 = vweird.f32 %v1734_v11 }
 0x9d3   : > { %vm674_vm8 = vmor %vm672_vm7, %vm673_vm6  ;;  %vm923_vm6 = vcmask 1045504  }
 0x9d4   : > { %v669_v13 = vsub.f32 1.0, %v668_v12 }
 0x9d6   : > { %v670_v14 = vmul.f32 %v1734_v11, %v669_v13 }
 0x9d8   : > { %v671_v15 = vadd.f32 %v1734_v11, %v670_v14 }
 0x9da   : > { %v675_v18 = vsel %vm674_vm8, %v1734_v11, %v671_v15 }
 0x9db   : > { %v680_v21 = vsel %vm677_vm9, %v679_v19, %v675_v18 }
 0x9dc   : > { %v686_v24 = vmul.f32 %v684_v23, %v680_v21 }
 0xa37   : > { %v689_v20 = vpop.permute.xlu1 %688 }
 0xa38   : > { %v691_v22 = vmul.f32 %v689_v20, %v680_v21 }
 0xa3a   : > { %693 = vrot.lane.b32.xlu2 %v691_v22, %s1895_s29 }
 0xa94   : > { %v694_v25 = vpop.permute.xlu2 %693 }
 0xa95   : > { %v696_v26 = vadd.f32 %v694_v25, %v686_v24 }
 0xa97   : > { %1735 = vtanh.f32 %v696_v26  ;;  %v754_v53 = vrot.slane %v696_v26, 7 }
 0xa9d   : > { %v1736_v27 = vpop.eup %1735 }
 0xa9e   : > { %699 = vrot.lane.b32.xlu0 %v1736_v27, %s1894_s28 }
 0xb10   : > { %v700_v28 = vpop.permute.xlu0 %699 }
 0xb11   : > { %v702_v29 = vmul.f32 %v700_v28, %v680_v21 }
 0xb13   : > { %v704_v30 = vrot.slane %v702_v29, 4  ;;  %v920_v31 = vsel %vm919_vm10, %v918_v63, %v702_v29 }
 0xb15   : > { %705 = vrot.lane.b32.xlu1 %v704_v30, %s1895_s29 }
 0xb87   : > { %v706_v32 = vpop.permute.xlu1 %705 }
 0xb88   : > { %1639 = vmatmul.msk.f32.vlgmr.msrb.gmra.mxu2 %vm362_vm5, %v706_v32 }
 0xc0b   : > { %v726_v33 = vpop.f32.mrf.mxu2 }
 0xc0c   : > { %v730_v34 = vrot.slane %v726_v33, 3 }
 0xc0e   : > { %v732_v36 = vadd.f32 %v730_v34, %v2021_v10 }
 0xc10   : > { %1737 = vtanh.f32 %v732_v36  ;;  %v733_v38 = vsub.f32 0.0, %v732_v36 }
 0xc12   : > { %v734_v39 = vmul.f32 1.442695, %v733_v38 }
 0xc14   : > { %1739 = vpow2.f32 %v734_v39 }
 0xc16   : > { %v1738_v37 = vpop.eup %1737 }
 0xc17   : > { %758 = vrot.lane.b32.xlu2 %v1738_v37, %s1894_s28 }
 0xc1a   : > { %v1740_v40 = vpop.eup %1739 }
 0xc1b   : > { %v736_v41 = vadd.f32 1.0, %v1740_v40 }
 0xc1d   : > { %1741 = vrcp.f32 %v736_v41  ;;  %v748_v46 = vand.u32 2147483648, %v736_v41  ;;  %vm742_vm12 = vweird.f32 %v736_v41  ;;  %v746_v47 = vand.u32 2147483647, %v736_v41 }
 0xc1f   : > { %v749_v49 = vor.u32 1.1754944e-38, %v748_v46  ;;  %vm747_vm15 = vcmp.eq.f32.partialorder %v746_v47, 8.507059e+37 }
 0xc23   : > { %v1742_v42 = vpop.eup %1741 }
 0xc24   : > { %v738_v35 = vmul.f32 %v1742_v42, %v736_v41  ;;  %vm743_vm11 = vweird.f32 %v1742_v42 }
 0xc25   : > { %vm744_vm13 = vmor %vm742_vm12, %vm743_vm11  ;;  %vm925_vm11 = vcmask 1046528  }
 0xc26   : > { %v739_v43 = vsub.f32 1.0, %v738_v35 }
 0xc28   : > { %v740_v44 = vmul.f32 %v1742_v42, %v739_v43 }
 0xc2a   : > { %v741_v45 = vadd.f32 %v1742_v42, %v740_v44 }
 0xc2c   : > { %v745_v48 = vsel %vm744_vm13, %v1742_v42, %v741_v45 }
 0xc2d   : > { %v750_v51 = vsel %vm747_vm15, %v749_v49, %v745_v48 }
 0xc2e   : > { %v756_v54 = vmul.f32 %v754_v53, %v750_v51 }
 0xc71   : > { %v759_v50 = vpop.permute.xlu2 %758 }
 0xc72   : > { %v761_v52 = vmul.f32 %v759_v50, %v750_v51 }
 0xc74   : > { %763 = vrot.lane.b32.xlu0 %v761_v52, %s1895_s29 }
 0xce6   : > { %v764_v55 = vpop.permute.xlu0 %763 }
 0xce7   : > { %v766_v56 = vadd.f32 %v764_v55, %v756_v54  ;;  %v934_v55 = vld [vmem:[%s2211_s5 + $0x18] sm:$0xff] }
 0xce8   : > { %976 = vmatpush.msra.mxu2 %v934_v55  ;;  %1039 = vmatpush.msra.mxu3 %v934_v55 }
 0xce9   : > { %1743 = vtanh.f32 %v766_v56  ;;  %v824_v21 = vrot.slane %v766_v56, 7  ;;  %v933_v56 = vld [vmem:[%s2211_s5 + $0x10] sm:$0xff]  ;;  %1109 = vmatpush.msrb.mxu0 %v934_v55 }
 0xcea   : > { %977 = vmatpush.msra.mxu2 %v933_v56  ;;  %1040 = vmatpush.msra.mxu3 %v933_v56 }
 0xceb   : > { %1110 = vmatpush.msrb.mxu0 %v933_v56 }
 0xcef   : > { %v1744_v57 = vpop.eup %1743 }
 0xcf0   : > { %769 = vrot.lane.b32.xlu1 %v1744_v57, %s1894_s28  ;;  %v930_v57 = vld [vmem:[%s2210_s4 + $0x18] sm:$0xff] }
 0xcf1   : > { %956 = vmatpush.msra.mxu1 %v930_v57 }
 0xd62   : > { %v770_v58 = vpop.permute.xlu1 %769 }
 0xd63   : > { %v772_v59 = vmul.f32 %v770_v58, %v750_v51  ;;  %v929_v58 = vld [vmem:[%s2210_s4 + $0x10] sm:$0xff] }
 0xd64   : > { %957 = vmatpush.msra.mxu1 %v929_v58 }
 0xd65   : > { %v774_v60 = vrot.slane %v772_v59, 5  ;;  %v922_v61 = vsel %vm921_vm0, %v920_v31, %v772_v59  ;;  %v932_v59 = vld [vmem:[%s2211_s5 + $0x8] sm:$0xff] }
 0xd66   : > { %978 = vmatpush.msra.mxu2 %v932_v59  ;;  %1041 = vmatpush.msra.mxu3 %v932_v59 }
 0xd67   : > { %775 = vrot.lane.b32.xlu2 %v774_v60, %s1895_s29  ;;  %v928_v60 = vld [vmem:[%s2210_s4 + $0x8] sm:$0xff]  ;;  %1111 = vmatpush.msrb.mxu0 %v932_v59 }
 0xd68   : > { %958 = vmatpush.msra.mxu1 %v928_v60 }
 0xdc1   : > { %v776_v62 = vpop.permute.xlu2 %775 }
 0xdc2   : > { %1640 = vmatmul.msk.f32.vlgmr.msrb.gmra.mxu3 %vm362_vm5, %v776_v62  ;;  %v927_v62 = vld [vmem:[%s2210_s4] sm:$0xff] }
 0xdc3   : > { %959 = vmatpush.msra.mxu1 %v927_v62 }
 0xdc5   : > { %1179 = vmatpush.msrb.mxu1 %v934_v55 }
 0xdc7   : > { %1180 = vmatpush.msrb.mxu1 %v933_v56 }
 0xdc9   : > { %1181 = vmatpush.msrb.mxu1 %v932_v59 }
 0xe45   : > { %v796_v63 = vpop.f32.mrf.mxu3 }
 0xe46   : > { %v800_v0 = vrot.slane %v796_v63, 2 }
 0xe48   : > { %v802_v1 = vadd.f32 %v800_v0, %v2021_v10 }
 0xe4a   : > { %1745 = vtanh.f32 %v802_v1  ;;  %v803_v3 = vsub.f32 0.0, %v802_v1 }
 0xe4c   : > { %v804_v4 = vmul.f32 1.442695, %v803_v3 }
 0xe4e   : > { %1747 = vpow2.f32 %v804_v4 }
 0xe50   : > { %v1746_v2 = vpop.eup %1745 }
 0xe51   : > { %828 = vrot.lane.b32.xlu0 %v1746_v2, %s1894_s28  ;;  %v1696_v2 = vld [vmem:[%s2212_s6] ss:$0 sm:$0xff] }
 0xe54   : > { %v1748_v5 = vpop.eup %1747 }
 0xe55   : > { %v806_v6 = vadd.f32 1.0, %v1748_v5 }
 0xe57   : > { %1749 = vrcp.f32 %v806_v6  ;;  %v818_v14 = vand.u32 2147483648, %v806_v6  ;;  %vm812_vm2 = vweird.f32 %v806_v6  ;;  %v816_v15 = vand.u32 2147483647, %v806_v6 }
 0xe59   : > { %v819_v17 = vor.u32 1.1754944e-38, %v818_v14  ;;  %vm817_vm4 = vcmp.eq.f32.partialorder %v816_v15, 8.507059e+37 }
 0xe5d   : > { %v1750_v8 = vpop.eup %1749 }
 0xe5e   : > { %v808_v9 = vmul.f32 %v1750_v8, %v806_v6  ;;  %vm813_vm1 = vweird.f32 %v1750_v8 }
 0xe5f   : > { %vm814_vm3 = vmor %vm812_vm2, %vm813_vm1 }
 0xe60   : > { %v809_v11 = vsub.f32 1.0, %v808_v9 }
 0xe62   : > { %v810_v12 = vmul.f32 %v1750_v8, %v809_v11 }
 0xe64   : > { %v811_v13 = vadd.f32 %v1750_v8, %v810_v12 }
 0xe66   : > { %v815_v16 = vsel %vm814_vm3, %v1750_v8, %v811_v13 }
 0xe67   : > { %v820_v19 = vsel %vm817_vm4, %v819_v17, %v815_v16 }
 0xe68   : > { %v826_v22 = vmul.f32 %v824_v21, %v820_v19 }
 0xec3   : > { %v829_v18 = vpop.permute.xlu0 %828 }
 0xec4   : > { %v831_v20 = vmul.f32 %v829_v18, %v820_v19 }
 0xec6   : > { %833 = vrot.lane.b32.xlu1 %v831_v20, %s1895_s29 }
 0xf38   : > { %v834_v23 = vpop.permute.xlu1 %833 }
 0xf39   : > { %v836_v24 = vadd.f32 %v834_v23, %v826_v22 }
 0xf3b   : > { %1751 = vtanh.f32 %v836_v24  ;;  %v894_v50 = vrot.slane %v836_v24, 7 }
 0xf41   : > { %v1752_v25 = vpop.eup %1751 }
 0xf42   : > { %839 = vrot.lane.b32.xlu2 %v1752_v25, %s1894_s28 }
 0xf9c   : > { %v840_v26 = vpop.permute.xlu2 %839 }
 0xf9d   : > { %v842_v27 = vmul.f32 %v840_v26, %v820_v19 }
 0xf9f   : > { %v844_v28 = vrot.slane %v842_v27, 6  ;;  %v2068_v29 = vsel %vm923_vm6, %v922_v61, %v842_v27  ;;  %v931_v61 = vld [vmem:[%s2211_s5] sm:$0xff] }
 0xfa0   : > { %979 = vmatpush.msra.mxu2 %v931_v61  ;;  %1042 = vmatpush.msra.mxu3 %v931_v61 }
 0xfa1   : > { %845 = vrot.lane.b32.xlu0 %v844_v28, %s1895_s29  ;;  %980 = vmatmul.f32.vlgmr.msra.gmra.mxu2 %v1893_v7 }
 0xfa2   : > { %1112 = vmatpush.msrb.mxu0 %v931_v61  ;;  %1249 = vmatpush.msrb.mxu2 %v934_v55 }
 0xfa3   : > { %1319 = vmatpush.msrb.mxu3 %v934_v55  ;;  %1182 = vmatpush.msrb.mxu1 %v931_v61 }
 0xfa4   : > { %1250 = vmatpush.msrb.mxu2 %v933_v56 }
 0xfa5   : > { %1320 = vmatpush.msrb.mxu3 %v933_v56 }
 0xfa6   : > { %1251 = vmatpush.msrb.mxu2 %v932_v59 }
 0xfa7   : > { %1321 = vmatpush.msrb.mxu3 %v932_v59 }
 0xfa8   : > { %1252 = vmatpush.msrb.mxu2 %v931_v61 }
 0xfa9   : > { %1322 = vmatpush.msrb.mxu3 %v931_v61 }
0x1013   : > { %v846_v30 = vpop.permute.xlu0 %845 }
0x1014   : > { %1641 = vmatmul.msk.f32.vlgmr.msra.gmra.mxu0 %vm362_vm5, %v846_v30 }
0x1015   : > { %1389 = vmatpush.msra.mxu0 %v934_v55 }
0x1017   : > { %1390 = vmatpush.msra.mxu0 %v933_v56 }
0x1019   : > { %1391 = vmatpush.msra.mxu0 %v932_v59 }
0x101b   : > { %1392 = vmatpush.msra.mxu0 %v931_v61 }
0x1024   : > { %v981_v4 = vpop.f32.mrf.mxu2 }
0x1091   : > { %v866_v31 = vpop.f32.mrf.mxu0 }
0x1092   : > { %v870_v32 = vrot.slane %v866_v31, 1 }
0x1094   : > { %v872_v33 = vadd.f32 %v870_v32, %v2021_v10 }
0x1096   : > { %1753 = vtanh.f32 %v872_v33  ;;  %v873_v36 = vsub.f32 0.0, %v872_v33 }
0x1098   : > { %v874_v37 = vmul.f32 1.442695, %v873_v36 }
0x109a   : > { %1755 = vpow2.f32 %v874_v37 }
0x109c   : > { %v1754_v34 = vpop.eup %1753 }
0x109d   : > { %898 = vrot.lane.b32.xlu1 %v1754_v34, %s1894_s28 }
0x10a0   : > { %v1756_v38 = vpop.eup %1755 }
0x10a1   : > { %v876_v39 = vadd.f32 1.0, %v1756_v38 }
0x10a3   : > { %1757 = vrcp.f32 %v876_v39  ;;  %v888_v44 = vand.u32 2147483648, %v876_v39  ;;  %vm882_vm8 = vweird.f32 %v876_v39  ;;  %v886_v45 = vand.u32 2147483647, %v876_v39 }
0x10a5   : > { %v889_v46 = vor.u32 1.1754944e-38, %v888_v44  ;;  %vm887_vm10 = vcmp.eq.f32.partialorder %v886_v45, 8.507059e+37 }
0x10a9   : > { %v1758_v40 = vpop.eup %1757 }
0x10aa   : > { %v878_v41 = vmul.f32 %v1758_v40, %v876_v39  ;;  %vm883_vm7 = vweird.f32 %v1758_v40 }
0x10ab   : > { %vm884_vm9 = vmor %vm882_vm8, %vm883_vm7 }
0x10ac   : > { %v879_v42 = vsub.f32 1.0, %v878_v41 }
0x10ae   : > { %v880_v35 = vmul.f32 %v1758_v40, %v879_v42 }
0x10b0   : > { %v881_v43 = vadd.f32 %v1758_v40, %v880_v35 }
0x10b2   : > { %v885_v10 = vsel %vm884_vm9, %v1758_v40, %v881_v43 }
0x10b3   : > { %v890_v48 = vsel %vm887_vm10, %v889_v46, %v885_v10 }
0x10b4   : > { %v896_v51 = vmul.f32 %v894_v50, %v890_v48 }
0x110f   : > { %v899_v47 = vpop.permute.xlu1 %898 }
0x1110   : > { %v901_v49 = vmul.f32 %v899_v47, %v890_v48 }
0x1112   : > { %903 = vrot.lane.b32.xlu2 %v901_v49, %s1895_s29 }
0x116c   : > { %v904_v52 = vpop.permute.xlu2 %903 }
0x116d   : > { %v906_v53 = vadd.f32 %v904_v52, %v896_v51 }
0x116f   : > { %1759 = vtanh.f32 %v906_v53 }
0x1175   : > { %v1760_v54 = vpop.eup %1759 }
0x1176   : > { %909 = vrot.lane.b32.xlu0 %v1760_v54, %s1894_s28 }
0x11e8   : > { %v910_v63 = vpop.permute.xlu0 %909 }
0x11e9   : > { %v912_v7 = vmul.f32 %v910_v63, %v890_v48 }
0x11eb   : > { %v926_v0 = vsel %vm925_vm11, %v2068_v29, %v912_v7 }
0x11ec   : > { %940 = vrot.lane.b32.xlu1 %v926_v0, %s1895_s29 }
0x125e   : > { %v941_v1 = vpop.permute.xlu1 %940 }
0x125f   : > { %1642 = vmatmul.msk.f32.vlgmr.msra.gmra.mxu1 %vm362_vm5, %v941_v1 }
0x1260   : > { %1459 = vmatpush.msra.mxu1 %v934_v55 }
0x1262   : > { %1460 = vmatpush.msra.mxu1 %v933_v56 }
0x1264   : > { %1461 = vmatpush.msra.mxu1 %v932_v59 }
0x1266   : > { %1462 = vmatpush.msra.mxu1 %v931_v61 }
0x12dc   : > { %v961_v3 = vpop.f32.mrf.mxu1 }
0x12dd   : > { %v2107_v5 = vadd.f32 %v1696_v2, %v961_v3 }
0x12df   : > { %v984_v6 = vadd.f32 %v981_v4, %v2107_v5 }
0x12e1   : > { %1761 = vtanh.f32 %v984_v6  ;;  %v985_v9 = vsub.f32 0.0, %v984_v6 }
0x12e3   : > { %v986_v11 = vmul.f32 1.442695, %v985_v9 }
0x12e5   : > { %1763 = vpow2.f32 %v986_v11 }
0x12e7   : > { %v1762_v8 = vpop.eup %1761 }
0x12e8   : > { %1007 = vrot.lane.b32.xlu2 %v1762_v8, %s1894_s28 }
0x12eb   : > { %v1764_v12 = vpop.eup %1763 }
0x12ec   : > { %v988_v13 = vadd.f32 1.0, %v1764_v12 }
0x12ee   : > { %1765 = vrcp.f32 %v988_v13  ;;  %v1000_v19 = vand.u32 2147483648, %v988_v13  ;;  %vm994_vm13 = vweird.f32 %v988_v13  ;;  %v998_v20 = vand.u32 2147483647, %v988_v13 }
0x12f0   : > { %v1001_v22 = vor.u32 1.1754944e-38, %v1000_v19  ;;  %vm999_vm0 = vcmp.eq.f32.partialorder %v998_v20, 8.507059e+37 }
0x12f4   : > { %v1766_v14 = vpop.eup %1765 }
0x12f5   : > { %v990_v15 = vmul.f32 %v1766_v14, %v988_v13  ;;  %vm995_vm12 = vweird.f32 %v1766_v14 }
0x12f6   : > { %vm996_vm15 = vmor %vm994_vm13, %vm995_vm12 }
0x12f7   : > { %v991_v16 = vsub.f32 1.0, %v990_v15 }
0x12f9   : > { %v992_v17 = vmul.f32 %v1766_v14, %v991_v16 }
0x12fb   : > { %v993_v18 = vadd.f32 %v1766_v14, %v992_v17 }
0x12fd   : > { %v997_v21 = vsel %vm996_vm15, %v1766_v14, %v993_v18 }
0x12fe   : > { %v1002_v24 = vsel %vm999_vm0, %v1001_v22, %v997_v21 }
0x12ff   : > { %v1005_v26 = vmul.f32 0.0, %v1002_v24 }
0x1342   : > { %v1008_v23 = vpop.permute.xlu2 %1007 }
0x1343   : > { %v1010_v25 = vmul.f32 %v1008_v23, %v1002_v24 }
0x1345   : > { %1012 = vrot.lane.b32.xlu0 %v1010_v25, %s1895_s29 }
0x13b7   : > { %v1013_v27 = vpop.permute.xlu0 %1012 }
0x13b8   : > { %v1015_v28 = vadd.f32 %v1013_v27, %v1005_v26 }
0x13ba   : > { %1767 = vtanh.f32 %v1015_v28  ;;  %v1072_v52 = vrot.slane %v1015_v28, 7 }
0x13c0   : > { %v1768_v29 = vpop.eup %1767 }
0x13c1   : > { %1018 = vrot.lane.b32.xlu1 %v1768_v29, %s1894_s28 }
0x1433   : > { %v1019_v30 = vpop.permute.xlu1 %1018 }
0x1434   : > { %v1021_v31 = vmul.f32 %v1019_v30, %v1002_v24 }
0x1436   : > { %1023 = vrot.lane.b32.xlu2 %v1021_v31, %s1895_s29 }
0x1490   : > { %v1024_v32 = vpop.permute.xlu2 %1023 }
0x1491   : > { %1643 = vmatmul.msk.f32.vlgmr.msra.gmra.mxu3 %vm362_vm5, %v1024_v32 }
0x1514   : > { %v1044_v33 = vpop.f32.mrf.mxu3 }
0x1515   : > { %v1048_v34 = vrot.slane %v1044_v33, 7 }
0x1517   : > { %v1050_v36 = vadd.f32 %v1048_v34, %v2107_v5 }
0x1519   : > { %1769 = vtanh.f32 %v1050_v36  ;;  %v1051_v38 = vsub.f32 0.0, %v1050_v36 }
0x151b   : > { %v1052_v39 = vmul.f32 1.442695, %v1051_v38 }
0x151d   : > { %1771 = vpow2.f32 %v1052_v39 }
0x151f   : > { %v1770_v37 = vpop.eup %1769 }
0x1520   : > { %1076 = vrot.lane.b32.xlu0 %v1770_v37, %s1894_s28 }
0x1523   : > { %v1772_v40 = vpop.eup %1771 }
0x1524   : > { %v1054_v41 = vadd.f32 1.0, %v1772_v40 }
0x1526   : > { %1773 = vrcp.f32 %v1054_v41  ;;  %v1066_v10 = vand.u32 2147483648, %v1054_v41  ;;  %vm1060_vm2 = vweird.f32 %v1054_v41  ;;  %v1064_v46 = vand.u32 2147483647, %v1054_v41 }
0x1528   : > { %v1067_v48 = vor.u32 1.1754944e-38, %v1066_v10  ;;  %vm1065_vm4 = vcmp.eq.f32.partialorder %v1064_v46, 8.507059e+37 }
0x152c   : > { %v1774_v42 = vpop.eup %1773 }
0x152d   : > { %v1056_v35 = vmul.f32 %v1774_v42, %v1054_v41  ;;  %vm1061_vm1 = vweird.f32 %v1774_v42 }
0x152e   : > { %vm1062_vm3 = vmor %vm1060_vm2, %vm1061_vm1 }
0x152f   : > { %v1057_v43 = vsub.f32 1.0, %v1056_v35 }
0x1531   : > { %v1058_v44 = vmul.f32 %v1774_v42, %v1057_v43 }
0x1533   : > { %v1059_v45 = vadd.f32 %v1774_v42, %v1058_v44 }
0x1535   : > { %v1063_v47 = vsel %vm1062_vm3, %v1774_v42, %v1059_v45 }
0x1536   : > { %v1068_v50 = vsel %vm1065_vm4, %v1067_v48, %v1063_v47 }
0x1537   : > { %v1074_v53 = vmul.f32 %v1072_v52, %v1068_v50 }
0x1592   : > { %v1077_v49 = vpop.permute.xlu0 %1076 }
0x1593   : > { %v1079_v51 = vmul.f32 %v1077_v49, %v1068_v50 }
0x1595   : > { %1081 = vrot.lane.b32.xlu1 %v1079_v51, %s1895_s29 }
0x1607   : > { %v1082_v54 = vpop.permute.xlu1 %1081 }
0x1608   : > { %v1084_v55 = vadd.f32 %v1082_v54, %v1074_v53 }
0x160a   : > { %1775 = vtanh.f32 %v1084_v55  ;;  %v1142_v19 = vrot.slane %v1084_v55, 7 }
0x1610   : > { %v1776_v56 = vpop.eup %1775 }
0x1611   : > { %1087 = vrot.lane.b32.xlu2 %v1776_v56, %s1894_s28 }
0x166b   : > { %v1088_v57 = vpop.permute.xlu2 %1087 }
0x166c   : > { %v1090_v58 = vmul.f32 %v1088_v57, %v1068_v50 }
0x166e   : > { %v1092_v59 = vrot.slane %v1090_v58, 1 }
0x1670   : > { %1093 = vrot.lane.b32.xlu0 %v1092_v59, %s1895_s29 }
0x16e2   : > { %v1094_v60 = vpop.permute.xlu0 %1093 }
0x16e3   : > { %1644 = vmatmul.msk.f32.vlgmr.msrb.gmra.mxu0 %vm362_vm5, %v1094_v60 }
0x1760   : > { %v1114_v61 = vpop.f32.mrf.mxu0 }
0x1761   : > { %v1118_v62 = vrot.slane %v1114_v61, 6 }
0x1763   : > { %v1120_v63 = vadd.f32 %v1118_v62, %v2107_v5 }
0x1765   : > { %1777 = vtanh.f32 %v1120_v63  ;;  %v1121_v0 = vsub.f32 0.0, %v1120_v63 }
0x1767   : > { %v1122_v1 = vmul.f32 1.442695, %v1121_v0 }
0x1769   : > { %1779 = vpow2.f32 %v1122_v1 }
0x176b   : > { %v1778_v7 = vpop.eup %1777 }
0x176c   : > { %1146 = vrot.lane.b32.xlu1 %v1778_v7, %s1894_s28 }
0x176f   : > { %v1780_v2 = vpop.eup %1779 }
0x1770   : > { %v1124_v3 = vadd.f32 1.0, %v1780_v2 }
0x1772   : > { %1781 = vrcp.f32 %v1124_v3  ;;  %v1136_v12 = vand.u32 2147483648, %v1124_v3  ;;  %vm1130_vm7 = vweird.f32 %v1124_v3  ;;  %v1134_v13 = vand.u32 2147483647, %v1124_v3 }
0x1774   : > { %v1137_v15 = vor.u32 1.1754944e-38, %v1136_v12  ;;  %vm1135_vm9 = vcmp.eq.f32.partialorder %v1134_v13, 8.507059e+37 }
0x1778   : > { %v1782_v4 = vpop.eup %1781 }
0x1779   : > { %v1126_v6 = vmul.f32 %v1782_v4, %v1124_v3  ;;  %vm1131_vm6 = vweird.f32 %v1782_v4 }
0x177a   : > { %vm1132_vm8 = vmor %vm1130_vm7, %vm1131_vm6 }
0x177b   : > { %v1127_v8 = vsub.f32 1.0, %v1126_v6 }
0x177d   : > { %v1128_v9 = vmul.f32 %v1782_v4, %v1127_v8 }
0x177f   : > { %v1129_v11 = vadd.f32 %v1782_v4, %v1128_v9 }
0x1781   : > { %v1133_v14 = vsel %vm1132_vm8, %v1782_v4, %v1129_v11 }
0x1782   : > { %v1138_v17 = vsel %vm1135_vm9, %v1137_v15, %v1133_v14 }
0x1783   : > { %v1144_v20 = vmul.f32 %v1142_v19, %v1138_v17 }
0x17de   : > { %v1147_v16 = vpop.permute.xlu1 %1146 }
0x17df   : > { %v1149_v18 = vmul.f32 %v1147_v16, %v1138_v17 }
0x17e1   : > { %1151 = vrot.lane.b32.xlu2 %v1149_v18, %s1895_s29 }
0x183b   : > { %v1152_v21 = vpop.permute.xlu2 %1151 }
0x183c   : > { %v1154_v22 = vadd.f32 %v1152_v21, %v1144_v20 }
0x183e   : > { %1783 = vtanh.f32 %v1154_v22  ;;  %v1212_v47 = vrot.slane %v1154_v22, 7 }
0x1844   : > { %v1784_v23 = vpop.eup %1783 }
0x1845   : > { %1157 = vrot.lane.b32.xlu0 %v1784_v23, %s1894_s28 }
0x18b7   : > { %v1158_v24 = vpop.permute.xlu0 %1157 }
0x18b8   : > { %v1160_v25 = vmul.f32 %v1158_v24, %v1138_v17 }
0x18ba   : > { %v1162_v26 = vrot.slane %v1160_v25, 2 }
0x18bc   : > { %1163 = vrot.lane.b32.xlu1 %v1162_v26, %s1895_s29 }
0x192e   : > { %v1164_v27 = vpop.permute.xlu1 %1163 }
0x192f   : > { %1645 = vmatmul.msk.f32.vlgmr.msrb.gmra.mxu1 %vm362_vm5, %v1164_v27 }
0x19ac   : > { %v1184_v28 = vpop.f32.mrf.mxu1 }
0x19ad   : > { %v1188_v29 = vrot.slane %v1184_v28, 5 }
0x19af   : > { %v1190_v30 = vadd.f32 %v1188_v29, %v2107_v5 }
0x19b1   : > { %1785 = vtanh.f32 %v1190_v30  ;;  %v1191_v32 = vsub.f32 0.0, %v1190_v30 }
0x19b3   : > { %v1192_v33 = vmul.f32 1.442695, %v1191_v32 }
0x19b5   : > { %1787 = vpow2.f32 %v1192_v33 }
0x19b7   : > { %v1786_v31 = vpop.eup %1785 }
0x19b8   : > { %1216 = vrot.lane.b32.xlu2 %v1786_v31, %s1894_s28 }
0x19bb   : > { %v1788_v34 = vpop.eup %1787 }
0x19bc   : > { %v1194_v36 = vadd.f32 1.0, %v1788_v34 }
0x19be   : > { %1789 = vrcp.f32 %v1194_v36  ;;  %v1206_v42 = vand.u32 2147483648, %v1194_v36  ;;  %vm1200_vm11 = vweird.f32 %v1194_v36  ;;  %v1204_v35 = vand.u32 2147483647, %v1194_v36 }
0x19c0   : > { %v1207_v44 = vor.u32 1.1754944e-38, %v1206_v42  ;;  %vm1205_vm13 = vcmp.eq.f32.partialorder %v1204_v35, 8.507059e+37 }
0x19c4   : > { %v1790_v37 = vpop.eup %1789 }
0x19c5   : > { %v1196_v38 = vmul.f32 %v1790_v37, %v1194_v36  ;;  %vm1201_vm10 = vweird.f32 %v1790_v37 }
0x19c6   : > { %vm1202_vm12 = vmor %vm1200_vm11, %vm1201_vm10 }
0x19c7   : > { %v1197_v39 = vsub.f32 1.0, %v1196_v38 }
0x19c9   : > { %v1198_v40 = vmul.f32 %v1790_v37, %v1197_v39 }
0x19cb   : > { %v1199_v41 = vadd.f32 %v1790_v37, %v1198_v40 }
0x19cd   : > { %v1203_v43 = vsel %vm1202_vm12, %v1790_v37, %v1199_v41 }
0x19ce   : > { %v1208_v10 = vsel %vm1205_vm13, %v1207_v44, %v1203_v43 }
0x19cf   : > { %v1214_v48 = vmul.f32 %v1212_v47, %v1208_v10 }
0x1a12   : > { %v1217_v45 = vpop.permute.xlu2 %1216 }
0x1a13   : > { %v1219_v46 = vmul.f32 %v1217_v45, %v1208_v10 }
0x1a15   : > { %1221 = vrot.lane.b32.xlu0 %v1219_v46, %s1895_s29 }
0x1a87   : > { %v1222_v49 = vpop.permute.xlu0 %1221 }
0x1a88   : > { %v1224_v50 = vadd.f32 %v1222_v49, %v1214_v48 }
0x1a8a   : > { %1791 = vtanh.f32 %v1224_v50  ;;  %v1282_v14 = vrot.slane %v1224_v50, 7 }
0x1a90   : > { %v1792_v51 = vpop.eup %1791 }
0x1a91   : > { %1227 = vrot.lane.b32.xlu1 %v1792_v51, %s1894_s28 }
0x1b03   : > { %v1228_v52 = vpop.permute.xlu1 %1227 }
0x1b04   : > { %v1230_v53 = vmul.f32 %v1228_v52, %v1208_v10 }
0x1b06   : > { %v1232_v54 = vrot.slane %v1230_v53, 3 }
0x1b08   : > { %1233 = vrot.lane.b32.xlu2 %v1232_v54, %s1895_s29 }
0x1b62   : > { %v1234_v55 = vpop.permute.xlu2 %1233 }
0x1b63   : > { %1646 = vmatmul.msk.f32.vlgmr.msrb.gmra.mxu2 %vm362_vm5, %v1234_v55 }
0x1be6   : > { %v1254_v56 = vpop.f32.mrf.mxu2 }
0x1be7   : > { %v1258_v57 = vrot.slane %v1254_v56, 4 }
0x1be9   : > { %v1260_v58 = vadd.f32 %v1258_v57, %v2107_v5 }
0x1beb   : > { %1793 = vtanh.f32 %v1260_v58  ;;  %v1261_v60 = vsub.f32 0.0, %v1260_v58 }
0x1bed   : > { %v1262_v61 = vmul.f32 1.442695, %v1261_v60 }
0x1bef   : > { %1795 = vpow2.f32 %v1262_v61 }
0x1bf1   : > { %v1794_v59 = vpop.eup %1793 }
0x1bf2   : > { %1286 = vrot.lane.b32.xlu0 %v1794_v59, %s1894_s28 }
0x1bf5   : > { %v1796_v62 = vpop.eup %1795 }
0x1bf6   : > { %v1264_v63 = vadd.f32 1.0, %v1796_v62 }
0x1bf8   : > { %1797 = vrcp.f32 %v1264_v63  ;;  %v1276_v4 = vand.u32 2147483648, %v1264_v63  ;;  %vm1270_vm0 = vweird.f32 %v1264_v63  ;;  %v1274_v6 = vand.u32 2147483647, %v1264_v63 }
0x1bfa   : > { %v1277_v9 = vor.u32 1.1754944e-38, %v1276_v4  ;;  %vm1275_vm2 = vcmp.eq.f32.partialorder %v1274_v6, 8.507059e+37 }
0x1bfe   : > { %v1798_v7 = vpop.eup %1797 }
0x1bff   : > { %v1266_v0 = vmul.f32 %v1798_v7, %v1264_v63  ;;  %vm1271_vm15 = vweird.f32 %v1798_v7 }
0x1c00   : > { %vm1272_vm1 = vmor %vm1270_vm0, %vm1271_vm15 }
0x1c01   : > { %v1267_v1 = vsub.f32 1.0, %v1266_v0 }
0x1c03   : > { %v1268_v2 = vmul.f32 %v1798_v7, %v1267_v1 }
0x1c05   : > { %v1269_v3 = vadd.f32 %v1798_v7, %v1268_v2 }
0x1c07   : > { %v1273_v8 = vsel %vm1272_vm1, %v1798_v7, %v1269_v3 }
0x1c08   : > { %v1278_v12 = vsel %vm1275_vm2, %v1277_v9, %v1273_v8 }
0x1c09   : > { %v1284_v15 = vmul.f32 %v1282_v14, %v1278_v12 }
0x1c64   : > { %v1287_v11 = vpop.permute.xlu0 %1286 }
0x1c65   : > { %v1289_v13 = vmul.f32 %v1287_v11, %v1278_v12 }
0x1c67   : > { %1291 = vrot.lane.b32.xlu1 %v1289_v13, %s1895_s29 }
0x1cd9   : > { %v1292_v16 = vpop.permute.xlu1 %1291 }
0x1cda   : > { %v1294_v17 = vadd.f32 %v1292_v16, %v1284_v15 }
0x1cdc   : > { %1799 = vtanh.f32 %v1294_v17  ;;  %v1352_v43 = vrot.slane %v1294_v17, 7 }
0x1ce2   : > { %v1800_v18 = vpop.eup %1799 }
0x1ce3   : > { %1297 = vrot.lane.b32.xlu2 %v1800_v18, %s1894_s28 }
0x1d3d   : > { %v1298_v19 = vpop.permute.xlu2 %1297 }
0x1d3e   : > { %v1300_v20 = vmul.f32 %v1298_v19, %v1278_v12 }
0x1d40   : > { %v1302_v21 = vrot.slane %v1300_v20, 4 }
0x1d42   : > { %1303 = vrot.lane.b32.xlu0 %v1302_v21, %s1895_s29 }
0x1db4   : > { %v1304_v22 = vpop.permute.xlu0 %1303 }
0x1db5   : > { %1647 = vmatmul.msk.f32.vlgmr.msrb.gmra.mxu3 %vm362_vm5, %v1304_v22 }
0x1e38   : > { %v1324_v23 = vpop.f32.mrf.mxu3 }
0x1e39   : > { %v1328_v24 = vrot.slane %v1324_v23, 3 }
0x1e3b   : > { %v1330_v25 = vadd.f32 %v1328_v24, %v2107_v5 }
0x1e3d   : > { %1801 = vtanh.f32 %v1330_v25  ;;  %v1331_v27 = vsub.f32 0.0, %v1330_v25 }
0x1e3f   : > { %v1332_v28 = vmul.f32 1.442695, %v1331_v27 }
0x1e41   : > { %1803 = vpow2.f32 %v1332_v28 }
0x1e43   : > { %v1802_v26 = vpop.eup %1801 }
0x1e44   : > { %1356 = vrot.lane.b32.xlu1 %v1802_v26, %s1894_s28 }
0x1e47   : > { %v1804_v29 = vpop.eup %1803 }
0x1e48   : > { %v1334_v30 = vadd.f32 1.0, %v1804_v29 }
0x1e4a   : > { %1805 = vrcp.f32 %v1334_v30  ;;  %v1346_v37 = vand.u32 2147483648, %v1334_v30  ;;  %vm1340_vm4 = vweird.f32 %v1334_v30  ;;  %v1344_v38 = vand.u32 2147483647, %v1334_v30 }
0x1e4c   : > { %v1347_v40 = vor.u32 1.1754944e-38, %v1346_v37  ;;  %vm1345_vm7 = vcmp.eq.f32.partialorder %v1344_v38, 8.507059e+37 }
0x1e50   : > { %v1806_v31 = vpop.eup %1805 }
0x1e51   : > { %v1336_v32 = vmul.f32 %v1806_v31, %v1334_v30  ;;  %vm1341_vm3 = vweird.f32 %v1806_v31 }
0x1e52   : > { %vm1342_vm6 = vmor %vm1340_vm4, %vm1341_vm3 }
0x1e53   : > { %v1337_v33 = vsub.f32 1.0, %v1336_v32 }
0x1e55   : > { %v1338_v34 = vmul.f32 %v1806_v31, %v1337_v33 }
0x1e57   : > { %v1339_v36 = vadd.f32 %v1806_v31, %v1338_v34 }
0x1e59   : > { %v1343_v39 = vsel %vm1342_vm6, %v1806_v31, %v1339_v36 }
0x1e5a   : > { %v1348_v42 = vsel %vm1345_vm7, %v1347_v40, %v1343_v39 }
0x1e5b   : > { %v1354_v44 = vmul.f32 %v1352_v43, %v1348_v42  ;;  %v1513_v43 = vld [vmem:[%s2213_s7 + $0x10] sm:$0xff] }
0x1eb6   : > { %v1357_v41 = vpop.permute.xlu1 %1356 }
0x1eb7   : > { %v1359_v35 = vmul.f32 %v1357_v41, %v1348_v42 }
0x1eb9   : > { %1361 = vrot.lane.b32.xlu2 %v1359_v35, %s1895_s29  ;;  %v1514_v35 = vld [vmem:[%s2213_s7 + $0x18] sm:$0xff] }
0x1eba   : > { %1534 = vmatpush.msra.mxu2 %v1514_v35 }
0x1ebc   : > { %1535 = vmatpush.msra.mxu2 %v1513_v43 }
0x1f13   : > { %v1362_v45 = vpop.permute.xlu2 %1361 }
0x1f14   : > { %v1364_v10 = vadd.f32 %v1362_v45, %v1354_v44  ;;  %v1512_v44 = vld [vmem:[%s2213_s7 + $0x8] sm:$0xff]  ;;  %v1511_v45 = vld [vmem:[%s2213_s7] sm:$0xff] }
0x1f15   : > { %1536 = vmatpush.msra.mxu2 %v1512_v44 }
0x1f16   : > { %1807 = vtanh.f32 %v1364_v10  ;;  %v1422_v8 = vrot.slane %v1364_v10, 7 }
0x1f17   : > { %1537 = vmatpush.msra.mxu2 %v1511_v45 }
0x1f1c   : > { %v1808_v46 = vpop.eup %1807 }
0x1f1d   : > { %1367 = vrot.lane.b32.xlu0 %v1808_v46, %s1894_s28 }
0x1f8f   : > { %v1368_v47 = vpop.permute.xlu0 %1367 }
0x1f90   : > { %v1370_v48 = vmul.f32 %v1368_v47, %v1348_v42 }
0x1f92   : > { %v1372_v49 = vrot.slane %v1370_v48, 5 }
0x1f94   : > { %1373 = vrot.lane.b32.xlu1 %v1372_v49, %s1895_s29  ;;  %v1542_v49 = vlaneseq }
0x2006   : > { %v1374_v50 = vpop.permute.xlu1 %1373 }
0x2007   : > { %1648 = vmatmul.msk.f32.vlgmr.msra.gmra.mxu0 %vm362_vm5, %v1374_v50  ;;  %v1543_v50 = vand.u32 127, %v1542_v49 }
0x2009   : > { %vm1544_vm1 = vcmp.lt.s32.totalorder %v1543_v50, 6 }
0x2084   : > { %v1394_v51 = vpop.f32.mrf.mxu0 }
0x2085   : > { %v1398_v52 = vrot.slane %v1394_v51, 2  ;;  %v1515_v51 = vld [vmem:[%s2214_s8] sm:$0x1] }
0x2087   : > { %v1400_v53 = vadd.f32 %v1398_v52, %v2107_v5 }
0x2089   : > { %1809 = vtanh.f32 %v1400_v53  ;;  %v1401_v55 = vsub.f32 0.0, %v1400_v53 }
0x208b   : > { %v1402_v56 = vmul.f32 1.442695, %v1401_v55 }
0x208d   : > { %1811 = vpow2.f32 %v1402_v56 }
0x208f   : > { %v1810_v54 = vpop.eup %1809 }
0x2090   : > { %1426 = vrot.lane.b32.xlu2 %v1810_v54, %s1894_s28 }
0x2093   : > { %v1812_v57 = vpop.eup %1811 }
0x2094   : > { %v1404_v58 = vadd.f32 1.0, %v1812_v57 }
0x2096   : > { %1813 = vrcp.f32 %v1404_v58  ;;  %v1416_v7 = vand.u32 2147483648, %v1404_v58  ;;  %vm1410_vm9 = vweird.f32 %v1404_v58  ;;  %v1414_v0 = vand.u32 2147483647, %v1404_v58 }
0x2098   : > { %v1417_v2 = vor.u32 1.1754944e-38, %v1416_v7  ;;  %vm1415_vm11 = vcmp.eq.f32.partialorder %v1414_v0, 8.507059e+37 }
0x209c   : > { %v1814_v59 = vpop.eup %1813 }
0x209d   : > { %v1406_v60 = vmul.f32 %v1814_v59, %v1404_v58  ;;  %vm1411_vm8 = vweird.f32 %v1814_v59 }
0x209e   : > { %vm1412_vm10 = vmor %vm1410_vm9, %vm1411_vm8 }
0x209f   : > { %v1407_v61 = vsub.f32 1.0, %v1406_v60 }
0x20a1   : > { %v1408_v62 = vmul.f32 %v1814_v59, %v1407_v61 }
0x20a3   : > { %v1409_v63 = vadd.f32 %v1814_v59, %v1408_v62 }
0x20a5   : > { %v1413_v1 = vsel %vm1412_vm10, %v1814_v59, %v1409_v63 }
0x20a6   : > { %v1418_v4 = vsel %vm1415_vm11, %v1417_v2, %v1413_v1 }
0x20a7   : > { %v1424_v9 = vmul.f32 %v1422_v8, %v1418_v4 }
0x20ea   : > { %v1427_v3 = vpop.permute.xlu2 %1426 }
0x20eb   : > { %v1429_v6 = vmul.f32 %v1427_v3, %v1418_v4 }
0x20ed   : > { %1431 = vrot.lane.b32.xlu0 %v1429_v6, %s1895_s29 }
0x215f   : > { %v1432_v11 = vpop.permute.xlu0 %1431 }
0x2160   : > { %v1434_v12 = vadd.f32 %v1432_v11, %v1424_v9 }
0x2162   : > { %1815 = vtanh.f32 %v1434_v12  ;;  %v1492_v38 = vrot.slane %v1434_v12, 7 }
0x2168   : > { %v1816_v13 = vpop.eup %1815 }
0x2169   : > { %1437 = vrot.lane.b32.xlu1 %v1816_v13, %s1894_s28 }
0x21db   : > { %v1438_v14 = vpop.permute.xlu1 %1437 }
0x21dc   : > { %v1440_v15 = vmul.f32 %v1438_v14, %v1418_v4 }
0x21de   : > { %v1442_v16 = vrot.slane %v1440_v15, 6 }
0x21e0   : > { %1443 = vrot.lane.b32.xlu2 %v1442_v16, %s1895_s29 }
0x223a   : > { %v1444_v17 = vpop.permute.xlu2 %1443 }
0x223b   : > { %1649 = vmatmul.msk.f32.vlgmr.msra.gmra.mxu1 %vm362_vm5, %v1444_v17 }
0x22b8   : > { %v1464_v18 = vpop.f32.mrf.mxu1 }
0x22b9   : > { %v1468_v19 = vrot.slane %v1464_v18, 1 }
0x22bb   : > { %v1470_v20 = vadd.f32 %v1468_v19, %v2107_v5 }
0x22bd   : > { %1817 = vtanh.f32 %v1470_v20  ;;  %v1471_v22 = vsub.f32 0.0, %v1470_v20 }
0x22bf   : > { %v1472_v23 = vmul.f32 1.442695, %v1471_v22 }
0x22c1   : > { %1819 = vpow2.f32 %v1472_v23 }
0x22c3   : > { %v1818_v21 = vpop.eup %1817 }
0x22c4   : > { %1496 = vrot.lane.b32.xlu0 %v1818_v21, %s1894_s28 }
0x22c7   : > { %v1820_v24 = vpop.eup %1819 }
0x22c8   : > { %v1474_v25 = vadd.f32 1.0, %v1820_v24 }
0x22ca   : > { %1821 = vrcp.f32 %v1474_v25  ;;  %v1486_v31 = vand.u32 2147483648, %v1474_v25  ;;  %vm1480_vm13 = vweird.f32 %v1474_v25  ;;  %v1484_v32 = vand.u32 2147483647, %v1474_v25 }
0x22cc   : > { %v1487_v33 = vor.u32 1.1754944e-38, %v1486_v31  ;;  %vm1485_vm0 = vcmp.eq.f32.partialorder %v1484_v32, 8.507059e+37 }
0x22d0   : > { %v1822_v26 = vpop.eup %1821 }
0x22d1   : > { %v1476_v27 = vmul.f32 %v1822_v26, %v1474_v25  ;;  %vm1481_vm12 = vweird.f32 %v1822_v26 }
0x22d2   : > { %vm1482_vm15 = vmor %vm1480_vm13, %vm1481_vm12 }
0x22d3   : > { %v1477_v28 = vsub.f32 1.0, %v1476_v27 }
0x22d5   : > { %v1478_v29 = vmul.f32 %v1822_v26, %v1477_v28 }
0x22d7   : > { %v1479_v30 = vadd.f32 %v1822_v26, %v1478_v29 }
0x22d9   : > { %v1483_v5 = vsel %vm1482_vm15, %v1822_v26, %v1479_v30 }
0x22da   : > { %v1488_v36 = vsel %vm1485_vm0, %v1487_v33, %v1483_v5 }
0x22db   : > { %v1494_v39 = vmul.f32 %v1492_v38, %v1488_v36 }
0x2336   : > { %v1497_v34 = vpop.permute.xlu0 %1496 }
0x2337   : > { %v1499_v37 = vmul.f32 %v1497_v34, %v1488_v36 }
0x2339   : > { %1501 = vrot.lane.b32.xlu1 %v1499_v37, %s1895_s29 }
0x23ab   : > { %v1502_v40 = vpop.permute.xlu1 %1501 }
0x23ac   : > { %v1504_v41 = vadd.f32 %v1502_v40, %v1494_v39 }
0x23ae   : > { %1823 = vtanh.f32 %v1504_v41 }
0x23b4   : > { %v1824_v42 = vpop.eup %1823 }
0x23b5   : > { %1507 = vrot.lane.b32.xlu2 %v1824_v42, %s1894_s28 }
0x240f   : > { %v1508_v10 = vpop.permute.xlu2 %1507 }
0x2410   : > { %v1510_v46 = vmul.f32 %v1508_v10, %v1488_v36 }
0x2412   : > { %v1517_v47 = vrot.slane %v1510_v46, 7 }
0x2414   : > { %1518 = vrot.lane.b32.xlu0 %v1517_v47, %s1895_s29  ;;  %s321_s29 = sand.u32 1, %s1883_s10  }
0x2415   : > { %s322_s14 = scalar_lea.vmem [#allocation2], %s321_s29  ;;  %s1562_s21 = scalar_lea.sflag [#allocation3], %s321_s29 }
0x2416   : > { %s1572_s16 = sshll.u32 %s322_s14, 4  ;;  %s1573_s16 = int_to_ptr.vmem [resolvable:$true] %s1572_s16 }
0x2486   : > { %v1519_v48 = vpop.permute.xlu0 %1518 }
0x2487   : > { %1650 = vmatmul.msk.f32.vlgmr.msra.gmra.mxu2 %vm362_vm5, %v1519_v48  ;;  %vm1559_vm5 = vcmask 40960  }
0x250a   : > { %v1539_v52 = vpop.f32.mrf.mxu2 }
0x250b   : > { %v1540_v53 = vadd.f32 %v1539_v52, %v1515_v51 }
0x250d   : > { %v1545_v54 = vsel %vm1544_vm1, %v1540_v53, -1e+30 }
0x250e   : > { %v1546_v55 = vsel %vm913_vm14, %v1545_v54, -inf }
0x250f   : > { %1547 = vmax.xlane.f32.xlu1 %v1546_v55 }
0x2582   : > { %v1548_v56 = vpop.xlane.xlu1 %1547 }
0x2583   : > { %v1549_v57 = vsub.f32 %v1545_v54, %v1548_v56 }
0x2585   : > { %v1550_v58 = vmul.f32 1.442695, %v1549_v57 }
0x2587   : > { %1825 = vpow2.f32 %v1550_v58 }
0x258d   : > { %v1826_v59 = vpop.eup %1825 }
0x258e   : > { %v1552_v60 = vsel %vm913_vm14, %v1826_v59, 0.0 }
0x258f   : > { %1553 = vadd.xlane.f32.xlu2 %v1552_v60 }
0x2602   : > { %v1554_v61 = vpop.xlane.xlu2 %1553 }
0x2603   : > { %1827 = vlog2.f32 %v1554_v61 }
0x2609   : > { %v1828_v62 = vpop.eup %1827 }
0x260a   : > { %v1556_v63 = vmul.f32 0.6931472, %v1828_v62 }
0x260c   : > { %v1557_v7 = vadd.f32 %v1556_v63, %v1548_v56 }
0x260e   : > { %v1558_v0 = vsub.f32 %v1545_v54, %v1557_v7 }
0x2610   : > { %1560 = vst.msk [vmem:[%s322_s14] sm:$0x1] %vm1559_vm5, %v1558_v0 }
0x2611   : > { %1856 = shalt.err (!%p1853_p3)
}
0x2612   : > { %1653 = dma.vmem_to_hbm [thread:$0]  (%p1984_p5), %s1573_s16, 16, %s1575_s17, %s1562_s21  }
0x2613 PF: > { %p1659_p4 = scmp.ge.s32.totalorder %s1891_s12, 2  ;;  %s1586_s29 = sand.u32 1, %s1879_s30  }
0x2614   : > { %s1587_s27 = scalar_lea.sflag [#allocation3], %s1586_s29 }
0x2615   : > { %p1656_p7 = pnand %p1659_p4, %p1988_p6 }
0x2617   : > { %p1657_p8 = pneg %p1656_p7 }
0x2619   : > { %1874 = dma.done.wait (%p1657_p8), %s1587_s27, 16  }
0x261a   : > { %1876 = vsyncadd (%p1657_p8), %s1587_s27, 4294967280  ;;  %p19_p9 = scmp.ge.s32.totalorder %s1971_s15, 4   ;;  %s2218_s30 = smov %s1883_s10 }
0x261b   : > { %s2219_s10 = smov %s1887_s11  ;;  %s2220_s11 = smov %s1982_s18 }
0x261c   : > { %s2221_s12 = smov %s1971_s15  ;;  %21 = sbr.rel (!%p19_p9) target bundleno = 3 (0x3), region = 91 }
0x2621   :  { %1592 = vsyncpa [#allocation3], 1 }
0x2622   :  { %1594 = vsyncpa [#allocation3 + $0x1], 1 }

</bundles_post_ra>
